<compile_context>
chip_gen: v5e
topology: v5e:2x2
jax: 0.10.0
libtpu: 0.0.40
codegen_flags: <defaults>
</compile_context>

<pallas_src>
import jax
import jax.numpy as jnp
import numpy as np
from jax.experimental import pallas as pl
from jax.experimental.pallas import tpu as pltpu


def attention_mil_kernel(x_ref, we_ref, be_ref, wa1_ref, ba1_ref,
                         wa2_ref, ba2_ref, wc_ref, bc_ref,
                         logits_ref, attn_ref):
    Bb, N, D = x_ref.shape
    E = we_ref.shape[1]
    H = wa1_ref.shape[1]

    # Flatten the bag axis so the MXU sees Bb*N rows per matmul (instead of N).
    x2 = x_ref[...].reshape(Bb * N, D)                                  # bf16 (Bb*N, D)

    # 1) tile embedding: bf16 x bf16 -> f32 MXU matmul, bias + ReLU in f32 on the VPU.
    emb2 = jnp.dot(x2, we_ref[...], preferred_element_type=jnp.float32) + be_ref[...]
    emb2 = jnp.maximum(emb2, 0.0)                                       # (Bb*N, E) f32

    # 2) attention hidden layer: cast emb to bf16 for the MXU, f32 accumulate, tanh on EUP.
    h2 = jnp.tanh(jnp.dot(emb2.astype(jnp.bfloat16), wa1_ref[...],
                          preferred_element_type=jnp.float32) + ba1_ref[...])   # (Bb*N, H)

    # Back to per-bag layout for the per-bag softmax / weighted sums.
    emb3 = emb2.reshape(Bb, N, E)
    h3 = h2.reshape(Bb, N, H)

    # Width-1 attention head as VPU multiply + lane reduce (kept off the MXU). b_a2 from SMEM.
    attn_logits = jnp.sum(h3 * wa2_ref[...].reshape(1, 1, H), axis=-1) + ba2_ref[0]  # (Bb, N)

    # Fused classifier score per tile: s[b,n] = emb[b,n] . w_c  (bag_repr never materialized).
    s = jnp.sum(emb3 * wc_ref[...].reshape(1, 1, E), axis=-1)                        # (Bb, N)

    # 3) softmax over the tile axis (N on the lane axis); divide -> reciprocal multiply.
    m = jnp.max(attn_logits, axis=-1, keepdims=True)
    e = jnp.exp(attn_logits - m)
    attn_w = e * pl.reciprocal(jnp.sum(e, axis=-1, keepdims=True))                   # (Bb, N)

    # 4)+5) logits = sum_n attn_w * (emb . w_c) + b_c  ==  classifier(bag_repr)
    logits_ref[...] = jnp.sum(attn_w * s, axis=-1, keepdims=True) + bc_ref[0]        # (Bb, 1)
    attn_ref[...] = attn_w                                                           # (Bb, N)


def _vmem_budget_bytes():
    """~75% of per-core VMEM: ~48 MiB on v7x (64 MiB/TC), ~96 MiB on v5e/v6e (128 MiB)."""
    try:
        cap = int(pltpu.get_tpu_info().vmem_capacity_bytes)
    except Exception:
        cap = 64 * 1024 * 1024  # conservative fallback = v7x per-TC VMEM
    return (3 * cap) // 4


def _step_vmem_bytes(Bb, N, D, E, H):
    """Single consistent VMEM model used both to pick Bb and to set vmem_limit_bytes."""
    rows = Bb * N
    x_block = rows * D * 2                                   # bf16 x tile
    weights = (D * E + E * H) * 2 + 2 * (E + H) * 4          # bf16 matrices + f32 bias/head rows
    outputs = Bb * (N + 1) * 4                               # attn (Bb,N) + logits (Bb,1), f32
    # Live in-kernel values: possible reshape copy of x, f32 emb/h, bf16 emb copy, (Bb,N) temps.
    activs = rows * D * 2 + rows * E * 6 + rows * H * 4 + 4 * rows * 4
    return 2 * (x_block + weights + outputs) + activs        # x2 => double-buffered pipeline I/O


def _choose_block_b(B, N, D, E, H, vmem_budget):
    """Bags per grid step. Must divide B and be sublane-aligned (multiple of 8, or == B).
    Prefer the largest block whose Bb*N rows land near the MXU sweet spot:
      - whole batch in one step when the full problem is small (<= ~1024 rows) and fits;
      - otherwise 512-1024 rows per step with >= 2 grid steps (>= 4 preferred for v7x)."""
    cands = [b for b in range(1, B + 1) if B % b == 0 and (b % 8 == 0 or b == B)]
    fitting = [b for b in cands if _step_vmem_bytes(b, N, D, E, H) <= vmem_budget]
    if not fitting:
        fitting = [min(cands)]
    if B in fitting and B * N <= 1024:
        return B                                            # e.g. B=16, N=8 -> 128 rows, 1 step
    multi = [b for b in fitting if B // b >= 2] or fitting
    deep = [b for b in multi if B // b >= 4] or multi
    sweet = [b for b in deep if 512 <= b * N <= 1024]
    if sweet:
        return max(sweet)
    under = [b for b in deep if b * N < 512]
    if under:
        return max(under)
    return min(deep)


def attention_mil_forward(x, params, block_b=None):
    """x: [B, N, D_in] float32. Returns (logits [B] f32, attn_weights [B, N] f32)."""
    B, N, D = x.shape
    we, be, wa1, ba1, wa2, ba2, wc, bc = params
    E = we.shape[1]
    H = wa1.shape[1]

    vmem_budget = _vmem_budget_bytes()
    Bb = block_b if block_b is not None else _choose_block_b(B, N, D, E, H, vmem_budget)
    assert B % Bb == 0, "block_b must divide the batch size"

    vmem_need = _step_vmem_bytes(Bb, N, D, E, H)
    vmem_limit = int(min(vmem_budget, 100 * 1024 * 1024))
    assert vmem_need <= vmem_limit, (
        f"block_b={Bb} needs ~{vmem_need} bytes of VMEM but the limit is {vmem_limit}")

    # bf16 MXU operands (halves HBM traffic for x; f32 accumulation kept inside the kernel).
    x_bf = x.astype(jnp.bfloat16)
    we_bf = we.astype(jnp.bfloat16)
    wa1_bf = wa1.astype(jnp.bfloat16)
    # (1,1) scalars -> flat (1,) arrays living in SMEM (no VMEM pipeline buffers for them).
    ba2_s = ba2.reshape((1,))
    bc_s = bc.reshape((1,))

    grid = (B // Bb,)

    logits2d, attn2d = pl.pallas_call(
        attention_mil_kernel,
        out_shape=(
            jax.ShapeDtypeStruct((B, 1), jnp.float32),
            jax.ShapeDtypeStruct((B, N), jnp.float32),
        ),
        grid=grid,
        in_specs=[
            pl.BlockSpec((Bb, N, D), lambda b: (b, 0, 0)),       # x (bf16), Bb bags per step
            pl.BlockSpec((D, E), lambda b: (0, 0)),              # W_e  (bf16)
            pl.BlockSpec((1, E), lambda b: (0, 0)),              # b_e  (f32)
            pl.BlockSpec((E, H), lambda b: (0, 0)),              # W_a1 (bf16)
            pl.BlockSpec((1, H), lambda b: (0, 0)),              # b_a1 (f32)
            pl.BlockSpec((1, H), lambda b: (0, 0)),              # w_a2 row (f32)
            pl.BlockSpec(memory_space=pltpu.MemorySpace.SMEM),   # b_a2 scalar
            pl.BlockSpec((1, E), lambda b: (0, 0)),              # w_c row (f32)
            pl.BlockSpec(memory_space=pltpu.MemorySpace.SMEM),   # b_c scalar
        ],
        out_specs=(
            pl.BlockSpec((Bb, 1), lambda b: (b, 0)),             # logits (batched store)
            pl.BlockSpec((Bb, N), lambda b: (b, 0)),             # attention weights (lane-dense)
        ),
        compiler_params=pltpu.CompilerParams(
            dimension_semantics=("parallel",),
            vmem_limit_bytes=vmem_limit,
        ),
    )(x_bf, we_bf, be, wa1_bf, ba1, wa2, ba2_s, wc, bc_s)

    return logits2d[:, 0], attn2d


def init_params(key, input_dim, embed_dim, attn_hidden_dim):
    """PyTorch nn.Linear-style init (uniform +/- 1/sqrt(fan_in)).
    Big weights stored as (in, out) for x @ W; the two width-1 heads are stored as
    (1, in) rows because the kernel computes them as VPU lane reductions."""
    ks = jax.random.split(key, 8)

    def u(k, shp, fan_in):
        b = 1.0 / np.sqrt(fan_in)
        return jax.random.uniform(k, shp, jnp.float32, -b, b)

    we  = u(ks[0], (input_dim, embed_dim), input_dim)
    be  = u(ks[1], (1, embed_dim), input_dim)
    wa1 = u(ks[2], (embed_dim, attn_hidden_dim), embed_dim)
    ba1 = u(ks[3], (1, attn_hidden_dim), embed_dim)
    wa2 = u(ks[4], (1, attn_hidden_dim), attn_hidden_dim)
    ba2 = u(ks[5], (1, 1), attn_hidden_dim)
    wc  = u(ks[6], (1, embed_dim), embed_dim)
    bc  = u(ks[7], (1, 1), embed_dim)
    return we, be, wa1, ba1, wa2, ba2, wc, bc


def reference_forward(x, params):
    """Pure-f32 reference matching the PyTorch module semantics."""
    we, be, wa1, ba1, wa2, ba2, wc, bc = params
    hi = jax.lax.Precision.HIGHEST
    emb = jax.nn.relu(jnp.dot(x, we, precision=hi) + be)                     # [B, N, E]
    h = jnp.tanh(jnp.dot(emb, wa1, precision=hi) + ba1)                      # [B, N, H]
    attn_logits = jnp.dot(h, wa2.T, precision=hi) + ba2                      # [B, N, 1]
    attn_w = jax.nn.softmax(attn_logits, axis=1)                             # [B, N, 1]
    bag = jnp.sum(attn_w * emb, axis=1)                                      # [B, E]
    logits = (jnp.dot(bag, wc.T, precision=hi) + bc)[:, 0]                   # [B]
    return logits, attn_w[:, :, 0]


if __name__ == "__main__":
    # Small shapes consistent with the module ([batch, num_tiles, input_dim]);
    # feature dims use the module's defaults (768 / 256 / 256).
    B, N = 16, 8
    D_IN, E_DIM, H_DIM = 768, 256, 256

    key = jax.random.PRNGKey(0)
    kx, kp = jax.random.split(key)
    x = jax.random.normal(kx, (B, N, D_IN), jnp.float32)
    params = init_params(kp, D_IN, E_DIM, H_DIM)

    logits, attn_weights = jax.block_until_ready(attention_mil_forward(x, params))

    # bf16 MXU operands vs a Precision.HIGHEST f32 reference -> bf16-appropriate tolerances.
    ref_logits, ref_attn = reference_forward(x, params)
    np.testing.assert_allclose(np.asarray(logits), np.asarray(ref_logits),
                               rtol=2e-2, atol=5e-3)
    np.testing.assert_allclose(np.asarray(attn_weights), np.asarray(ref_attn),
                               rtol=2e-2, atol=5e-3)

    print("KERNEL_OK")
</pallas_src>

<mosaic_0001>
module attributes {stable_mosaic.version = 11 : i64} {
  func.func @attention_mil_kernel(%arg0: i32, %arg1: memref<16x8x768xbf16, #tpu.memory_space<vmem>>, %arg2: memref<768x256xbf16, #tpu.memory_space<vmem>>, %arg3: memref<1x256xf32, #tpu.memory_space<vmem>>, %arg4: memref<256x256xbf16, #tpu.memory_space<vmem>>, %arg5: memref<1x256xf32, #tpu.memory_space<vmem>>, %arg6: memref<1x256xf32, #tpu.memory_space<vmem>>, %arg7: memref<1xf32, #tpu.memory_space<smem>>, %arg8: memref<1x256xf32, #tpu.memory_space<vmem>>, %arg9: memref<1xf32, #tpu.memory_space<smem>>, %arg10: memref<16x1xf32, #tpu.memory_space<vmem>>, %arg11: memref<16x8xf32, #tpu.memory_space<vmem>>) attributes {dimension_semantics = [#tpu.dimension_semantics<parallel>], iteration_bounds = array<i64: 1>, scalar_prefetch = 0 : i64, scratch_operands = 0 : i64, tpu.core_type = #tpu.core_type<tc>, window_params = [{transform_indices = @transform_0, window_bounds = array<i64: 16, 8, 768>}, {pipeline_mode = #tpu.pipeline_mode<synchronous>, transform_indices = @transform_1, window_bounds = array<i64: 768, 256>}, {pipeline_mode = #tpu.pipeline_mode<synchronous>, transform_indices = @transform_2, window_bounds = array<i64: 1, 256>}, {pipeline_mode = #tpu.pipeline_mode<synchronous>, transform_indices = @transform_3, window_bounds = array<i64: 256, 256>}, {pipeline_mode = #tpu.pipeline_mode<synchronous>, transform_indices = @transform_4, window_bounds = array<i64: 1, 256>}, {pipeline_mode = #tpu.pipeline_mode<synchronous>, transform_indices = @transform_5, window_bounds = array<i64: 1, 256>}, {transform_indices = @transform_6, window_bounds = array<i64: 1>}, {pipeline_mode = #tpu.pipeline_mode<synchronous>, transform_indices = @transform_7, window_bounds = array<i64: 1, 256>}, {transform_indices = @transform_8, window_bounds = array<i64: 1>}, {transform_indices = @transform_9, window_bounds = array<i64: 16, 1>}, {transform_indices = @transform_10, window_bounds = array<i64: 16, 8>}]} {
    %c0 = arith.constant 0 : index
    %c0_0 = arith.constant 0 : index
    %c0_1 = arith.constant 0 : index
    %0 = vector.load %arg1[%c0, %c0_0, %c0_1] : memref<16x8x768xbf16, #tpu.memory_space<vmem>>, vector<16x8x768xbf16>
    %1 = vector.shape_cast %0 : vector<16x8x768xbf16> to vector<128x768xbf16>
    %c0_2 = arith.constant 0 : index
    %c0_3 = arith.constant 0 : index
    %2 = vector.load %arg2[%c0_2, %c0_3] : memref<768x256xbf16, #tpu.memory_space<vmem>>, vector<768x256xbf16>
    %cst = arith.constant dense<0.000000e+00> : vector<128x256xf32>
    %3 = tpu.matmul %1, %2, %cst {dimension_numbers = #tpu.dot_dimension_numbers<[1], [0], [0], [1], [0, 0, 1, 1], [], []>} : vector<128x768xbf16>, vector<768x256xbf16>, vector<128x256xf32> -> vector<128x256xf32>
    %c0_4 = arith.constant 0 : index
    %c0_5 = arith.constant 0 : index
    %4 = vector.load %arg3[%c0_4, %c0_5] : memref<1x256xf32, #tpu.memory_space<vmem>>, vector<1x256xf32>
    %5 = vector.broadcast %4 : vector<1x256xf32> to vector<128x256xf32>
    %6 = arith.addf %3, %5 : vector<128x256xf32>
    %cst_6 = arith.constant 0.000000e+00 : f32
    %7 = vector.broadcast %cst_6 : f32 to vector<128x256xf32>
    %8 = arith.maximumf %6, %7 : vector<128x256xf32>
    %9 = arith.truncf %8 : vector<128x256xf32> to vector<128x256xbf16>
    %c0_7 = arith.constant 0 : index
    %c0_8 = arith.constant 0 : index
    %10 = vector.load %arg4[%c0_7, %c0_8] : memref<256x256xbf16, #tpu.memory_space<vmem>>, vector<256x256xbf16>
    %cst_9 = arith.constant dense<0.000000e+00> : vector<128x256xf32>
    %11 = tpu.matmul %9, %10, %cst_9 {dimension_numbers = #tpu.dot_dimension_numbers<[1], [0], [0], [1], [0, 0, 1, 1], [], []>} : vector<128x256xbf16>, vector<256x256xbf16>, vector<128x256xf32> -> vector<128x256xf32>
    %c0_10 = arith.constant 0 : index
    %c0_11 = arith.constant 0 : index
    %12 = vector.load %arg5[%c0_10, %c0_11] : memref<1x256xf32, #tpu.memory_space<vmem>>, vector<1x256xf32>
    %13 = vector.broadcast %12 : vector<1x256xf32> to vector<128x256xf32>
    %14 = arith.addf %11, %13 : vector<128x256xf32>
    %15 = math.tanh %14 : vector<128x256xf32>
    %16 = vector.shape_cast %8 : vector<128x256xf32> to vector<16x8x256xf32>
    %17 = vector.shape_cast %15 : vector<128x256xf32> to vector<16x8x256xf32>
    %c0_12 = arith.constant 0 : index
    %c0_13 = arith.constant 0 : index
    %18 = vector.load %arg6[%c0_12, %c0_13] : memref<1x256xf32, #tpu.memory_space<vmem>>, vector<1x256xf32>
    %19 = vector.shape_cast %18 : vector<1x256xf32> to vector<1x1x256xf32>
    %20 = vector.broadcast %19 : vector<1x1x256xf32> to vector<16x8x256xf32>
    %21 = arith.mulf %17, %20 : vector<16x8x256xf32>
    %cst_14 = arith.constant dense<0.000000e+00> : vector<16x8xf32>
    %22 = vector.multi_reduction <add>, %21, %cst_14 [2] : vector<16x8x256xf32> to vector<16x8xf32>
    %c0_15 = arith.constant 0 : index
    %23 = memref.load %arg7[%c0_15] : memref<1xf32, #tpu.memory_space<smem>>
    %24 = vector.broadcast %23 : f32 to vector<16x8xf32>
    %25 = arith.addf %22, %24 : vector<16x8xf32>
    %c0_16 = arith.constant 0 : index
    %c0_17 = arith.constant 0 : index
    %26 = vector.load %arg8[%c0_16, %c0_17] : memref<1x256xf32, #tpu.memory_space<vmem>>, vector<1x256xf32>
    %27 = vector.shape_cast %26 : vector<1x256xf32> to vector<1x1x256xf32>
    %28 = vector.broadcast %27 : vector<1x1x256xf32> to vector<16x8x256xf32>
    %29 = arith.mulf %16, %28 : vector<16x8x256xf32>
    %cst_18 = arith.constant dense<0.000000e+00> : vector<16x8xf32>
    %30 = vector.multi_reduction <add>, %29, %cst_18 [2] : vector<16x8x256xf32> to vector<16x8xf32>
    %cst_19 = arith.constant dense<0xFF800000> : vector<16xf32>
    %31 = vector.multi_reduction <maximumf>, %25, %cst_19 [1] : vector<16x8xf32> to vector<16xf32>
    %32 = vector.shape_cast %31 : vector<16xf32> to vector<16x1xf32>
    %33 = vector.broadcast %32 : vector<16x1xf32> to vector<16x8xf32>
    %34 = arith.subf %25, %33 : vector<16x8xf32>
    %35 = math.exp %34 : vector<16x8xf32>
    %cst_20 = arith.constant dense<0.000000e+00> : vector<16xf32>
    %36 = vector.multi_reduction <add>, %35, %cst_20 [1] : vector<16x8xf32> to vector<16xf32>
    %37 = vector.shape_cast %36 : vector<16xf32> to vector<16x1xf32>
    %38 = tpu.reciprocal %37 : vector<16x1xf32> -> vector<16x1xf32>
    %39 = vector.broadcast %38 : vector<16x1xf32> to vector<16x8xf32>
    %40 = arith.mulf %35, %39 : vector<16x8xf32>
    %41 = arith.mulf %40, %30 : vector<16x8xf32>
    %cst_21 = arith.constant dense<0.000000e+00> : vector<16xf32>
    %42 = vector.multi_reduction <add>, %41, %cst_21 [1] : vector<16x8xf32> to vector<16xf32>
    %43 = vector.shape_cast %42 : vector<16xf32> to vector<16x1xf32>
    %c0_22 = arith.constant 0 : index
    %44 = memref.load %arg9[%c0_22] : memref<1xf32, #tpu.memory_space<smem>>
    %45 = vector.broadcast %44 : f32 to vector<16x1xf32>
    %46 = arith.addf %43, %45 : vector<16x1xf32>
    %c0_23 = arith.constant 0 : index
    %c0_24 = arith.constant 0 : index
    %47 = vector.load %arg10[%c0_23, %c0_24] : memref<16x1xf32, #tpu.memory_space<vmem>>, vector<16x1xf32>
    tpu.vector_store %arg10[%c0_23, %c0_24], %46 {strides = array<i32>} : memref<16x1xf32, #tpu.memory_space<vmem>>, vector<16x1xf32>,
    %c0_25 = arith.constant 0 : index
    %c0_26 = arith.constant 0 : index
    %48 = vector.load %arg11[%c0_25, %c0_26] : memref<16x8xf32, #tpu.memory_space<vmem>>, vector<16x8xf32>
    tpu.vector_store %arg11[%c0_25, %c0_26], %40 {strides = array<i32>} : memref<16x8xf32, #tpu.memory_space<vmem>>, vector<16x8xf32>,
    return
  }
  func.func @transform_0(%arg0: i32) -> (i32, i32, i32) {
    %c0_i32 = arith.constant 0 : i32
    %c0_i32_0 = arith.constant 0 : i32
    %c0_i32_1 = arith.constant 0 : i32
    return %arg0, %c0_i32, %c0_i32_0 : i32, i32, i32
  }
  func.func @transform_1(%arg0: i32) -> (i32, i32) {
    %c0_i32 = arith.constant 0 : i32
    %c0_i32_0 = arith.constant 0 : i32
    %c0_i32_1 = arith.constant 0 : i32
    return %c0_i32, %c0_i32_0 : i32, i32
  }
  func.func @transform_2(%arg0: i32) -> (i32, i32) {
    %c0_i32 = arith.constant 0 : i32
    %c0_i32_0 = arith.constant 0 : i32
    %c0_i32_1 = arith.constant 0 : i32
    return %c0_i32, %c0_i32_0 : i32, i32
  }
  func.func @transform_3(%arg0: i32) -> (i32, i32) {
    %c0_i32 = arith.constant 0 : i32
    %c0_i32_0 = arith.constant 0 : i32
    %c0_i32_1 = arith.constant 0 : i32
    return %c0_i32, %c0_i32_0 : i32, i32
  }
  func.func @transform_4(%arg0: i32) -> (i32, i32) {
    %c0_i32 = arith.constant 0 : i32
    %c0_i32_0 = arith.constant 0 : i32
    %c0_i32_1 = arith.constant 0 : i32
    return %c0_i32, %c0_i32_0 : i32, i32
  }
  func.func @transform_5(%arg0: i32) -> (i32, i32) {
    %c0_i32 = arith.constant 0 : i32
    %c0_i32_0 = arith.constant 0 : i32
    %c0_i32_1 = arith.constant 0 : i32
    return %c0_i32, %c0_i32_0 : i32, i32
  }
  func.func @transform_6(%arg0: i32) -> i32 {
    %c0_i32 = arith.constant 0 : i32
    %c0_i32_0 = arith.constant 0 : i32
    return %c0_i32 : i32
  }
  func.func @transform_7(%arg0: i32) -> (i32, i32) {
    %c0_i32 = arith.constant 0 : i32
    %c0_i32_0 = arith.constant 0 : i32
    %c0_i32_1 = arith.constant 0 : i32
    return %c0_i32, %c0_i32_0 : i32, i32
  }
  func.func @transform_8(%arg0: i32) -> i32 {
    %c0_i32 = arith.constant 0 : i32
    %c0_i32_0 = arith.constant 0 : i32
    return %c0_i32 : i32
  }
  func.func @transform_9(%arg0: i32) -> (i32, i32) {
    %c0_i32 = arith.constant 0 : i32
    %c0_i32_0 = arith.constant 0 : i32
    return %arg0, %c0_i32 : i32, i32
  }
  func.func @transform_10(%arg0: i32) -> (i32, i32) {
    %c0_i32 = arith.constant 0 : i32
    %c0_i32_0 = arith.constant 0 : i32
    return %arg0, %c0_i32 : i32, i32
  }
}

</mosaic_0001>

<bundles_post_ra>
// kernel: tpu_custom_call.1
= control target key start
LH: loop header
LB: loop body
LE: loop exit
PB: predicated region body
PF: predicated region fallthrough
CT: control target
= control target key end

     0   :  { %18 = vsyncpa [#allocation5], 0  ;;  %s4898_s0 = inlined_call_operand.hbm [shape: bf16[16,8,768], index: 0, kind: input, shape index: {}]   ;;  %s4899_s1 = inlined_call_operand.hbm [shape: bf16[768,256], index: 1, kind: input, shape index: {}]   ;;  %s4900_s2 = inlined_call_operand.vmem [shape: f32[1,256], index: 2, kind: input, shape index: {}]   ;;  %s4901_s3 = inlined_call_operand.hbm [shape: bf16[256,256], index: 3, kind: input, shape index: {}]   ;;  %s4902_s4 = inlined_call_operand.vmem [shape: f32[1,256], index: 4, kind: input, shape index: {}]   ;;  %s4903_s5 = inlined_call_operand.vmem [shape: f32[1,256], index: 5, kind: input, shape index: {}]   ;;  %s4904_s6 = inlined_call_operand.<no memory space> [shape: f32[1], index: 6, kind: input, shape index: {}]   ;;  %s4905_s7 = inlined_call_operand.vmem [shape: f32[1,256], index: 7, kind: input, shape index: {}]   ;;  %s4906_s8 = inlined_call_operand.<no memory space> [shape: f32[1], index: 8, kind: input, shape index: {}]   ;;  %s4907_s9 = inlined_call_operand.vmem [shape: f32[16,1], index: 9, kind: output, shape index: {0}]   ;;  %s4908_s10 = inlined_call_operand.vmem [shape: f32[16,8], index: 10, kind: output, shape index: {1}]  }
   0x1   :  { %19 = vsyncpa [#allocation7], 0  ;;  %s37_s15 = sshll.u32 %s4899_s1, 4  ;;  %s3831_s16 = smov [#allocation6]   ;;  %s38_s15 = int_to_ptr.hbm [resolvable:$true] %s37_s15 }
   0x2   :  { %s39_s17 = sshll.u32 %s3831_s16, 4  ;;  %s24_s20 = sshll.u32 %s4898_s0, 4  ;;  %s40_s17 = int_to_ptr.vmem [resolvable:$true] %s39_s17  ;;  %s25_s20 = int_to_ptr.hbm [resolvable:$true] %s24_s20 }
   0x3   :  { %s3832_s21 = smov 128   ;;  %s3833_s22 = smov 8  }
   0x4   :  { %45 = dma.hbm_to_vmem [thread:$0]  %s38_s15, 12288, %s40_s17, [#allocation7], %s3832_s21, %s3832_s21, %s3833_s22  }
   0x5   :  { %s3834_s23 = smov [#allocation4]   ;;  %s3835_s25 = smov 384  }
   0x6   :  { %s26_s24 = sshll.u32 %s3834_s23, 4  ;;  %s3836_s26 = smov 24   ;;  %s27_s24 = int_to_ptr.vmem [resolvable:$true] %s26_s24 }
   0x7   :  { %32 = dma.hbm_to_vmem [thread:$0]  %s25_s20, 6144, %s27_s24, [#allocation5], %s3835_s25, %s3835_s25, %s3836_s26  }
   0x8   :  { %s52_s28 = sshll.u32 %s4901_s3, 4  ;;  %s3837_s29 = smov [#allocation8]   ;;  %s53_s28 = int_to_ptr.hbm [resolvable:$true] %s52_s28 }
   0x9   :  { %s54_s30 = sshll.u32 %s3837_s29, 4  ;;  %s55_s30 = int_to_ptr.vmem [resolvable:$true] %s54_s30 }
   0xa   :  { %60 = dma.hbm_to_vmem [thread:$0]  %s53_s28, 4096, %s55_s30, [#allocation7], %s3832_s21, %s3832_s21, %s3833_s22  }
   0xb   :  { %3827 = dma.done.wait [#allocation5], 6144  }
   0xc   :  { %3828 = vsyncadd [#allocation5], 4294961152 }
   0xd   :  { %3829 = dma.done.wait [#allocation7], 16384  }
   0xe   :  { %3830 = vsyncadd [#allocation7], 4294950912  ;;  %v3014_v0 = vld [vmem:[#allocation6 + $0x70] sm:$0xf]  ;;  %v3531_v1 = vld [vmem:[#allocation6 + $0x74] sm:$0xf0] }
   0xf   :  { %v3078_v2 = vld [vmem:[#allocation6 + $0xf0] sm:$0xf]  ;;  %v3015_v3 = vor.u32 %v3531_v1, %v3014_v0  ;;  %v3547_v4 = vld [vmem:[#allocation6 + $0xf4] sm:$0xf0]  ;;  %v3006_v11 = vld [vmem:[#allocation6 + $0x60] sm:$0xf] }
  0x10   :  { %v3142_v5 = vld [vmem:[#allocation6 + $0x170] sm:$0xf]  ;;  %v3563_v6 = vld [vmem:[#allocation6 + $0x174] sm:$0xf0]  ;;  %v3079_v7 = vor.u32 %v3547_v4, %v3078_v2  ;;  %v3529_v13 = vld [vmem:[#allocation6 + $0x64] sm:$0xf0] }
  0x11   :  { %v3143_v8 = vor.u32 %v3563_v6, %v3142_v5  ;;  %v3206_v9 = vld [vmem:[#allocation6 + $0x1f0] sm:$0xf]  ;;  %v3579_v10 = vld [vmem:[#allocation6 + $0x1f4] sm:$0xf0]  ;;  %953 = vmatpush.bf16.msra.mxu0 %v3015_v3  ;;  %v3070_v14 = vld [vmem:[#allocation6 + $0xe0] sm:$0xf]  ;;  %v3007_v16 = vor.u32 %v3529_v13, %v3006_v11 }
  0x12   :  { %v3207_v12 = vor.u32 %v3579_v10, %v3206_v9  ;;  %v3545_v15 = vld [vmem:[#allocation6 + $0xe4] sm:$0xf0]  ;;  %1002 = vmatpush.bf16.msra.mxu1 %v3079_v7  ;;  %v3134_v18 = vld [vmem:[#allocation6 + $0x160] sm:$0xf]  ;;  %v2998_v23 = vld [vmem:[#allocation6 + $0x50] sm:$0xf] }
  0x13   :  { %1051 = vmatpush.bf16.msra.mxu2 %v3143_v8  ;;  %v3071_v17 = vor.u32 %v3545_v15, %v3070_v14  ;;  %v3561_v19 = vld [vmem:[#allocation6 + $0x164] sm:$0xf0]  ;;  %v3198_v20 = vld [vmem:[#allocation6 + $0x1e0] sm:$0xf]  ;;  %v3527_v24 = vld [vmem:[#allocation6 + $0x54] sm:$0xf0] }
  0x14   :  { %1100 = vmatpush.bf16.msra.mxu3 %v3207_v12  ;;  %v3135_v21 = vor.u32 %v3561_v19, %v3134_v18  ;;  %v3577_v22 = vld [vmem:[#allocation6 + $0x1e4] sm:$0xf0]  ;;  %v3062_v26 = vld [vmem:[#allocation6 + $0xd0] sm:$0xf]  ;;  %v3543_v27 = vld [vmem:[#allocation6 + $0xd4] sm:$0xf0]  ;;  %v2999_v29 = vor.u32 %v3527_v24, %v2998_v23 }
  0x15   :  { %v3199_v25 = vor.u32 %v3577_v22, %v3198_v20  ;;  %v3126_v28 = vld [vmem:[#allocation6 + $0x150] sm:$0xf]  ;;  %954 = vmatpush.bf16.msra.mxu0 %v3007_v16  ;;  %v3559_v30 = vld [vmem:[#allocation6 + $0x154] sm:$0xf0]  ;;  %v3063_v33 = vor.u32 %v3543_v27, %v3062_v26  ;;  %v2990_v35 = vld [vmem:[#allocation6 + $0x40] sm:$0xf] }
  0x16   :  { %v3190_v31 = vld [vmem:[#allocation6 + $0x1d0] sm:$0xf]  ;;  %v3575_v32 = vld [vmem:[#allocation6 + $0x1d4] sm:$0xf0]  ;;  %1003 = vmatpush.bf16.msra.mxu1 %v3071_v17  ;;  %v3127_v34 = vor.u32 %v3559_v30, %v3126_v28  ;;  %v3525_v36 = vld [vmem:[#allocation6 + $0x44] sm:$0xf0] }
  0x17   :  { %1052 = vmatpush.bf16.msra.mxu2 %v3135_v21  ;;  %v3054_v37 = vld [vmem:[#allocation6 + $0xc0] sm:$0xf]  ;;  %v3191_v38 = vor.u32 %v3575_v32, %v3190_v31  ;;  %v3541_v39 = vld [vmem:[#allocation6 + $0xc4] sm:$0xf0]  ;;  %v2991_v44 = vor.u32 %v3525_v36, %v2990_v35  ;;  %v2982_v47 = vld [vmem:[#allocation6 + $0x30] sm:$0xf] }
  0x18   :  { %1101 = vmatpush.bf16.msra.mxu3 %v3199_v25  ;;  %v3118_v40 = vld [vmem:[#allocation6 + $0x140] sm:$0xf]  ;;  %v3557_v41 = vld [vmem:[#allocation6 + $0x144] sm:$0xf0]  ;;  %v3055_v45 = vor.u32 %v3541_v39, %v3054_v37  ;;  %v3523_v48 = vld [vmem:[#allocation6 + $0x34] sm:$0xf0] }
  0x19   :  { %v3182_v42 = vld [vmem:[#allocation6 + $0x1c0] sm:$0xf]  ;;  %v3573_v43 = vld [vmem:[#allocation6 + $0x1c4] sm:$0xf0]  ;;  %955 = vmatpush.bf16.msra.mxu0 %v2999_v29  ;;  %v3119_v46 = vor.u32 %v3557_v41, %v3118_v40  ;;  %v3046_v49 = vld [vmem:[#allocation6 + $0xb0] sm:$0xf]  ;;  %v2983_v56 = vor.u32 %v3523_v48, %v2982_v47 }
  0x1a   :  { %1004 = vmatpush.bf16.msra.mxu1 %v3063_v33  ;;  %v3183_v50 = vor.u32 %v3573_v43, %v3182_v42  ;;  %v3539_v51 = vld [vmem:[#allocation6 + $0xb4] sm:$0xf0]  ;;  %v3110_v52 = vld [vmem:[#allocation6 + $0x130] sm:$0xf]  ;;  %v2974_v59 = vld [vmem:[#allocation6 + $0x20] sm:$0xf] }
  0x1b   :  { %1053 = vmatpush.bf16.msra.mxu2 %v3127_v34  ;;  %v3555_v53 = vld [vmem:[#allocation6 + $0x134] sm:$0xf0]  ;;  %v3174_v54 = vld [vmem:[#allocation6 + $0x1b0] sm:$0xf]  ;;  %v3047_v57 = vor.u32 %v3539_v51, %v3046_v49  ;;  %v3521_v60 = vld [vmem:[#allocation6 + $0x24] sm:$0xf0] }
  0x1c   :  { %1102 = vmatpush.bf16.msra.mxu3 %v3191_v38  ;;  %v3571_v55 = vld [vmem:[#allocation6 + $0x1b4] sm:$0xf0]  ;;  %v3111_v58 = vor.u32 %v3555_v53, %v3110_v52  ;;  %v3038_v61 = vld [vmem:[#allocation6 + $0xa0] sm:$0xf]  ;;  %v3537_v63 = vld [vmem:[#allocation6 + $0xa4] sm:$0xf0]  ;;  %v2975_v4 = vor.u32 %v3521_v60, %v2974_v59 }
  0x1d   :  { %956 = vmatpush.bf16.msra.mxu0 %v2991_v44  ;;  %v3175_v62 = vor.u32 %v3571_v55, %v3174_v54  ;;  %v3102_v0 = vld [vmem:[#allocation6 + $0x120] sm:$0xf]  ;;  %v3553_v1 = vld [vmem:[#allocation6 + $0x124] sm:$0xf0]  ;;  %v3039_v5 = vor.u32 %v3537_v63, %v3038_v61  ;;  %v2966_v7 = vld [vmem:[#allocation6 + $0x10] sm:$0xf] }
  0x1e   :  { %1005 = vmatpush.bf16.msra.mxu1 %v3055_v45  ;;  %v3166_v2 = vld [vmem:[#allocation6 + $0x1a0] sm:$0xf]  ;;  %v3569_v3 = vld [vmem:[#allocation6 + $0x1a4] sm:$0xf0]  ;;  %v3103_v6 = vor.u32 %v3553_v1, %v3102_v0  ;;  %v3519_v8 = vld [vmem:[#allocation6 + $0x14] sm:$0xf0] }
  0x1f   :  { %1054 = vmatpush.bf16.msra.mxu2 %v3119_v46  ;;  %v3030_v9 = vld [vmem:[#allocation6 + $0x90] sm:$0xf]  ;;  %v3167_v10 = vor.u32 %v3569_v3, %v3166_v2  ;;  %v3535_v11 = vld [vmem:[#allocation6 + $0x94] sm:$0xf0]  ;;  %v2958_v16 = vld [vmem:[#allocation6] sm:$0xf]  ;;  %v2967_v17 = vor.u32 %v3519_v8, %v2966_v7 }
  0x20   :  { %1103 = vmatpush.bf16.msra.mxu3 %v3183_v50  ;;  %v3094_v12 = vld [vmem:[#allocation6 + $0x110] sm:$0xf]  ;;  %v3551_v13 = vld [vmem:[#allocation6 + $0x114] sm:$0xf0]  ;;  %v3517_v18 = vld [vmem:[#allocation6 + $0x4] sm:$0xf0]  ;;  %v3031_v21 = vor.u32 %v3535_v11, %v3030_v9 }
  0x21   :  { %957 = vmatpush.bf16.msra.mxu0 %v2983_v56  ;;  %v3158_v14 = vld [vmem:[#allocation6 + $0x190] sm:$0xf]  ;;  %v3567_v15 = vld [vmem:[#allocation6 + $0x194] sm:$0xf0]  ;;  %v3022_v19 = vld [vmem:[#allocation6 + $0x80] sm:$0xf]  ;;  %v3095_v22 = vor.u32 %v3551_v13, %v3094_v12  ;;  %v2959_v34 = vor.u32 %v3517_v18, %v2958_v16 }
  0x22   :  { %1006 = vmatpush.bf16.msra.mxu1 %v3047_v57  ;;  %v3533_v20 = vld [vmem:[#allocation6 + $0x84] sm:$0xf0]  ;;  %v3086_v23 = vld [vmem:[#allocation6 + $0x100] sm:$0xf]  ;;  %v3159_v26 = vor.u32 %v3567_v15, %v3158_v14  ;;  %v3471_v29 = vld [vmem:[#allocation4 + $0x14] sm:$0xf0] }
  0x23   :  { %1055 = vmatpush.bf16.msra.mxu2 %v3111_v58  ;;  %v3549_v24 = vld [vmem:[#allocation6 + $0x104] sm:$0xf0]  ;;  %v3150_v25 = vld [vmem:[#allocation6 + $0x180] sm:$0xf]  ;;  %v3468_v30 = vld [vmem:[#allocation4 + $0x4] sm:$0xf]  ;;  %v3023_v38 = vor.u32 %v3533_v20, %v3022_v19 }
  0x24   :  { %1104 = vmatpush.bf16.msra.mxu3 %v3175_v62  ;;  %v3565_v27 = vld [vmem:[#allocation6 + $0x184] sm:$0xf0]  ;;  %v2766_v28 = vld [vmem:[#allocation4] sm:$0xf]  ;;  %v2768_v31 = vld [vmem:[#allocation4 + $0x18] sm:$0xf0]  ;;  %v3087_v39 = vor.u32 %v3549_v24, %v3086_v23 }
  0x25   :  { %958 = vmatpush.bf16.msra.mxu0 %v2975_v4  ;;  %v3530_v32 = vld [vmem:[#allocation6 + $0x74] sm:$0xf]  ;;  %v3016_v33 = vld [vmem:[#allocation6 + $0x78] sm:$0xf0]  ;;  %v2774_v35 = vld [vmem:[#allocation4 + $0x8] sm:$0xf]  ;;  %v3151_v43 = vor.u32 %v3565_v27, %v3150_v25  ;;  %v3903_v48 = vor.u32 %v3471_v29, %v2766_v28  ;;  %v3905_v53 = vor.u32 %v3468_v30, %v2768_v31 }
  0x26   :  { %1007 = vmatpush.bf16.msra.mxu1 %v3039_v5  ;;  %v3546_v36 = vld [vmem:[#allocation6 + $0xf4] sm:$0xf]  ;;  %v3080_v37 = vld [vmem:[#allocation6 + $0xf8] sm:$0xf0]  ;;  %v3472_v40 = vld [vmem:[#allocation4 + $0x1c] sm:$0xf0]  ;;  %v3019_v44 = vor.u32 %v3530_v32, %v3016_v33 }
  0x27   :  { %1056 = vmatpush.bf16.msra.mxu2 %v3103_v6  ;;  %v3469_v41 = vld [vmem:[#allocation4 + $0xc] sm:$0xf]  ;;  %v2776_v42 = vld [vmem:[#allocation4 + $0x20] sm:$0xf0]  ;;  %v3270_v45 = vld [vmem:[#allocation6 + $0x270] sm:$0xf]  ;;  %v3083_v49 = vor.u32 %v3546_v36, %v3080_v37  ;;  %v3907_v54 = vor.u32 %v3472_v40, %v2774_v35 }
  0x28   :  { %1105 = vmatpush.bf16.msra.mxu3 %v3167_v10  ;;  %v3595_v46 = vld [vmem:[#allocation6 + $0x274] sm:$0xf0]  ;;  %v3334_v47 = vld [vmem:[#allocation6 + $0x2f0] sm:$0xf]  ;;  %v3528_v51 = vld [vmem:[#allocation6 + $0x64] sm:$0xf]  ;;  %v3909_v57 = vor.u32 %v3469_v41, %v2776_v42 }
  0x29   :  { %959 = vmatpush.bf16.msra.mxu0 %v2967_v17  ;;  %v3611_v50 = vld [vmem:[#allocation6 + $0x2f4] sm:$0xf0]  ;;  %v3008_v52 = vld [vmem:[#allocation6 + $0x68] sm:$0xf0]  ;;  %v3544_v55 = vld [vmem:[#allocation6 + $0xe4] sm:$0xf]  ;;  %v3271_v58 = vor.u32 %v3595_v46, %v3270_v45 }
  0x2a   :  { %1008 = vmatpush.bf16.msra.mxu1 %v3031_v21  ;;  %v3072_v56 = vld [vmem:[#allocation6 + $0xe8] sm:$0xf0]  ;;  %v3335_v59 = vor.u32 %v3611_v50, %v3334_v47  ;;  %v3011_v60 = vor.u32 %v3528_v51, %v3008_v52  ;;  %v3262_v61 = vld [vmem:[#allocation6 + $0x260] sm:$0xf]  ;;  %v3593_v62 = vld [vmem:[#allocation6 + $0x264] sm:$0xf0] }
  0x2b   :  { %1057 = vmatpush.bf16.msra.mxu2 %v3095_v22  ;;  %v3075_v63 = vor.u32 %v3544_v55, %v3072_v56  ;;  %v3326_v0 = vld [vmem:[#allocation6 + $0x2e0] sm:$0xf]  ;;  %v3609_v1 = vld [vmem:[#allocation6 + $0x2e4] sm:$0xf0]  ;;  %v3263_v2 = vor.u32 %v3593_v62, %v3262_v61  ;;  %v3526_v3 = vld [vmem:[#allocation6 + $0x54] sm:$0xf] }
  0x2c   :  { %1106 = vmatpush.bf16.msra.mxu3 %v3159_v26  ;;  %v3000_v4 = vld [vmem:[#allocation6 + $0x58] sm:$0xf0]  ;;  %v3254_v5 = vld [vmem:[#allocation6 + $0x250] sm:$0xf]  ;;  %v3327_v6 = vor.u32 %v3609_v1, %v3326_v0  ;;  %v3591_v8 = vld [vmem:[#allocation6 + $0x254] sm:$0xf0] }
  0x2d   :  { %960 = vmatpush.bf16.msra.mxu0 %v2959_v34  ;;  %v3003_v7 = vor.u32 %v3526_v3, %v3000_v4  ;;  %v3542_v9 = vld [vmem:[#allocation6 + $0xd4] sm:$0xf]  ;;  %v3064_v10 = vld [vmem:[#allocation6 + $0xd8] sm:$0xf0]  ;;  %v3318_v12 = vld [vmem:[#allocation6 + $0x2d0] sm:$0xf]  ;;  %v3255_v14 = vor.u32 %v3591_v8, %v3254_v5 }
  0x2e   :  { %1009 = vmatpush.bf16.msra.mxu1 %v3023_v38  ;;  %v3067_v11 = vor.u32 %v3542_v9, %v3064_v10  ;;  %v3607_v13 = vld [vmem:[#allocation6 + $0x2d4] sm:$0xf0]  ;;  %v2790_v16 = vld [vmem:[#allocation4 + $0x30] sm:$0xf]  ;;  %v3477_v17 = vld [vmem:[#allocation4 + $0x44] sm:$0xf0] }
  0x2f   :  { %1058 = vmatpush.bf16.msra.mxu2 %v3087_v39  ;;  %v3319_v15 = vor.u32 %v3607_v13, %v3318_v12  ;;  %v3474_v18 = vld [vmem:[#allocation4 + $0x34] sm:$0xf]  ;;  %v2792_v19 = vld [vmem:[#allocation4 + $0x48] sm:$0xf0]  ;;  %v2798_v20 = vld [vmem:[#allocation4 + $0x38] sm:$0xf]  ;;  %v3915_v24 = vor.u32 %v3477_v17, %v2790_v16 }
  0x30   :  { %1107 = vmatpush.bf16.msra.mxu3 %v3151_v43  ;;  %961 = vmatmul.bf16.vlgmr.msra.gmra.mxu0 %v3903_v48  ;;  %v3478_v21 = vld [vmem:[#allocation4 + $0x4c] sm:$0xf0]  ;;  %v3475_v22 = vld [vmem:[#allocation4 + $0x3c] sm:$0xf]  ;;  %v2800_v23 = vld [vmem:[#allocation4 + $0x50] sm:$0xf0]  ;;  %v3917_v25 = vor.u32 %v3474_v18, %v2792_v19 }
  0x31   :  { %1010 = vmatmul.bf16.vlgmr.msra.gmra.mxu1 %v3905_v53  ;;  %1149 = vmatpush.bf16.msrb.mxu0 %v3271_v58  ;;  %v3919_v26 = vor.u32 %v3478_v21, %v2798_v20  ;;  %v3921_v27 = vor.u32 %v3475_v22, %v2800_v23  ;;  %v3524_v28 = vld [vmem:[#allocation6 + $0x44] sm:$0xf]  ;;  %v2992_v29 = vld [vmem:[#allocation6 + $0x48] sm:$0xf0]  ;;  %v3246_v30 = vld [vmem:[#allocation6 + $0x240] sm:$0xf] }
  0x32   :  { %1059 = vmatmul.bf16.vlgmr.msra.gmra.mxu2 %v3907_v54  ;;  %1198 = vmatpush.bf16.msrb.mxu1 %v3335_v59  ;;  %v2995_v31 = vor.u32 %v3524_v28, %v2992_v29  ;;  %v3589_v32 = vld [vmem:[#allocation6 + $0x244] sm:$0xf0]  ;;  %v3540_v33 = vld [vmem:[#allocation6 + $0xc4] sm:$0xf]  ;;  %v3056_v34 = vld [vmem:[#allocation6 + $0xc8] sm:$0xf0] }
  0x33   :  { %1247 = vmatpush.bf16.msrb.mxu2 %v3019_v44  ;;  %1108 = vmatmul.bf16.vlgmr.msra.gmra.mxu3 %v3909_v57  ;;  %v3247_v35 = vor.u32 %v3589_v32, %v3246_v30  ;;  %v3059_v36 = vor.u32 %v3540_v33, %v3056_v34  ;;  %v3310_v37 = vld [vmem:[#allocation6 + $0x2c0] sm:$0xf]  ;;  %v3605_v38 = vld [vmem:[#allocation6 + $0x2c4] sm:$0xf0]  ;;  %v3483_v41 = vld [vmem:[#allocation4 + $0x74] sm:$0xf0] }
  0x34   :  { %1296 = vmatpush.bf16.msrb.mxu3 %v3083_v49  ;;  %v3311_v39 = vor.u32 %v3605_v38, %v3310_v37  ;;  %v2814_v40 = vld [vmem:[#allocation4 + $0x60] sm:$0xf]  ;;  %v3480_v42 = vld [vmem:[#allocation4 + $0x64] sm:$0xf]  ;;  %v2816_v43 = vld [vmem:[#allocation4 + $0x78] sm:$0xf0] }
  0x35   :  { %1150 = vmatpush.bf16.msrb.mxu0 %v3263_v2  ;;  %v2822_v44 = vld [vmem:[#allocation4 + $0x68] sm:$0xf]  ;;  %v3484_v45 = vld [vmem:[#allocation4 + $0x7c] sm:$0xf0]  ;;  %v3481_v46 = vld [vmem:[#allocation4 + $0x6c] sm:$0xf]  ;;  %v3927_v49 = vor.u32 %v3483_v41, %v2814_v40  ;;  %v3929_v50 = vor.u32 %v3480_v42, %v2816_v43 }
  0x36   :  { %1199 = vmatpush.bf16.msrb.mxu1 %v3327_v6  ;;  %v2824_v47 = vld [vmem:[#allocation4 + $0x80] sm:$0xf0]  ;;  %v3931_v51 = vor.u32 %v3484_v45, %v2822_v44  ;;  %v3522_v55 = vld [vmem:[#allocation6 + $0x34] sm:$0xf]  ;;  %v2984_v56 = vld [vmem:[#allocation6 + $0x38] sm:$0xf0] }
  0x37   :  { %1248 = vmatpush.bf16.msrb.mxu2 %v3011_v60  ;;  %v3933_v52 = vor.u32 %v3481_v46, %v2824_v47  ;;  %v3238_v58 = vld [vmem:[#allocation6 + $0x230] sm:$0xf]  ;;  %v2987_v59 = vor.u32 %v3522_v55, %v2984_v56  ;;  %v3587_v60 = vld [vmem:[#allocation6 + $0x234] sm:$0xf0]  ;;  %v3538_v61 = vld [vmem:[#allocation6 + $0xb4] sm:$0xf] }
  0x38   :  { %1297 = vmatpush.bf16.msrb.mxu3 %v3075_v63  ;;  %v3048_v62 = vld [vmem:[#allocation6 + $0xb8] sm:$0xf0]  ;;  %v3239_v63 = vor.u32 %v3587_v60, %v3238_v58  ;;  %v3302_v1 = vld [vmem:[#allocation6 + $0x2b0] sm:$0xf]  ;;  %v3603_v2 = vld [vmem:[#allocation6 + $0x2b4] sm:$0xf0] }
  0x39   :  { %1151 = vmatpush.bf16.msrb.mxu0 %v3255_v14  ;;  %v3051_v0 = vor.u32 %v3538_v61, %v3048_v62  ;;  %v3303_v3 = vor.u32 %v3603_v2, %v3302_v1  ;;  %v2838_v4 = vld [vmem:[#allocation4 + $0x90] sm:$0xf]  ;;  %v3489_v5 = vld [vmem:[#allocation4 + $0xa4] sm:$0xf0]  ;;  %v3486_v6 = vld [vmem:[#allocation4 + $0x94] sm:$0xf] }
  0x3a   :  { %1200 = vmatpush.bf16.msrb.mxu1 %v3319_v15  ;;  %v2846_v8 = vld [vmem:[#allocation4 + $0x98] sm:$0xf]  ;;  %v3490_v9 = vld [vmem:[#allocation4 + $0xac] sm:$0xf0]  ;;  %v3487_v10 = vld [vmem:[#allocation4 + $0x9c] sm:$0xf]  ;;  %v3939_v12 = vor.u32 %v3489_v5, %v2838_v4 }
  0x3b   :  { %1249 = vmatpush.bf16.msrb.mxu2 %v3003_v7  ;;  %v2840_v7 = vld [vmem:[#allocation4 + $0xa8] sm:$0xf0]  ;;  %v3943_v14 = vor.u32 %v3490_v9, %v2846_v8  ;;  %v3520_v16 = vld [vmem:[#allocation6 + $0x24] sm:$0xf]  ;;  %v3230_v18 = vld [vmem:[#allocation6 + $0x220] sm:$0xf] }
  0x3c   :  { %1298 = vmatpush.bf16.msrb.mxu3 %v3067_v11  ;;  %v2848_v11 = vld [vmem:[#allocation4 + $0xb0] sm:$0xf0]  ;;  %v3941_v13 = vor.u32 %v3486_v6, %v2840_v7  ;;  %v2976_v17 = vld [vmem:[#allocation6 + $0x28] sm:$0xf0]  ;;  %v3585_v20 = vld [vmem:[#allocation6 + $0x224] sm:$0xf0] }
  0x3d   :  { %1152 = vmatpush.bf16.msrb.mxu0 %v3247_v35  ;;  %v3945_v15 = vor.u32 %v3487_v10, %v2848_v11  ;;  %v2979_v19 = vor.u32 %v3520_v16, %v2976_v17  ;;  %v3536_v21 = vld [vmem:[#allocation6 + $0xa4] sm:$0xf]  ;;  %v3040_v22 = vld [vmem:[#allocation6 + $0xa8] sm:$0xf0]  ;;  %v3231_v23 = vor.u32 %v3585_v20, %v3230_v18  ;;  %v3294_v29 = vld [vmem:[#allocation6 + $0x2a0] sm:$0xf] }
  0x3e   :  { %1201 = vmatpush.bf16.msrb.mxu1 %v3311_v39  ;;  %v3043_v28 = vor.u32 %v3536_v21, %v3040_v22  ;;  %v3601_v30 = vld [vmem:[#allocation6 + $0x2a4] sm:$0xf0]  ;;  %v2862_v32 = vld [vmem:[#allocation4 + $0xc0] sm:$0xf]  ;;  %v3495_v33 = vld [vmem:[#allocation4 + $0xd4] sm:$0xf0] }
  0x3f   :  { %1250 = vmatpush.bf16.msrb.mxu2 %v2995_v31  ;;  %v3295_v31 = vor.u32 %v3601_v30, %v3294_v29  ;;  %v3492_v34 = vld [vmem:[#allocation4 + $0xc4] sm:$0xf]  ;;  %v2864_v35 = vld [vmem:[#allocation4 + $0xd8] sm:$0xf0]  ;;  %v3496_v37 = vld [vmem:[#allocation4 + $0xdc] sm:$0xf0]  ;;  %v3951_v40 = vor.u32 %v3495_v33, %v2862_v32 }
  0x40   :  { %966 = vmatmul.bf16.gmra.mxu0 %v3915_v24  ;;  %1299 = vmatpush.bf16.msrb.mxu3 %v3059_v36  ;;  %v2870_v36 = vld [vmem:[#allocation4 + $0xc8] sm:$0xf]  ;;  %v3493_v38 = vld [vmem:[#allocation4 + $0xcc] sm:$0xf]  ;;  %v2872_v39 = vld [vmem:[#allocation4 + $0xe0] sm:$0xf0]  ;;  %v3953_v41 = vor.u32 %v3492_v34, %v2864_v35 }
  0x41   :  { %1015 = vmatmul.bf16.gmra.mxu1 %v3917_v25  ;;  %1153 = vmatpush.bf16.msrb.mxu0 %v3239_v63  ;;  %v3955_v42 = vor.u32 %v3496_v37, %v2870_v36  ;;  %v3957_v43 = vor.u32 %v3493_v38, %v2872_v39  ;;  %v3518_v44 = vld [vmem:[#allocation6 + $0x14] sm:$0xf]  ;;  %v2968_v45 = vld [vmem:[#allocation6 + $0x18] sm:$0xf0]  ;;  %v3222_v46 = vld [vmem:[#allocation6 + $0x210] sm:$0xf] }
  0x42   :  { %1064 = vmatmul.bf16.gmra.mxu2 %v3919_v26  ;;  %1202 = vmatpush.bf16.msrb.mxu1 %v3303_v3  ;;  %v2971_v47 = vor.u32 %v3518_v44, %v2968_v45  ;;  %v3583_v55 = vld [vmem:[#allocation6 + $0x214] sm:$0xf0]  ;;  %v3534_v56 = vld [vmem:[#allocation6 + $0x94] sm:$0xf]  ;;  %v3032_v58 = vld [vmem:[#allocation6 + $0x98] sm:$0xf0] }
  0x43   :  { %1113 = vmatmul.bf16.gmra.mxu3 %v3921_v27  ;;  %1251 = vmatpush.bf16.msrb.mxu2 %v2987_v59  ;;  %v3223_v59 = vor.u32 %v3583_v55, %v3222_v46  ;;  %v3035_v60 = vor.u32 %v3534_v56, %v3032_v58  ;;  %v3286_v61 = vld [vmem:[#allocation6 + $0x290] sm:$0xf]  ;;  %v3599_v62 = vld [vmem:[#allocation6 + $0x294] sm:$0xf0]  ;;  %v3501_v1 = vld [vmem:[#allocation4 + $0x104] sm:$0xf0] }
  0x44   :  { %1300 = vmatpush.bf16.msrb.mxu3 %v3051_v0  ;;  %v3287_v63 = vor.u32 %v3599_v62, %v3286_v61  ;;  %v2886_v0 = vld [vmem:[#allocation4 + $0xf0] sm:$0xf]  ;;  %v3498_v2 = vld [vmem:[#allocation4 + $0xf4] sm:$0xf]  ;;  %v2888_v3 = vld [vmem:[#allocation4 + $0x108] sm:$0xf0] }
  0x45   :  { %1154 = vmatpush.bf16.msrb.mxu0 %v3231_v23  ;;  %v2894_v4 = vld [vmem:[#allocation4 + $0xf8] sm:$0xf]  ;;  %v3502_v5 = vld [vmem:[#allocation4 + $0x10c] sm:$0xf0]  ;;  %v3499_v6 = vld [vmem:[#allocation4 + $0xfc] sm:$0xf]  ;;  %v3963_v8 = vor.u32 %v3501_v1, %v2886_v0  ;;  %v3965_v9 = vor.u32 %v3498_v2, %v2888_v3 }
  0x46   :  { %1203 = vmatpush.bf16.msrb.mxu1 %v3295_v31  ;;  %v2896_v7 = vld [vmem:[#allocation4 + $0x110] sm:$0xf0]  ;;  %v3967_v10 = vor.u32 %v3502_v5, %v2894_v4  ;;  %v3516_v16 = vld [vmem:[#allocation6 + $0x4] sm:$0xf]  ;;  %v2960_v17 = vld [vmem:[#allocation6 + $0x8] sm:$0xf0] }
  0x47   :  { %1252 = vmatpush.bf16.msrb.mxu2 %v2979_v19  ;;  %v3969_v11 = vor.u32 %v3499_v6, %v2896_v7  ;;  %v3214_v18 = vld [vmem:[#allocation6 + $0x200] sm:$0xf]  ;;  %v2963_v19 = vor.u32 %v3516_v16, %v2960_v17  ;;  %v3581_v20 = vld [vmem:[#allocation6 + $0x204] sm:$0xf0]  ;;  %v3532_v21 = vld [vmem:[#allocation6 + $0x84] sm:$0xf] }
  0x48   :  { %1301 = vmatpush.bf16.msrb.mxu3 %v3043_v28  ;;  %v3024_v22 = vld [vmem:[#allocation6 + $0x88] sm:$0xf0]  ;;  %v3215_v23 = vor.u32 %v3581_v20, %v3214_v18  ;;  %v3278_v29 = vld [vmem:[#allocation6 + $0x280] sm:$0xf]  ;;  %v3597_v30 = vld [vmem:[#allocation6 + $0x284] sm:$0xf0] }
  0x49   :  { %1155 = vmatpush.bf16.msrb.mxu0 %v3223_v59  ;;  %v3027_v28 = vor.u32 %v3532_v21, %v3024_v22  ;;  %v3279_v31 = vor.u32 %v3597_v30, %v3278_v29  ;;  %v2910_v32 = vld [vmem:[#allocation4 + $0x120] sm:$0xf]  ;;  %v3507_v33 = vld [vmem:[#allocation4 + $0x134] sm:$0xf0]  ;;  %v3504_v34 = vld [vmem:[#allocation4 + $0x124] sm:$0xf] }
  0x4a   :  { %1204 = vmatpush.bf16.msrb.mxu1 %v3287_v63  ;;  %v2912_v35 = vld [vmem:[#allocation4 + $0x138] sm:$0xf0]  ;;  %v2918_v36 = vld [vmem:[#allocation4 + $0x128] sm:$0xf]  ;;  %v3508_v37 = vld [vmem:[#allocation4 + $0x13c] sm:$0xf0]  ;;  %v3975_v44 = vor.u32 %v3507_v33, %v2910_v32 }
  0x4b   :  { %1253 = vmatpush.bf16.msrb.mxu2 %v2971_v47  ;;  %v3505_v38 = vld [vmem:[#allocation4 + $0x12c] sm:$0xf]  ;;  %v2920_v39 = vld [vmem:[#allocation4 + $0x140] sm:$0xf0]  ;;  %v3977_v45 = vor.u32 %v3504_v34, %v2912_v35  ;;  %v3979_v46 = vor.u32 %v3508_v37, %v2918_v36  ;;  %v3594_v55 = vld [vmem:[#allocation6 + $0x274] sm:$0xf] }
  0x4c   :  { %1302 = vmatpush.bf16.msrb.mxu3 %v3035_v60  ;;  %v3981_v47 = vor.u32 %v3505_v38, %v2920_v39  ;;  %v3272_v56 = vld [vmem:[#allocation6 + $0x278] sm:$0xf0]  ;;  %v3562_v58 = vld [vmem:[#allocation6 + $0x174] sm:$0xf]  ;;  %v2934_v4 = vld [vmem:[#allocation4 + $0x150] sm:$0xf] }
  0x4d   :  { %1156 = vmatpush.bf16.msrb.mxu0 %v3215_v23  ;;  %v3275_v59 = vor.u32 %v3594_v55, %v3272_v56  ;;  %v3144_v60 = vld [vmem:[#allocation6 + $0x178] sm:$0xf0]  ;;  %v3610_v61 = vld [vmem:[#allocation6 + $0x2f4] sm:$0xf]  ;;  %v3513_v5 = vld [vmem:[#allocation4 + $0x164] sm:$0xf0] }
  0x4e   :  { %1205 = vmatpush.bf16.msrb.mxu1 %v3279_v31  ;;  %v3336_v62 = vld [vmem:[#allocation6 + $0x2f8] sm:$0xf0]  ;;  %v3147_v63 = vor.u32 %v3562_v58, %v3144_v60  ;;  %v3578_v1 = vld [vmem:[#allocation6 + $0x1f4] sm:$0xf]  ;;  %v2936_v7 = vld [vmem:[#allocation4 + $0x168] sm:$0xf0]  ;;  %v3987_v20 = vor.u32 %v3513_v5, %v2934_v4 }
  0x4f   :  { %1254 = vmatpush.bf16.msrb.mxu2 %v2963_v19  ;;  %v3339_v0 = vor.u32 %v3610_v61, %v3336_v62  ;;  %v3208_v2 = vld [vmem:[#allocation6 + $0x1f8] sm:$0xf0]  ;;  %v3510_v6 = vld [vmem:[#allocation4 + $0x154] sm:$0xf]  ;;  %v2942_v16 = vld [vmem:[#allocation4 + $0x158] sm:$0xf] }
  0x50   :  { %971 = vmatmul.bf16.gmra.mxu0 %v3927_v49  ;;  %1303 = vmatpush.bf16.msrb.mxu3 %v3027_v28  ;;  %v3211_v3 = vor.u32 %v3578_v1, %v3208_v2  ;;  %v3514_v17 = vld [vmem:[#allocation4 + $0x16c] sm:$0xf0]  ;;  %v3511_v18 = vld [vmem:[#allocation4 + $0x15c] sm:$0xf]  ;;  %v2944_v19 = vld [vmem:[#allocation4 + $0x170] sm:$0xf0]  ;;  %v3989_v21 = vor.u32 %v3510_v6, %v2936_v7 }
  0x51   :  { %1020 = vmatmul.bf16.gmra.mxu1 %v3929_v50  ;;  %1345 = vmatpush.bf16.msra.mxu0 %v3147_v63  ;;  %v3991_v22 = vor.u32 %v3514_v17, %v2942_v16  ;;  %v3993_v23 = vor.u32 %v3511_v18, %v2944_v19  ;;  %v3592_v28 = vld [vmem:[#allocation6 + $0x264] sm:$0xf]  ;;  %v3264_v29 = vld [vmem:[#allocation6 + $0x268] sm:$0xf0]  ;;  %v4002_v37 = vld [vmem:[%s4900_s2] sm:$0x3] }
  0x52   :  { %1069 = vmatmul.bf16.gmra.mxu2 %v3931_v51  ;;  %1394 = vmatpush.bf16.msra.mxu1 %v3211_v3  ;;  %v3560_v30 = vld [vmem:[#allocation6 + $0x164] sm:$0xf]  ;;  %v3267_v31 = vor.u32 %v3592_v28, %v3264_v29  ;;  %v3136_v32 = vld [vmem:[#allocation6 + $0x168] sm:$0xf0]  ;;  %v2782_v56 = vld [vmem:[#allocation4 + $0x10] sm:$0xf] }
  0x53   :  { %1118 = vmatmul.bf16.gmra.mxu3 %v3933_v52  ;;  %1443 = vmatpush.bf16.msra.mxu2 %v3275_v59  ;;  %4928 = vst [vmem:[#allocation11_spill] sm:$0xff] %v3991_v22  ;;  %v3608_v33 = vld [vmem:[#allocation6 + $0x2e4] sm:$0xf]  ;;  %v3328_v34 = vld [vmem:[#allocation6 + $0x2e8] sm:$0xf0]  ;;  %v3139_v35 = vor.u32 %v3560_v30, %v3136_v32  ;;  %v4005_v59 = vperm.slane %v4002_v37, 0 }
  0x54   :  { %1492 = vmatpush.bf16.msra.mxu3 %v3339_v0  ;;  %4929 = vst [vmem:[#allocation12_spill] sm:$0xff] %v3993_v23  ;;  %v3331_v36 = vor.u32 %v3608_v33, %v3328_v34  ;;  %v3576_v38 = vld [vmem:[#allocation6 + $0x1e4] sm:$0xf]  ;;  %v3200_v39 = vld [vmem:[#allocation6 + $0x1e8] sm:$0xf0]  ;;  %vm2239_vm0 = vcmask 1041409  }
  0x55   :  { %1346 = vmatpush.bf16.msra.mxu0 %v3139_v35  ;;  %v3203_v55 = vor.u32 %v3576_v38, %v3200_v39  ;;  %v3473_v58 = vld [vmem:[#allocation4 + $0x24] sm:$0xf0]  ;;  %v3470_v60 = vld [vmem:[#allocation4 + $0x14] sm:$0xf]  ;;  %v2784_v61 = vld [vmem:[#allocation4 + $0x28] sm:$0xf0] }
  0x56   :  { %v4007_v62 = vor.u32 %v3473_v58, %v2782_v56  ;;  %v4009_v0 = vor.u32 %v3470_v60, %v2784_v61  ;;  %v3590_v4 = vld [vmem:[#allocation6 + $0x254] sm:$0xf]  ;;  %v3256_v5 = vld [vmem:[#allocation6 + $0x258] sm:$0xf0]  ;;  %v2806_v39 = vld [vmem:[#allocation4 + $0x40] sm:$0xf] }
  0x57   :  { %1444 = vmatpush.bf16.msra.mxu2 %v3267_v31  ;;  %1395 = vmatpush.bf16.msra.mxu1 %v3203_v55  ;;  %v3558_v6 = vld [vmem:[#allocation6 + $0x154] sm:$0xf]  ;;  %v3259_v7 = vor.u32 %v3590_v4, %v3256_v5  ;;  %v3128_v16 = vld [vmem:[#allocation6 + $0x158] sm:$0xf0]  ;;  %v3479_v55 = vld [vmem:[#allocation4 + $0x54] sm:$0xf0] }
  0x58   :  { %1493 = vmatpush.bf16.msra.mxu3 %v3331_v36  ;;  %v3606_v17 = vld [vmem:[#allocation6 + $0x2d4] sm:$0xf]  ;;  %v3320_v18 = vld [vmem:[#allocation6 + $0x2d8] sm:$0xf0]  ;;  %v3131_v28 = vor.u32 %v3558_v6, %v3128_v16  ;;  %v3476_v56 = vld [vmem:[#allocation4 + $0x44] sm:$0xf]  ;;  %v4019_v61 = vor.u32 %v3479_v55, %v2806_v39 }
  0x59   :  { %v3323_v29 = vor.u32 %v3606_v17, %v3320_v18  ;;  %v3192_v35 = vld [vmem:[#allocation6 + $0x1d8] sm:$0xf0]  ;;  %v3588_v16 = vld [vmem:[#allocation6 + $0x244] sm:$0xf]  ;;  %v3248_v17 = vld [vmem:[#allocation6 + $0x248] sm:$0xf0] }
  0x5a   :  { %1347 = vmatpush.bf16.msra.mxu0 %v3131_v28  ;;  %v2808_v58 = vld [vmem:[#allocation4 + $0x58] sm:$0xf0]  ;;  %v3556_v18 = vld [vmem:[#allocation6 + $0x144] sm:$0xf]  ;;  %v3120_v28 = vld [vmem:[#allocation6 + $0x148] sm:$0xf0] }
  0x5b   :  { %1445 = vmatpush.bf16.msra.mxu2 %v3259_v7  ;;  %v3184_v39 = vld [vmem:[#allocation6 + $0x1c8] sm:$0xf0]  ;;  %vm2241_vm1 = vcmask 1042434   ;;  %vm2243_vm2 = vcmask 1043459   ;;  %vm2245_vm3 = vcmask 1044484   ;;  %vm2247_vm4 = vcmask 1045509  }
  0x5c   :  { %1494 = vmatpush.bf16.msra.mxu3 %v3323_v29  ;;  %v3604_v29 = vld [vmem:[#allocation6 + $0x2c4] sm:$0xf]  ;;  %vm2249_vm5 = vcmask 1046534   ;;  %vm2251_vm6 = vcmask 1047559   ;;  %vm2262_vm7 = vcmask 64512  }
  0x60   :  { %976 = vmatmul.bf16.gmra.mxu0 %v3939_v12 }
  0x61   :  { %1025 = vmatmul.bf16.gmra.mxu1 %v3941_v13 }
  0x62   :  { %1074 = vmatmul.bf16.gmra.mxu2 %v3943_v14 }
  0x63   :  { %1123 = vmatmul.bf16.gmra.mxu3 %v3945_v15 }
  0x70   :  { %981 = vmatmul.bf16.gmra.mxu0 %v3951_v40 }
  0x71   :  { %1030 = vmatmul.bf16.gmra.mxu1 %v3953_v41 }
  0x72   :  { %1079 = vmatmul.bf16.gmra.mxu2 %v3955_v42 }
  0x73   :  { %1128 = vmatmul.bf16.gmra.mxu3 %v3957_v43 }
  0x80   :  { %986 = vmatmul.bf16.gmra.mxu0 %v3963_v8 }
  0x81   :  { %1035 = vmatmul.bf16.gmra.mxu1 %v3965_v9 }
  0x82   :  { %1084 = vmatmul.bf16.gmra.mxu2 %v3967_v10 }
  0x83   :  { %1133 = vmatmul.bf16.gmra.mxu3 %v3969_v11 }
  0x90   :  { %991 = vmatmul.bf16.gmra.mxu0 %v3975_v44 }
  0x91   :  { %1040 = vmatmul.bf16.gmra.mxu1 %v3977_v45 }
  0x92   :  { %1089 = vmatmul.bf16.gmra.mxu2 %v3979_v46 }
  0x93   :  { %1138 = vmatmul.bf16.gmra.mxu3 %v3981_v47 }
  0xa0   :  { %996 = vmatmul.bf16.gmra.mxu0 %v3987_v20 }
  0xa1   :  { %1045 = vmatmul.bf16.gmra.mxu1 %v3989_v21 }
  0xa2   :  { %1094 = vmatmul.bf16.gmra.mxu2 %v3991_v22  ;;  %v3506_v22 = vld [vmem:[#allocation4 + $0x134] sm:$0xf] }
  0xa3   :  { %1143 = vmatmul.bf16.gmra.mxu3 %v3993_v23  ;;  %v3509_v23 = vld [vmem:[#allocation4 + $0x144] sm:$0xf0] }
  0xad   :  { %v962_v63 = vpop.f32.mrf.mxu0 }
  0xae   :  { %v963_v1 = vadd.f32 %v962_v63, %v4005_v59  ;;  %v1011_v2 = vpop.f32.mrf.mxu1 }
  0xb0   :  { %v1012_v3 = vadd.f32 %v1011_v2, %v963_v1  ;;  %1157 = vmatmul.bf16.vlgmr.msrb.gmra.mxu0 %v4007_v62 }
  0xb1   :  { %1206 = vmatmul.bf16.vlgmr.msrb.gmra.mxu1 %v4009_v0 }
  0xb2   :  { %1255 = vmatmul.bf16.vlgmr.msrb.gmra.mxu2 %v3903_v48 }
  0xb3   :  { %1304 = vmatmul.bf16.vlgmr.msrb.gmra.mxu3 %v3905_v53  ;;  %v3574_v53 = vld [vmem:[#allocation6 + $0x1d4] sm:$0xf] }
  0xb4   :  { %v3195_v38 = vor.u32 %v3574_v53, %v3192_v35 }
  0xb5   :  { %v1060_v19 = vpop.f32.mrf.mxu2  ;;  %v964_v32 = vpop.f32.mrf.mxu0 }
  0xb6   :  { %v1061_v30 = vadd.f32 %v1060_v19, %v1012_v3  ;;  %v1109_v31 = vpop.f32.mrf.mxu3  ;;  %v965_v33 = vadd.f32 %v964_v32, %v4005_v59  ;;  %v1013_v34 = vpop.f32.mrf.mxu1  ;;  %1396 = vmatpush.bf16.msra.mxu1 %v3195_v38  ;;  %v4021_v3 = vor.u32 %v3476_v56, %v2808_v58  ;;  %v3251_v19 = vor.u32 %v3588_v16, %v3248_v17  ;;  %v2830_v58 = vld [vmem:[#allocation4 + $0x70] sm:$0xf] }
  0xb7   :  { %v3123_v32 = vor.u32 %v3556_v18, %v3120_v28 }
  0xb8   :  { %v4017_v48 = vadd.f32 %v1109_v31, %v1061_v30  ;;  %v1014_v36 = vadd.f32 %v1013_v34, %v965_v33  ;;  %v3312_v30 = vld [vmem:[#allocation6 + $0x2c8] sm:$0xf0]  ;;  %1446 = vmatpush.bf16.msra.mxu2 %v3251_v19 }
  0xb9   :  { %v3315_v33 = vor.u32 %v3604_v29, %v3312_v30  ;;  %1348 = vmatpush.bf16.msra.mxu0 %v3123_v32  ;;  %v3586_v30 = vld [vmem:[#allocation6 + $0x234] sm:$0xf] }
  0xba   :  { %v3554_v32 = vld [vmem:[#allocation6 + $0x134] sm:$0xf] }
  0xbb   :  { %1495 = vmatpush.bf16.msra.mxu3 %v3315_v33 }
  0xbd   :  { %v1062_v60 = vpop.f32.mrf.mxu2  ;;  %v967_v2 = vpop.f32.mrf.mxu0 }
  0xbe   :  { %v1063_v63 = vadd.f32 %v1062_v60, %v1014_v36  ;;  %v1111_v1 = vpop.f32.mrf.mxu3  ;;  %v968_v4 = vadd.f32 %v967_v2, %v4005_v59  ;;  %v1016_v5 = vpop.f32.mrf.mxu1  ;;  %v3485_v60 = vld [vmem:[#allocation4 + $0x84] sm:$0xf0] }
  0xc0   :  { %v4024_v6 = vadd.f32 %v1111_v1, %v1063_v63  ;;  %v1017_v7 = vadd.f32 %v1016_v5, %v968_v4  ;;  %1162 = vmatmul.bf16.gmra.mxu0 %v4019_v61  ;;  %v3482_v63 = vld [vmem:[#allocation4 + $0x74] sm:$0xf]  ;;  %v2832_v1 = vld [vmem:[#allocation4 + $0x88] sm:$0xf0]  ;;  %v4033_v4 = vor.u32 %v3485_v60, %v2830_v58 }
  0xc1   :  { %1211 = vmatmul.bf16.gmra.mxu1 %v4021_v3  ;;  %v4035_v17 = vor.u32 %v3482_v63, %v2832_v1  ;;  %v3176_v63 = vld [vmem:[#allocation6 + $0x1b8] sm:$0xf0] }
  0xc2   :  { %1260 = vmatmul.bf16.gmra.mxu2 %v3915_v24 }
  0xc3   :  { %1309 = vmatmul.bf16.gmra.mxu3 %v3917_v25  ;;  %v3572_v25 = vld [vmem:[#allocation6 + $0x1c4] sm:$0xf] }
  0xc4   :  { %v3187_v56 = vor.u32 %v3572_v25, %v3184_v39 }
  0xc5   :  { %v1065_v31 = vpop.f32.mrf.mxu2  ;;  %v969_v35 = vpop.f32.mrf.mxu0 }
  0xc6   :  { %v1066_v34 = vadd.f32 %v1065_v31, %v1017_v7  ;;  %v1114_v53 = vpop.f32.mrf.mxu3  ;;  %v970_v36 = vadd.f32 %v969_v35, %v4005_v59  ;;  %v1018_v38 = vpop.f32.mrf.mxu1  ;;  %1397 = vmatpush.bf16.msra.mxu1 %v3187_v56  ;;  %v3240_v31 = vld [vmem:[#allocation6 + $0x238] sm:$0xf0] }
  0xc7   :  { %v3243_v33 = vor.u32 %v3586_v30, %v3240_v31  ;;  %v3304_v35 = vld [vmem:[#allocation6 + $0x2b8] sm:$0xf0] }
  0xc8   :  { %v4031_v24 = vadd.f32 %v1114_v53, %v1066_v34  ;;  %v1019_v55 = vadd.f32 %v1018_v38, %v970_v36  ;;  %v3112_v34 = vld [vmem:[#allocation6 + $0x138] sm:$0xf0]  ;;  %v3602_v53 = vld [vmem:[#allocation6 + $0x2b4] sm:$0xf] }
  0xc9   :  { %v3115_v38 = vor.u32 %v3554_v32, %v3112_v34  ;;  %v3307_v25 = vor.u32 %v3602_v53, %v3304_v35  ;;  %1447 = vmatpush.bf16.msra.mxu2 %v3243_v33 }
  0xcb   :  { %1349 = vmatpush.bf16.msra.mxu0 %v3115_v38  ;;  %1496 = vmatpush.bf16.msra.mxu3 %v3307_v25  ;;  %v3584_v38 = vld [vmem:[#allocation6 + $0x224] sm:$0xf]  ;;  %v3232_v25 = vld [vmem:[#allocation6 + $0x228] sm:$0xf0] }
  0xcd   :  { %v1067_v2 = vpop.f32.mrf.mxu2  ;;  %v972_v16 = vpop.f32.mrf.mxu0 }
  0xce   :  { %v1068_v5 = vadd.f32 %v1067_v2, %v1019_v55  ;;  %v1116_v7 = vpop.f32.mrf.mxu3  ;;  %v973_v18 = vadd.f32 %v972_v16, %v4005_v59  ;;  %v1021_v19 = vpop.f32.mrf.mxu1  ;;  %v3488_v16 = vld [vmem:[#allocation4 + $0xa4] sm:$0xf] }
  0xd0   :  { %v4038_v28 = vadd.f32 %v1116_v7, %v1068_v5  ;;  %v1022_v29 = vadd.f32 %v1021_v19, %v973_v18  ;;  %1167 = vmatmul.bf16.gmra.mxu0 %v4033_v4  ;;  %v2854_v5 = vld [vmem:[#allocation4 + $0xa0] sm:$0xf]  ;;  %v3491_v7 = vld [vmem:[#allocation4 + $0xb4] sm:$0xf0]  ;;  %v2856_v18 = vld [vmem:[#allocation4 + $0xb8] sm:$0xf0] }
  0xd1   :  { %1216 = vmatmul.bf16.gmra.mxu1 %v4035_v17  ;;  %v4049_v33 = vor.u32 %v3488_v16, %v2856_v18 }
  0xd2   :  { %1265 = vmatmul.bf16.gmra.mxu2 %v3927_v49 }
  0xd3   :  { %1314 = vmatmul.bf16.gmra.mxu3 %v3929_v50  ;;  %v3570_v50 = vld [vmem:[#allocation6 + $0x1b4] sm:$0xf] }
  0xd4   :  { %v3179_v2 = vor.u32 %v3570_v50, %v3176_v63 }
  0xd5   :  { %v1070_v36 = vpop.f32.mrf.mxu2  ;;  %v974_v56 = vpop.f32.mrf.mxu0 }
  0xd6   :  { %v1071_v39 = vadd.f32 %v1070_v36, %v1022_v29  ;;  %v1119_v55 = vpop.f32.mrf.mxu3  ;;  %v975_v58 = vadd.f32 %v974_v56, %v4005_v59  ;;  %v1023_v60 = vpop.f32.mrf.mxu1  ;;  %1398 = vmatpush.bf16.msra.mxu1 %v3179_v2  ;;  %v4047_v29 = vor.u32 %v3491_v7, %v2854_v5  ;;  %v3104_v56 = vld [vmem:[#allocation6 + $0x128] sm:$0xf0] }
  0xd8   :  { %v4045_v49 = vadd.f32 %v1119_v55, %v1071_v39  ;;  %v1024_v1 = vadd.f32 %v1023_v60, %v975_v58  ;;  %v3552_v39 = vld [vmem:[#allocation6 + $0x124] sm:$0xf]  ;;  %v3235_v55 = vor.u32 %v3584_v38, %v3232_v25  ;;  %v3296_v60 = vld [vmem:[#allocation6 + $0x2a8] sm:$0xf0] }
  0xd9   :  { %v3600_v58 = vld [vmem:[#allocation6 + $0x2a4] sm:$0xf]  ;;  %v3107_v63 = vor.u32 %v3552_v39, %v3104_v56  ;;  %v2880_v38 = vld [vmem:[#allocation4 + $0xe8] sm:$0xf0] }
  0xda   :  { %1448 = vmatpush.bf16.msra.mxu2 %v3235_v55 }
  0xdb   :  { %1350 = vmatpush.bf16.msra.mxu0 %v3107_v63 }
  0xdd   :  { %v1072_v19 = vpop.f32.mrf.mxu2  ;;  %v977_v32 = vpop.f32.mrf.mxu0 }
  0xde   :  { %v1073_v30 = vadd.f32 %v1072_v19, %v1024_v1  ;;  %v1121_v31 = vpop.f32.mrf.mxu3  ;;  %v978_v34 = vadd.f32 %v977_v32, %v4005_v59  ;;  %v1026_v53 = vpop.f32.mrf.mxu1  ;;  %v3299_v1 = vor.u32 %v3600_v58, %v3296_v60  ;;  %v3168_v19 = vld [vmem:[#allocation6 + $0x1a8] sm:$0xf0]  ;;  %v2878_v32 = vld [vmem:[#allocation4 + $0xd0] sm:$0xf] }
  0xe0   :  { %v4052_v35 = vadd.f32 %v1121_v31, %v1073_v30  ;;  %v1027_v36 = vadd.f32 %v1026_v53, %v978_v34  ;;  %1172 = vmatmul.bf16.gmra.mxu0 %v4047_v29  ;;  %1497 = vmatpush.bf16.msra.mxu3 %v3299_v1  ;;  %v3497_v34 = vld [vmem:[#allocation4 + $0xe4] sm:$0xf0]  ;;  %v3494_v53 = vld [vmem:[#allocation4 + $0xd4] sm:$0xf] }
  0xe1   :  { %1221 = vmatmul.bf16.gmra.mxu1 %v4049_v33  ;;  %v4061_v25 = vor.u32 %v3497_v34, %v2878_v32  ;;  %v4063_v58 = vor.u32 %v3494_v53, %v2880_v38 }
  0xe2   :  { %1270 = vmatmul.bf16.gmra.mxu2 %v3939_v12 }
  0xe3   :  { %1319 = vmatmul.bf16.gmra.mxu3 %v3941_v13  ;;  %v3568_v13 = vld [vmem:[#allocation6 + $0x1a4] sm:$0xf] }
  0xe4   :  { %v3171_v31 = vor.u32 %v3568_v13, %v3168_v19  ;;  %v3598_v13 = vld [vmem:[#allocation6 + $0x294] sm:$0xf]  ;;  %v3288_v19 = vld [vmem:[#allocation6 + $0x298] sm:$0xf0] }
  0xe5   :  { %v1075_v50 = vpop.f32.mrf.mxu2  ;;  %v979_v7 = vpop.f32.mrf.mxu0  ;;  %v3291_v32 = vor.u32 %v3598_v13, %v3288_v19 }
  0xe6   :  { %v1076_v2 = vadd.f32 %v1075_v50, %v1027_v36  ;;  %v1124_v5 = vpop.f32.mrf.mxu3  ;;  %v980_v16 = vadd.f32 %v979_v7, %v4005_v59  ;;  %v1028_v18 = vpop.f32.mrf.mxu1  ;;  %1399 = vmatpush.bf16.msra.mxu1 %v3171_v31  ;;  %v3550_v7 = vld [vmem:[#allocation6 + $0x114] sm:$0xf] }
  0xe7   :  { %1498 = vmatpush.bf16.msra.mxu3 %v3291_v32 }
  0xe8   :  { %v4059_v12 = vadd.f32 %v1124_v5, %v1076_v2  ;;  %v1029_v30 = vadd.f32 %v1028_v18, %v980_v16  ;;  %v3582_v2 = vld [vmem:[#allocation6 + $0x214] sm:$0xf]  ;;  %v3224_v5 = vld [vmem:[#allocation6 + $0x218] sm:$0xf0] }
  0xe9   :  { %v3227_v16 = vor.u32 %v3582_v2, %v3224_v5  ;;  %v3096_v18 = vld [vmem:[#allocation6 + $0x118] sm:$0xf0]  ;;  %v3503_v2 = vld [vmem:[#allocation4 + $0x114] sm:$0xf0]  ;;  %v3500_v5 = vld [vmem:[#allocation4 + $0x104] sm:$0xf] }
  0xea   :  { %v3099_v31 = vor.u32 %v3550_v7, %v3096_v18  ;;  %v2904_v7 = vld [vmem:[#allocation4 + $0x118] sm:$0xf0] }
  0xeb   :  { %1449 = vmatpush.bf16.msra.mxu2 %v3227_v16 }
  0xec   :  { %1351 = vmatpush.bf16.msra.mxu0 %v3099_v31 }
  0xed   :  { %v1077_v36 = vpop.f32.mrf.mxu2  ;;  %v982_v56 = vpop.f32.mrf.mxu0 }
  0xee   :  { %v1078_v39 = vadd.f32 %v1077_v36, %v1029_v30  ;;  %v1126_v55 = vpop.f32.mrf.mxu3  ;;  %v983_v60 = vadd.f32 %v982_v56, %v4005_v59  ;;  %v1031_v50 = vpop.f32.mrf.mxu1 }
  0xf0   :  { %v4066_v63 = vadd.f32 %v1126_v55, %v1078_v39  ;;  %v1032_v1 = vadd.f32 %v1031_v50, %v983_v60  ;;  %1177 = vmatmul.bf16.gmra.mxu0 %v4061_v25  ;;  %v3160_v55 = vld [vmem:[#allocation6 + $0x198] sm:$0xf0]  ;;  %v2902_v50 = vld [vmem:[#allocation4 + $0x100] sm:$0xf] }
  0xf1   :  { %1226 = vmatmul.bf16.gmra.mxu1 %v4063_v58  ;;  %v4075_v18 = vor.u32 %v3503_v2, %v2902_v50 }
  0xf2   :  { %1275 = vmatmul.bf16.gmra.mxu2 %v3951_v40 }
  0xf3   :  { %1324 = vmatmul.bf16.gmra.mxu3 %v3953_v41  ;;  %v3566_v41 = vld [vmem:[#allocation6 + $0x194] sm:$0xf] }
  0xf4   :  { %v3163_v60 = vor.u32 %v3566_v41, %v3160_v55  ;;  %v3088_v55 = vld [vmem:[#allocation6 + $0x108] sm:$0xf0] }
  0xf5   :  { %v1080_v30 = vpop.f32.mrf.mxu2  ;;  %v984_v38 = vpop.f32.mrf.mxu0 }
  0xf6   :  { %v1081_v34 = vadd.f32 %v1080_v30, %v1032_v1  ;;  %v1129_v53 = vpop.f32.mrf.mxu3  ;;  %v985_v36 = vadd.f32 %v984_v38, %v4005_v59  ;;  %v1033_v39 = vpop.f32.mrf.mxu1  ;;  %1400 = vmatpush.bf16.msra.mxu1 %v3163_v60  ;;  %v4077_v30 = vor.u32 %v3500_v5, %v2904_v7  ;;  %v3580_v38 = vld [vmem:[#allocation6 + $0x204] sm:$0xf]  ;;  %v3280_v60 = vld [vmem:[#allocation6 + $0x288] sm:$0xf0] }
  0xf8   :  { %v4073_v40 = vadd.f32 %v1129_v53, %v1081_v34  ;;  %v1034_v56 = vadd.f32 %v1033_v39, %v985_v36  ;;  %v3216_v36 = vld [vmem:[#allocation6 + $0x208] sm:$0xf0]  ;;  %v3548_v39 = vld [vmem:[#allocation6 + $0x104] sm:$0xf] }
  0xf9   :  { %v3219_v41 = vor.u32 %v3580_v38, %v3216_v36  ;;  %v3091_v2 = vor.u32 %v3548_v39, %v3088_v55  ;;  %v2926_v36 = vld [vmem:[#allocation4 + $0x130] sm:$0xf]  ;;  %v2928_v39 = vld [vmem:[#allocation4 + $0x148] sm:$0xf0] }
  0xfa   :  { %v4089_v55 = vor.u32 %v3509_v23, %v2926_v36  ;;  %v3515_v36 = vld [vmem:[#allocation4 + $0x174] sm:$0xf0] }
  0xfb   :  { %1450 = vmatpush.bf16.msra.mxu2 %v3219_v41  ;;  %1352 = vmatpush.bf16.msra.mxu0 %v3091_v2 }
  0xfd   :  { %v1082_v1 = vpop.f32.mrf.mxu2  ;;  %v987_v19 = vpop.f32.mrf.mxu0 }
  0xfe   :  { %v1083_v16 = vadd.f32 %v1082_v1, %v1034_v56  ;;  %v1131_v13 = vpop.f32.mrf.mxu3  ;;  %v988_v31 = vadd.f32 %v987_v19, %v4005_v59  ;;  %v1036_v32 = vpop.f32.mrf.mxu1  ;;  %v3596_v56 = vld [vmem:[#allocation6 + $0x284] sm:$0xf] }
  0xff   :  { %v3283_v5 = vor.u32 %v3596_v56, %v3280_v60 }
 0x100   :  { %v4080_v34 = vadd.f32 %v1131_v13, %v1083_v16  ;;  %v1037_v53 = vadd.f32 %v1036_v32, %v988_v31  ;;  %1182 = vmatmul.bf16.gmra.mxu0 %v4075_v18  ;;  %v3152_v31 = vld [vmem:[#allocation6 + $0x188] sm:$0xf0] }
 0x101   :  { %1231 = vmatmul.bf16.gmra.mxu1 %v4077_v30  ;;  %1499 = vmatpush.bf16.msra.mxu3 %v3283_v5 }
 0x102   :  { %1280 = vmatmul.bf16.gmra.mxu2 %v3963_v8 }
 0x103   :  { %1329 = vmatmul.bf16.gmra.mxu3 %v3965_v9  ;;  %v3564_v9 = vld [vmem:[#allocation6 + $0x184] sm:$0xf] }
 0x104   :  { %v3155_v38 = vor.u32 %v3564_v9, %v3152_v31 }
 0x105   :  { %v1085_v50 = vpop.f32.mrf.mxu2  ;;  %v989_v16 = vpop.f32.mrf.mxu0 }
 0x106   :  { %v1086_v7 = vadd.f32 %v1085_v50, %v1037_v53  ;;  %v1134_v1 = vpop.f32.mrf.mxu3  ;;  %v990_v13 = vadd.f32 %v989_v16, %v4005_v59  ;;  %v1038_v19 = vpop.f32.mrf.mxu1  ;;  %1401 = vmatpush.bf16.msra.mxu1 %v3155_v38  ;;  %v4091_v50 = vor.u32 %v3506_v22, %v2928_v39  ;;  %v2950_v38 = vld [vmem:[#allocation4 + $0x160] sm:$0xf]  ;;  %v3512_v39 = vld [vmem:[#allocation4 + $0x164] sm:$0xf] }
 0x108   :  { %v4087_v8 = vadd.f32 %v1134_v1, %v1086_v7  ;;  %v1039_v32 = vadd.f32 %v1038_v19, %v990_v13 }
 0x10d   :  { %v1087_v53 = vpop.f32.mrf.mxu2  ;;  %v992_v60 = vpop.f32.mrf.mxu0 }
 0x10e   :  { %v1088_v41 = vadd.f32 %v1087_v53, %v1039_v32  ;;  %v1136_v56 = vpop.f32.mrf.mxu3  ;;  %v993_v2 = vadd.f32 %v992_v60, %v4005_v59  ;;  %v1041_v5 = vpop.f32.mrf.mxu1  ;;  %v2952_v53 = vld [vmem:[#allocation4 + $0x178] sm:$0xf0] }
 0x110   :  { %v4094_v7 = vadd.f32 %v1136_v56, %v1088_v41  ;;  %v1042_v1 = vadd.f32 %v1041_v5, %v993_v2  ;;  %1187 = vmatmul.bf16.gmra.mxu0 %v4089_v55  ;;  %v4103_v56 = vor.u32 %v3515_v36, %v2950_v38  ;;  %v4105_v2 = vor.u32 %v3512_v39, %v2952_v53 }
 0x111   :  { %1236 = vmatmul.bf16.gmra.mxu1 %v4091_v50 }
 0x112   :  { %1285 = vmatmul.bf16.gmra.mxu2 %v3975_v44  ;;  %4930 = vst [vmem:[#allocation13_spill] sm:$0xff] %v4103_v56 }
 0x113   :  { %1334 = vmatmul.bf16.gmra.mxu3 %v3977_v45  ;;  %4931 = vst [vmem:[#allocation14_spill] sm:$0xff] %v4105_v2 }
 0x115   :  { %v1090_v23 = vpop.f32.mrf.mxu2  ;;  %v994_v19 = vpop.f32.mrf.mxu0 }
 0x116   :  { %v1091_v16 = vadd.f32 %v1090_v23, %v1042_v1  ;;  %v1139_v13 = vpop.f32.mrf.mxu3  ;;  %v995_v22 = vadd.f32 %v994_v19, %v4005_v59  ;;  %v1043_v9 = vpop.f32.mrf.mxu1  ;;  %v3400_v19 = vld [vmem:[#allocation8 + $0x78] sm:$0xf0] }
 0x118   :  { %v4101_v31 = vadd.f32 %v1139_v13, %v1091_v16  ;;  %v1044_v32 = vadd.f32 %v1043_v9, %v995_v22  ;;  %v3626_v13 = vld [vmem:[#allocation8 + $0x74] sm:$0xf] }
 0x119   :  { %v3403_v22 = vor.u32 %v3626_v13, %v3400_v19  ;;  %v3643_v13 = vld [vmem:[#allocation8 + $0xf4] sm:$0xf0] }
 0x11b   :  { %1885 = vmatpush.bf16.msrb.mxu2 %v3403_v22 }
 0x11d   :  { %v1092_v41 = vpop.f32.mrf.mxu2  ;;  %v997_v45 = vpop.f32.mrf.mxu0 }
 0x11e   :  { %v1093_v44 = vadd.f32 %v1092_v41, %v1044_v32  ;;  %v1141_v60 = vpop.f32.mrf.mxu3  ;;  %v998_v5 = vadd.f32 %v997_v45, %v4005_v59  ;;  %v1046_v1 = vpop.f32.mrf.mxu1 }
 0x120   :  { %v4108_v23 = vadd.f32 %v1141_v60, %v1093_v44  ;;  %v1047_v16 = vadd.f32 %v1046_v1, %v998_v5  ;;  %1192 = vmatmul.bf16.gmra.mxu0 %v4103_v56  ;;  %v3642_v44 = vld [vmem:[#allocation8 + $0xf4] sm:$0xf]  ;;  %v3464_v60 = vld [vmem:[#allocation8 + $0xf8] sm:$0xf0]  ;;  %v3462_v1 = vld [vmem:[#allocation8 + $0xf0] sm:$0xf] }
 0x121   :  { %1241 = vmatmul.bf16.gmra.mxu1 %v4105_v2  ;;  %v3467_v5 = vor.u32 %v3642_v44, %v3464_v60 }
 0x122   :  { %1290 = vmatmul.bf16.gmra.mxu2 %v3987_v20  ;;  %v3398_v20 = vld [vmem:[#allocation8 + $0x70] sm:$0xf] }
 0x123   :  { %1339 = vmatmul.bf16.gmra.mxu3 %v3989_v21  ;;  %v3627_v21 = vld [vmem:[#allocation8 + $0x74] sm:$0xf0] }
 0x124   :  { %1934 = vmatpush.bf16.msrb.mxu3 %v3467_v5  ;;  %v3399_v2 = vor.u32 %v3627_v21, %v3398_v20 }
 0x125   :  { %v1095_v9 = vpop.f32.mrf.mxu2  ;;  %v999_v36 = vpop.f32.mrf.mxu0 }
 0x126   :  { %v1096_v32 = vadd.f32 %v1095_v9, %v1047_v16  ;;  %v1144_v38 = vpop.f32.mrf.mxu3  ;;  %v1000_v39 = vadd.f32 %v999_v36, %v4005_v59  ;;  %v1048_v53 = vpop.f32.mrf.mxu1  ;;  %v3463_v16 = vor.u32 %v3643_v13, %v3462_v1  ;;  %1787 = vmatpush.bf16.msrb.mxu0 %v3399_v2  ;;  %v3390_v13 = vld [vmem:[#allocation8 + $0x60] sm:$0xf] }
 0x128   :  { %v4115_v41 = vadd.f32 %v1144_v38, %v1096_v32  ;;  %v1049_v45 = vadd.f32 %v1048_v53, %v1000_v39  ;;  %1836 = vmatpush.bf16.msrb.mxu1 %v3463_v16  ;;  %v4126_v39 = vperm.slane %v4002_v37, 1  ;;  %v3624_v53 = vld [vmem:[#allocation8 + $0x64] sm:$0xf] }
 0x12d   :  { %v1097_v19 = vpop.f32.mrf.mxu2  ;;  %v1158_v22 = vpop.f32.mrf.mxu0 }
 0x12e   :  { %v1098_v9 = vadd.f32 %v1097_v19, %v1049_v45  ;;  %v1146_v56 = vpop.f32.mrf.mxu3  ;;  %v1159_v59 = vadd.f32 %v1158_v22, %v4017_v48  ;;  %v1207_v32 = vpop.f32.mrf.mxu1  ;;  %v3392_v48 = vld [vmem:[#allocation8 + $0x68] sm:$0xf0]  ;;  %v3625_v19 = vld [vmem:[#allocation8 + $0x64] sm:$0xf0] }
 0x12f   :  { %v3395_v45 = vor.u32 %v3624_v53, %v3392_v48  ;;  %v3391_v16 = vor.u32 %v3625_v19, %v3390_v13  ;;  %v3641_v22 = vld [vmem:[#allocation8 + $0xe4] sm:$0xf0] }
 0x130   :  { %v4118_v38 = vadd.f32 %v1146_v56, %v1098_v9  ;;  %v4120_v36 = vadd.f32 %v1207_v32, %v1159_v59  ;;  %1353 = vmatmul.bf16.vlgmr.msra.gmra.mxu0 %v3907_v54  ;;  %v3454_v9 = vld [vmem:[#allocation8 + $0xe0] sm:$0xf] }
 0x131   :  { %1402 = vmatmul.bf16.vlgmr.msra.gmra.mxu1 %v3909_v57  ;;  %1886 = vmatpush.bf16.msrb.mxu2 %v3395_v45  ;;  %v3640_v57 = vld [vmem:[#allocation8 + $0xe4] sm:$0xf]  ;;  %v3455_v32 = vor.u32 %v3641_v22, %v3454_v9 }
 0x132   :  { %1451 = vmatmul.bf16.vlgmr.msra.gmra.mxu2 %v4007_v62  ;;  %v3456_v62 = vld [vmem:[#allocation8 + $0xe8] sm:$0xf0]  ;;  %1788 = vmatpush.bf16.msrb.mxu0 %v3391_v16 }
 0x133   :  { %1500 = vmatmul.bf16.vlgmr.msra.gmra.mxu3 %v4009_v0  ;;  %v3459_v21 = vor.u32 %v3640_v57, %v3456_v62  ;;  %v1541_v0 = vmax.f32 %v4120_v36, 0.0  ;;  %1837 = vmatpush.bf16.msrb.mxu1 %v3455_v32  ;;  %v3384_v57 = vld [vmem:[#allocation8 + $0x58] sm:$0xf0]  ;;  %v3382_v32 = vld [vmem:[#allocation8 + $0x50] sm:$0xf] }
 0x135   :  { %v1256_v2 = vpop.f32.mrf.mxu2  ;;  %v1160_v60 = vpop.f32.mrf.mxu0  ;;  %1935 = vmatpush.bf16.msrb.mxu3 %v3459_v21 }
 0x136   :  { %v1257_v44 = vadd.f32 %v1256_v2, %v4126_v39  ;;  %v1305_v56 = vpop.f32.mrf.mxu3  ;;  %v1161_v5 = vadd.f32 %v1160_v60, %v4024_v6  ;;  %v1209_v54 = vpop.f32.mrf.mxu1 }
 0x138   :  { %v4131_v20 = vadd.f32 %v1305_v56, %v1257_v44  ;;  %v4133_v37 = vadd.f32 %v1209_v54, %v1161_v5  ;;  %v3622_v54 = vld [vmem:[#allocation8 + $0x54] sm:$0xf] }
 0x139   :  { %v3387_v13 = vor.u32 %v3622_v54, %v3384_v57 }
 0x13a   :  { %v4927_v1 = vmax.f32 %v4133_v37, 0.0 }
 0x13b   :  { %1887 = vmatpush.bf16.msrb.mxu2 %v3387_v13 }
 0x13c   :  { %v4141_v6 = vpack.c.bf16 %v4927_v1, %v1541_v0 }
 0x13d   :  { %v1258_v59 = vpop.f32.mrf.mxu2  ;;  %v1163_v48 = vpop.f32.mrf.mxu0 }
 0x13e   :  { %v1259_v2 = vadd.f32 %v1258_v59, %v4126_v39  ;;  %v1307_v53 = vpop.f32.mrf.mxu3  ;;  %v1164_v44 = vadd.f32 %v1163_v48, %v4031_v24  ;;  %v1212_v56 = vpop.f32.mrf.mxu1  ;;  %v3446_v48 = vld [vmem:[#allocation8 + $0xd0] sm:$0xf] }
 0x140   :  { %v4145_v60 = vadd.f32 %v1307_v53, %v1259_v2  ;;  %v4147_v45 = vadd.f32 %v1212_v56, %v1164_v44  ;;  %1358 = vmatmul.bf16.gmra.mxu0 %v3919_v26  ;;  %v3638_v26 = vld [vmem:[#allocation8 + $0xd4] sm:$0xf]  ;;  %v3623_v2 = vld [vmem:[#allocation8 + $0x54] sm:$0xf0] }
 0x141   :  { %1407 = vmatmul.bf16.gmra.mxu1 %v3921_v27  ;;  %v3448_v27 = vld [vmem:[#allocation8 + $0xd8] sm:$0xf0]  ;;  %v3383_v53 = vor.u32 %v3623_v2, %v3382_v32  ;;  %v3639_v44 = vld [vmem:[#allocation8 + $0xd4] sm:$0xf0] }
 0x142   :  { %1456 = vmatmul.bf16.gmra.mxu2 %v4019_v61  ;;  %v3451_v61 = vor.u32 %v3638_v26, %v3448_v27  ;;  %v3447_v56 = vor.u32 %v3639_v44, %v3446_v48  ;;  %v3620_v26 = vld [vmem:[#allocation8 + $0x44] sm:$0xf]  ;;  %v3376_v27 = vld [vmem:[#allocation8 + $0x48] sm:$0xf0] }
 0x143   :  { %1505 = vmatmul.bf16.gmra.mxu3 %v4021_v3  ;;  %v4926_v3 = vmax.f32 %v4147_v45, 0.0  ;;  %1789 = vmatpush.bf16.msrb.mxu0 %v3383_v53  ;;  %v3379_v2 = vor.u32 %v3620_v26, %v3376_v27 }
 0x144   :  { %1936 = vmatpush.bf16.msrb.mxu3 %v3451_v61  ;;  %1838 = vmatpush.bf16.msrb.mxu1 %v3447_v56 }
 0x145   :  { %v1261_v5 = vpop.f32.mrf.mxu2  ;;  %v1165_v21 = vpop.f32.mrf.mxu0  ;;  %1888 = vmatpush.bf16.msrb.mxu2 %v3379_v2 }
 0x146   :  { %v1262_v62 = vadd.f32 %v1261_v5, %v4126_v39  ;;  %v1310_v24 = vpop.f32.mrf.mxu3  ;;  %v1166_v19 = vadd.f32 %v1165_v21, %v4038_v28  ;;  %v1214_v16 = vpop.f32.mrf.mxu1 }
 0x148   :  { %v4155_v9 = vadd.f32 %v1310_v24, %v1262_v62  ;;  %v4157_v22 = vadd.f32 %v1214_v16, %v1166_v19 }
 0x14a   :  { %v4925_v59 = vmax.f32 %v4157_v22, 0.0 }
 0x14c   :  { %v4165_v5 = vpack.c.bf16 %v4925_v59, %v4926_v3 }
 0x14d   :  { %v1263_v28 = vpop.f32.mrf.mxu2  ;;  %v1168_v62 = vpop.f32.mrf.mxu0 }
 0x14e   :  { %v1264_v54 = vadd.f32 %v1263_v28, %v4126_v39  ;;  %v1312_v57 = vpop.f32.mrf.mxu3  ;;  %v1169_v24 = vadd.f32 %v1168_v62, %v4045_v49  ;;  %v1217_v21 = vpop.f32.mrf.mxu1 }
 0x150   :  { %v4169_v13 = vadd.f32 %v1312_v57, %v1264_v54  ;;  %v4171_v19 = vadd.f32 %v1217_v21, %v1169_v24  ;;  %1363 = vmatmul.bf16.gmra.mxu0 %v3931_v51  ;;  %v3636_v51 = vld [vmem:[#allocation8 + $0xc4] sm:$0xf]  ;;  %v3374_v54 = vld [vmem:[#allocation8 + $0x40] sm:$0xf]  ;;  %v3621_v57 = vld [vmem:[#allocation8 + $0x44] sm:$0xf0] }
 0x151   :  { %1412 = vmatmul.bf16.gmra.mxu1 %v3933_v52  ;;  %v3440_v52 = vld [vmem:[#allocation8 + $0xc8] sm:$0xf0]  ;;  %v3375_v62 = vor.u32 %v3621_v57, %v3374_v54  ;;  %v3438_v24 = vld [vmem:[#allocation8 + $0xc0] sm:$0xf]  ;;  %v3637_v21 = vld [vmem:[#allocation8 + $0xc4] sm:$0xf0] }
 0x152   :  { %1461 = vmatmul.bf16.gmra.mxu2 %v4033_v4  ;;  %v3443_v4 = vor.u32 %v3636_v51, %v3440_v52  ;;  %v3618_v52 = vld [vmem:[#allocation8 + $0x34] sm:$0xf] }
 0x153   :  { %1510 = vmatmul.bf16.gmra.mxu3 %v4035_v17  ;;  %v4924_v17 = vmax.f32 %v4171_v19, 0.0  ;;  %1790 = vmatpush.bf16.msrb.mxu0 %v3375_v62 }
 0x154   :  { %1937 = vmatpush.bf16.msrb.mxu3 %v3443_v4  ;;  %v3368_v4 = vld [vmem:[#allocation8 + $0x38] sm:$0xf0] }
 0x155   :  { %v1266_v16 = vpop.f32.mrf.mxu2  ;;  %v1170_v32 = vpop.f32.mrf.mxu0  ;;  %v3371_v62 = vor.u32 %v3618_v52, %v3368_v4 }
 0x156   :  { %v1267_v61 = vadd.f32 %v1266_v16, %v4126_v39  ;;  %v1315_v49 = vpop.f32.mrf.mxu3  ;;  %v1171_v53 = vadd.f32 %v1170_v32, %v4052_v35  ;;  %v1219_v48 = vpop.f32.mrf.mxu1  ;;  %v3439_v16 = vor.u32 %v3637_v21, %v3438_v24 }
 0x157   :  { %1889 = vmatpush.bf16.msrb.mxu2 %v3371_v62 }
 0x158   :  { %v4179_v44 = vadd.f32 %v1315_v49, %v1267_v61  ;;  %v4181_v28 = vadd.f32 %v1219_v48, %v1171_v53  ;;  %1839 = vmatpush.bf16.msrb.mxu1 %v3439_v16 }
 0x15a   :  { %v4923_v56 = vmax.f32 %v4181_v28, 0.0 }
 0x15c   :  { %v4189_v26 = vpack.c.bf16 %v4923_v56, %v4924_v17 }
 0x15d   :  { %v1268_v35 = vpop.f32.mrf.mxu2  ;;  %v1173_v49 = vpop.f32.mrf.mxu0 }
 0x15e   :  { %v1269_v27 = vadd.f32 %v1268_v35, %v4126_v39  ;;  %v1317_v61 = vpop.f32.mrf.mxu3  ;;  %v1174_v32 = vadd.f32 %v1173_v49, %v4059_v12  ;;  %v1222_v2 = vpop.f32.mrf.mxu1  ;;  %v3619_v49 = vld [vmem:[#allocation8 + $0x34] sm:$0xf0] }
 0x160   :  { %v4193_v53 = vadd.f32 %v1317_v61, %v1269_v27  ;;  %v4195_v48 = vadd.f32 %v1222_v2, %v1174_v32  ;;  %1368 = vmatmul.bf16.gmra.mxu0 %v3943_v14  ;;  %v3634_v14 = vld [vmem:[#allocation8 + $0xb4] sm:$0xf]  ;;  %v3366_v61 = vld [vmem:[#allocation8 + $0x30] sm:$0xf] }
 0x161   :  { %1417 = vmatmul.bf16.gmra.mxu1 %v3945_v15  ;;  %v3432_v15 = vld [vmem:[#allocation8 + $0xb8] sm:$0xf0]  ;;  %v3367_v32 = vor.u32 %v3619_v49, %v3366_v61  ;;  %v3430_v2 = vld [vmem:[#allocation8 + $0xb0] sm:$0xf]  ;;  %v3360_v61 = vld [vmem:[#allocation8 + $0x28] sm:$0xf0] }
 0x162   :  { %1466 = vmatmul.bf16.gmra.mxu2 %v4047_v29  ;;  %v3435_v29 = vor.u32 %v3634_v14, %v3432_v15 }
 0x163   :  { %1515 = vmatmul.bf16.gmra.mxu3 %v4049_v33  ;;  %v4922_v33 = vmax.f32 %v4195_v48, 0.0  ;;  %1791 = vmatpush.bf16.msrb.mxu0 %v3367_v32 }
 0x164   :  { %1938 = vmatpush.bf16.msrb.mxu3 %v3435_v29  ;;  %v3616_v29 = vld [vmem:[#allocation8 + $0x24] sm:$0xf] }
 0x165   :  { %v1271_v51 = vpop.f32.mrf.mxu2  ;;  %v1175_v57 = vpop.f32.mrf.mxu0 }
 0x166   :  { %v1272_v54 = vadd.f32 %v1271_v51, %v4126_v39  ;;  %v1320_v12 = vpop.f32.mrf.mxu3  ;;  %v1176_v24 = vadd.f32 %v1175_v57, %v4066_v63  ;;  %v1224_v21 = vpop.f32.mrf.mxu1  ;;  %v3635_v51 = vld [vmem:[#allocation8 + $0xb4] sm:$0xf0] }
 0x167   :  { %v3431_v52 = vor.u32 %v3635_v51, %v3430_v2  ;;  %v3363_v2 = vor.u32 %v3616_v29, %v3360_v61  ;;  %v3633_v29 = vld [vmem:[#allocation8 + $0xa4] sm:$0xf0] }
 0x168   :  { %v4203_v35 = vadd.f32 %v1320_v12, %v1272_v54  ;;  %v4205_v16 = vadd.f32 %v1224_v21, %v1176_v24 }
 0x169   :  { %1840 = vmatpush.bf16.msrb.mxu1 %v3431_v52  ;;  %1890 = vmatpush.bf16.msrb.mxu2 %v3363_v2 }
 0x16a   :  { %v4921_v27 = vmax.f32 %v4205_v16, 0.0 }
 0x16c   :  { %v4213_v4 = vpack.c.bf16 %v4921_v27, %v4922_v33 }
 0x16d   :  { %v1273_v63 = vpop.f32.mrf.mxu2  ;;  %v1178_v57 = vpop.f32.mrf.mxu0 }
 0x16e   :  { %v1274_v54 = vadd.f32 %v1273_v63, %v4126_v39  ;;  %v1322_v12 = vpop.f32.mrf.mxu3  ;;  %v1179_v62 = vadd.f32 %v1178_v57, %v4073_v40  ;;  %v1227_v24 = vpop.f32.mrf.mxu1  ;;  %v3358_v57 = vld [vmem:[#allocation8 + $0x20] sm:$0xf] }
 0x170   :  { %v4217_v21 = vadd.f32 %v1322_v12, %v1274_v54  ;;  %v4219_v14 = vadd.f32 %v1227_v24, %v1179_v62  ;;  %1373 = vmatmul.bf16.gmra.mxu0 %v3955_v42  ;;  %v3632_v42 = vld [vmem:[#allocation8 + $0xa4] sm:$0xf]  ;;  %v3617_v62 = vld [vmem:[#allocation8 + $0x24] sm:$0xf0] }
 0x171   :  { %1422 = vmatmul.bf16.gmra.mxu1 %v3957_v43  ;;  %v3359_v24 = vor.u32 %v3617_v62, %v3358_v57 }
 0x172   :  { %1471 = vmatmul.bf16.gmra.mxu2 %v4061_v25  ;;  %v3424_v25 = vld [vmem:[#allocation8 + $0xa8] sm:$0xf0] }
 0x173   :  { %1520 = vmatmul.bf16.gmra.mxu3 %v4063_v58  ;;  %v3427_v43 = vor.u32 %v3632_v42, %v3424_v25  ;;  %v4920_v58 = vmax.f32 %v4219_v14, 0.0  ;;  %1792 = vmatpush.bf16.msrb.mxu0 %v3359_v24  ;;  %v3614_v25 = vld [vmem:[#allocation8 + $0x14] sm:$0xf] }
 0x175   :  { %v1276_v15 = vpop.f32.mrf.mxu2  ;;  %v1180_v32 = vpop.f32.mrf.mxu0  ;;  %1939 = vmatpush.bf16.msrb.mxu3 %v3427_v43  ;;  %v3352_v43 = vld [vmem:[#allocation8 + $0x18] sm:$0xf0] }
 0x176   :  { %v1277_v49 = vadd.f32 %v1276_v15, %v4126_v39  ;;  %v1325_v40 = vpop.f32.mrf.mxu3  ;;  %v1181_v51 = vadd.f32 %v1180_v32, %v4080_v34  ;;  %v1229_v63 = vpop.f32.mrf.mxu1  ;;  %v3422_v15 = vld [vmem:[#allocation8 + $0xa0] sm:$0xf] }
 0x177   :  { %v3423_v61 = vor.u32 %v3633_v29, %v3422_v15 }
 0x178   :  { %v4227_v52 = vadd.f32 %v1325_v40, %v1277_v49  ;;  %v4229_v54 = vadd.f32 %v1229_v63, %v1181_v51 }
 0x179   :  { %1841 = vmatpush.bf16.msrb.mxu1 %v3423_v61 }
 0x17a   :  { %v4913_v12 = vmax.f32 %v4229_v54, 0.0 }
 0x17c   :  { %v4239_v49 = vpack.c.bf16 %v4913_v12, %v4920_v58 }
 0x17d   :  { %v4233_v34 = vpop.f32.mrf.mxu2  ;;  %v1183_v32 = vpop.f32.mrf.mxu0 }
 0x17e   :  { %v4241_v40 = vpop.f32.mrf.mxu3  ;;  %v1184_v2 = vadd.f32 %v1183_v32, %v4087_v8  ;;  %v1232_v51 = vpop.f32.mrf.mxu1  ;;  %v3355_v8 = vor.u32 %v3614_v25, %v3352_v43  ;;  %v3414_v25 = vld [vmem:[#allocation8 + $0x90] sm:$0xf]  ;;  %v3631_v43 = vld [vmem:[#allocation8 + $0x94] sm:$0xf0] }
 0x180   :  { %v4244_v63 = vadd.f32 %v1232_v51, %v1184_v2  ;;  %1378 = vmatmul.bf16.gmra.mxu0 %v3967_v10  ;;  %1891 = vmatpush.bf16.msrb.mxu2 %v3355_v8  ;;  %v3630_v10 = vld [vmem:[#allocation8 + $0x94] sm:$0xf]  ;;  %v3615_v2 = vld [vmem:[#allocation8 + $0x14] sm:$0xf0]  ;;  %v3612_v8 = vld [vmem:[#allocation8 + $0x4] sm:$0xf] }
 0x181   :  { %1427 = vmatmul.bf16.gmra.mxu1 %v3969_v11 }
 0x182   :  { %1476 = vmatmul.bf16.gmra.mxu2 %v4075_v18  ;;  %v3416_v18 = vld [vmem:[#allocation8 + $0x98] sm:$0xf0]  ;;  %v4917_v12 = vmax.f32 %v4244_v63, 0.0 }
 0x183   :  { %1525 = vmatmul.bf16.gmra.mxu3 %v4077_v30  ;;  %v3419_v11 = vor.u32 %v3630_v10, %v3416_v18  ;;  %v3350_v30 = vld [vmem:[#allocation8 + $0x10] sm:$0xf] }
 0x184   :  { %v3351_v51 = vor.u32 %v3615_v2, %v3350_v30 }
 0x185   :  { %v1281_v42 = vpop.f32.mrf.mxu2  ;;  %v1185_v24 = vpop.f32.mrf.mxu0  ;;  %1940 = vmatpush.bf16.msrb.mxu3 %v3419_v11  ;;  %v3344_v11 = vld [vmem:[#allocation8 + $0x8] sm:$0xf0] }
 0x186   :  { %v1282_v57 = vadd.f32 %v1281_v42, %v4126_v39  ;;  %v1330_v62 = vpop.f32.mrf.mxu3  ;;  %v1186_v15 = vadd.f32 %v1185_v24, %v4094_v7  ;;  %v1234_v29 = vpop.f32.mrf.mxu1  ;;  %1793 = vmatpush.bf16.msrb.mxu0 %v3351_v51  ;;  %v3415_v7 = vor.u32 %v3631_v43, %v3414_v25  ;;  %v3613_v24 = vld [vmem:[#allocation8 + $0x4] sm:$0xf0]  ;;  %v3347_v51 = vor.u32 %v3612_v8, %v3344_v11  ;;  %v3408_v11 = vld [vmem:[#allocation8 + $0x88] sm:$0xf0] }
 0x188   :  { %v4252_v61 = vadd.f32 %v1330_v62, %v1282_v57  ;;  %v4254_v32 = vadd.f32 %v1234_v29, %v1186_v15  ;;  %v3342_v62 = vld [vmem:[#allocation8] sm:$0xf]  ;;  %1842 = vmatpush.bf16.msrb.mxu1 %v3415_v7  ;;  %1892 = vmatpush.bf16.msrb.mxu2 %v3347_v51 }
 0x189   :  { %v3343_v18 = vor.u32 %v3613_v24, %v3342_v62 }
 0x18a   :  { %v4916_v42 = vmax.f32 %v4254_v32, 0.0 }
 0x18b   :  { %1794 = vmatpush.bf16.msrb.mxu0 %v3343_v18 }
 0x18c   :  { %v4264_v15 = vpack.c.bf16 %v4916_v42, %v4917_v12 }
 0x18d   :  { %v4258_v57 = vpop.f32.mrf.mxu2  ;;  %v1188_v10 = vpop.f32.mrf.mxu0 }
 0x18e   :  { %v4266_v29 = vpop.f32.mrf.mxu3  ;;  %v1189_v30 = vadd.f32 %v1188_v10, %v4101_v31  ;;  %v1237_v2 = vpop.f32.mrf.mxu1 }
 0x190   :  { %v4269_v25 = vadd.f32 %v1237_v2, %v1189_v30  ;;  %1383 = vmatmul.bf16.gmra.mxu0 %v3979_v46  ;;  %v3628_v46 = vld [vmem:[#allocation8 + $0x84] sm:$0xf]  ;;  %v3406_v30 = vld [vmem:[#allocation8 + $0x80] sm:$0xf]  ;;  %v3629_v2 = vld [vmem:[#allocation8 + $0x84] sm:$0xf0] }
 0x191   :  { %1432 = vmatmul.bf16.gmra.mxu1 %v3981_v47  ;;  %v3407_v51 = vor.u32 %v3629_v2, %v3406_v30  ;;  %v4934_v30 = vld [vmem:[#allocation12_spill] sm:$0xff] }
 0x192   :  { %1481 = vmatmul.bf16.gmra.mxu2 %v4089_v55  ;;  %v4915_v55 = vmax.f32 %v4269_v25, 0.0 }
 0x193   :  { %1530 = vmatmul.bf16.gmra.mxu3 %v4091_v50  ;;  %v3411_v50 = vor.u32 %v3628_v46, %v3408_v11  ;;  %1843 = vmatpush.bf16.msrb.mxu1 %v3407_v51  ;;  %v4932_v46 = vld [vmem:[#allocation11_spill] sm:$0xff]  ;;  %v4933_v11 = vld [vmem:[#allocation13_spill] sm:$0xff] }
 0x195   :  { %v1286_v43 = vpop.f32.mrf.mxu2  ;;  %v1190_v24 = vpop.f32.mrf.mxu0  ;;  %1941 = vmatpush.bf16.msrb.mxu3 %v3411_v50  ;;  %v4935_v50 = vld [vmem:[#allocation14_spill] sm:$0xff] }
 0x196   :  { %v1287_v7 = vadd.f32 %v1286_v43, %v4126_v39  ;;  %v1335_v62 = vpop.f32.mrf.mxu3  ;;  %v1191_v31 = vadd.f32 %v1190_v24, %v4108_v23  ;;  %v1239_v8 = vpop.f32.mrf.mxu1 }
 0x198   :  { %v4277_v10 = vadd.f32 %v1335_v62, %v1287_v7  ;;  %v4279_v18 = vadd.f32 %v1239_v8, %v1191_v31 }
 0x19a   :  { %v4914_v47 = vmax.f32 %v4279_v18, 0.0 }
 0x19c   :  { %v4289_v23 = vpack.c.bf16 %v4914_v47, %v4915_v55 }
 0x19d   :  { %v4283_v43 = vpop.f32.mrf.mxu2  ;;  %v1193_v62 = vpop.f32.mrf.mxu0 }
 0x19e   :  { %v4291_v7 = vpop.f32.mrf.mxu3  ;;  %v1194_v24 = vadd.f32 %v1193_v62, %v4115_v41  ;;  %v1242_v31 = vpop.f32.mrf.mxu1 }
 0x1a0   :  { %v4294_v8 = vadd.f32 %v1242_v31, %v1194_v24  ;;  %1388 = vmatmul.bf16.gmra.mxu0 %v4932_v46 }
 0x1a1   :  { %1437 = vmatmul.bf16.gmra.mxu1 %v4934_v30 }
 0x1a2   :  { %1486 = vmatmul.bf16.gmra.mxu2 %v4933_v11  ;;  %v4919_v24 = vmax.f32 %v4294_v8, 0.0 }
 0x1a3   :  { %1535 = vmatmul.bf16.gmra.mxu3 %v4935_v50 }
 0x1a5   :  { %v1291_v2 = vpop.f32.mrf.mxu2  ;;  %v1195_v42 = vpop.f32.mrf.mxu0 }
 0x1a6   :  { %v1292_v47 = vadd.f32 %v1291_v2, %v4126_v39  ;;  %v1340_v55 = vpop.f32.mrf.mxu3  ;;  %v1196_v51 = vadd.f32 %v1195_v42, %v4118_v38  ;;  %v1244_v12 = vpop.f32.mrf.mxu1 }
 0x1a8   :  { %v4302_v41 = vadd.f32 %v1340_v55, %v1292_v47  ;;  %v4304_v62 = vadd.f32 %v1244_v12, %v1196_v51  ;;  %v2119_v47 = vld [vmem:[%s4905_s7] sm:$0x3] }
 0x1a9   :  { %v4324_v58 = vperm.slane %v2119_v47, 0 }
 0x1aa   :  { %v4918_v31 = vmax.f32 %v4304_v62, 0.0 }
 0x1ac   :  { %v4314_v11 = vpack.c.bf16 %v4918_v31, %v4919_v24 }
 0x1ad   :  { %v4308_v46 = vpop.f32.mrf.mxu2  ;;  %v1354_v38 = vpop.f32.mrf.mxu0 }
 0x1ae   :  { %v4316_v30 = vpop.f32.mrf.mxu3  ;;  %v1403_v42 = vpop.f32.mrf.mxu1  ;;  %v1355_v55 = vadd.f32 %v1354_v38, %v4131_v20  ;;  %v4327_v20 = vperm.slane %v2119_v47, 1 }
 0x1b0   :  { %1795 = vmatmul.bf16.vlgmr.msrb.gmra.mxu0 %v4141_v6  ;;  %v1404_v12 = vadd.f32 %v1403_v42, %v1355_v55 }
 0x1b2   :  { %1893 = vmatmul.bf16.vlgmr.msrb.gmra.mxu2 %v4141_v6  ;;  %v2125_v6 = vmul.f32 %v4324_v58, %v1541_v0  ;;  %v4936_v0 = vmax.f32 %v4133_v37, 0.0  ;;  %v4937_v37 = vmax.f32 %v4147_v45, 0.0 }
 0x1b5   :  { %v1452_v50 = vpop.f32.mrf.mxu2  ;;  %v1356_v31 = vpop.f32.mrf.mxu0 }
 0x1b6   :  { %v1453_v2 = vadd.f32 %v1452_v50, %v1404_v12  ;;  %v1501_v51 = vpop.f32.mrf.mxu3  ;;  %v1405_v24 = vpop.f32.mrf.mxu1  ;;  %v1357_v33 = vadd.f32 %v1356_v31, %v4145_v60 }
 0x1b8   :  { %v1502_v27 = vadd.f32 %v1501_v51, %v1453_v2  ;;  %v1406_v56 = vadd.f32 %v1405_v24, %v1357_v33 }
 0x1ba   :  { %v1542_v38 = vmax.f32 %v1502_v27, 0.0  ;;  %v2127_v27 = vmul.f32 %v4324_v58, %v4936_v0 }
 0x1bc   :  { %v2126_v42 = vmul.f32 %v4327_v20, %v1542_v38 }
 0x1bd   :  { %v1454_v55 = vpop.f32.mrf.mxu2  ;;  %v1359_v17 = vpop.f32.mrf.mxu0 }
 0x1be   :  { %v1455_v12 = vadd.f32 %v1454_v55, %v1406_v56  ;;  %v1503_v50 = vpop.f32.mrf.mxu3  ;;  %v2157_v59 = vadd.f32 %v2126_v42, %v2125_v6  ;;  %v1408_v3 = vpop.f32.mrf.mxu1  ;;  %v1360_v2 = vadd.f32 %v1359_v17, %v4155_v9 }
 0x1c0   :  { %v1504_v1 = vadd.f32 %v1503_v50, %v1455_v12  ;;  %2158 = vadd.xlane.f32.xlu1 %v2157_v59  ;;  %1800 = vmatmul.bf16.gmra.mxu0 %v4165_v5  ;;  %v1409_v33 = vadd.f32 %v1408_v3, %v1360_v2 }
 0x1c2   :  { %v1544_v60 = vmax.f32 %v1504_v1, 0.0  ;;  %1898 = vmatmul.bf16.gmra.mxu2 %v4165_v5 }
 0x1c4   :  { %v1574_v36 = vpack.c.bf16 %v1544_v60, %v1542_v38  ;;  %v2128_v56 = vmul.f32 %v4327_v20, %v1544_v60  ;;  %v2129_v38 = vmul.f32 %v4324_v58, %v4937_v37 }
 0x1c5   :  { %v1457_v24 = vpop.f32.mrf.mxu2  ;;  %v1361_v9 = vpop.f32.mrf.mxu0 }
 0x1c6   :  { %v1458_v31 = vadd.f32 %v1457_v24, %v1409_v33  ;;  %v1506_v47 = vpop.f32.mrf.mxu3  ;;  %1844 = vmatmul.bf16.vlgmr.msrb.gmra.mxu1 %v1574_v36  ;;  %1942 = vmatmul.bf16.vlgmr.msrb.gmra.mxu3 %v1574_v36  ;;  %v2160_v59 = vadd.f32 %v2128_v56, %v2127_v27  ;;  %v1410_v17 = vpop.f32.mrf.mxu1  ;;  %v1362_v1 = vadd.f32 %v1361_v9, %v4169_v13  ;;  %v4938_v27 = vmax.f32 %v4157_v22, 0.0 }
 0x1c8   :  { %v1507_v51 = vadd.f32 %v1506_v47, %v1458_v31  ;;  %2161 = vadd.xlane.f32.xlu2 %v2160_v59  ;;  %v1411_v3 = vadd.f32 %v1410_v17, %v1362_v1  ;;  %v2131_v56 = vmul.f32 %v4324_v58, %v4938_v27 }
 0x1ca   :  { %v1546_v5 = vmax.f32 %v1507_v51, 0.0 }
 0x1cc   :  { %v2130_v6 = vmul.f32 %v4327_v20, %v1546_v5 }
 0x1cd   :  { %v1459_v42 = vpop.f32.mrf.mxu2  ;;  %v1364_v50 = vpop.f32.mrf.mxu0 }
 0x1ce   :  { %v1460_v55 = vadd.f32 %v1459_v42, %v1411_v3  ;;  %v1508_v12 = vpop.f32.mrf.mxu3  ;;  %v2163_v2 = vadd.f32 %v2130_v6, %v2129_v38  ;;  %v1413_v60 = vpop.f32.mrf.mxu1  ;;  %v1365_v33 = vadd.f32 %v1364_v50, %v4179_v44 }
 0x1d0   :  { %v1509_v36 = vadd.f32 %v1508_v12, %v1460_v55  ;;  %2164 = vadd.xlane.f32.xlu0 %v2163_v2  ;;  %1805 = vmatmul.bf16.gmra.mxu0 %v4189_v26  ;;  %v1414_v45 = vadd.f32 %v1413_v60, %v1365_v33  ;;  %v4940_v33 = vmax.f32 %v4181_v28, 0.0 }
 0x1d2   :  { %v1548_v13 = vmax.f32 %v1509_v36, 0.0  ;;  %1903 = vmatmul.bf16.gmra.mxu2 %v4189_v26 }
 0x1d4   :  { %v1576_v0 = vpack.c.bf16 %v1548_v13, %v1546_v5  ;;  %v2132_v24 = vmul.f32 %v4327_v20, %v1548_v13  ;;  %v4939_v5 = vmax.f32 %v4171_v19, 0.0  ;;  %v2135_v13 = vmul.f32 %v4324_v58, %v4940_v33 }
 0x1d5   :  { %v1462_v31 = vpop.f32.mrf.mxu2  ;;  %v1366_v44 = vpop.f32.mrf.mxu0 }
 0x1d6   :  { %v1463_v47 = vadd.f32 %v1462_v31, %v1414_v45  ;;  %v1511_v9 = vpop.f32.mrf.mxu3  ;;  %1849 = vmatmul.bf16.gmra.mxu1 %v1576_v0  ;;  %1947 = vmatmul.bf16.gmra.mxu3 %v1576_v0  ;;  %v2166_v59 = vadd.f32 %v2132_v24, %v2131_v56  ;;  %v1415_v17 = vpop.f32.mrf.mxu1  ;;  %v1367_v1 = vadd.f32 %v1366_v44, %v4193_v53  ;;  %v4941_v44 = vmax.f32 %v4195_v48, 0.0 }
 0x1d7   :  { %v2133_v22 = vmul.f32 %v4324_v58, %v4939_v5  ;;  %v1279_v48 = vadd.f32 %v4233_v34, %v4126_v39 }
 0x1d8   :  { %v1512_v51 = vadd.f32 %v1511_v9, %v1463_v47  ;;  %2167 = vadd.xlane.f32.xlu1 %v2166_v59  ;;  %v1416_v37 = vadd.f32 %v1415_v17, %v1367_v1  ;;  %v2137_v28 = vmul.f32 %v4324_v58, %v4941_v44 }
 0x1da   :  { %v1550_v26 = vmax.f32 %v1512_v51, 0.0 }
 0x1dc   :  { %v2134_v3 = vmul.f32 %v4327_v20, %v1550_v26 }
 0x1dd   :  { %v1464_v38 = vpop.f32.mrf.mxu2  ;;  %v1369_v55 = vpop.f32.mrf.mxu0 }
 0x1de   :  { %v1465_v6 = vadd.f32 %v1464_v38, %v1416_v37  ;;  %v1513_v42 = vpop.f32.mrf.mxu3  ;;  %v2169_v12 = vadd.f32 %v2134_v3, %v2133_v22  ;;  %v1418_v50 = vpop.f32.mrf.mxu1  ;;  %v1370_v60 = vadd.f32 %v1369_v55, %v4203_v35  ;;  %v4942_v55 = vmax.f32 %v4205_v16, 0.0 }
 0x1df   :  { %v4943_v16 = vmax.f32 %v4219_v14, 0.0  ;;  %v1284_v14 = vadd.f32 %v4258_v57, %v4126_v39 }
 0x1e0   :  { %v1514_v2 = vadd.f32 %v1513_v42, %v1465_v6  ;;  %2170 = vadd.xlane.f32.xlu2 %v2169_v12  ;;  %1810 = vmatmul.bf16.gmra.mxu0 %v4213_v4  ;;  %v1419_v19 = vadd.f32 %v1418_v50, %v1370_v60  ;;  %v2139_v12 = vmul.f32 %v4324_v58, %v4942_v55 }
 0x1e1   :  { %v1328_v60 = vadd.f32 %v4241_v40, %v1279_v48 }
 0x1e2   :  { %v1552_v53 = vmax.f32 %v1514_v2, 0.0  ;;  %1908 = vmatmul.bf16.gmra.mxu2 %v4213_v4 }
 0x1e4   :  { %v1578_v36 = vpack.c.bf16 %v1552_v53, %v1550_v26  ;;  %v2136_v45 = vmul.f32 %v4327_v20, %v1552_v53 }
 0x1e5   :  { %v1467_v0 = vpop.f32.mrf.mxu2  ;;  %v1371_v35 = vpop.f32.mrf.mxu0 }
 0x1e6   :  { %v1468_v27 = vadd.f32 %v1467_v0, %v1419_v19  ;;  %v1516_v56 = vpop.f32.mrf.mxu3  ;;  %1854 = vmatmul.bf16.gmra.mxu1 %v1578_v36  ;;  %1952 = vmatmul.bf16.gmra.mxu3 %v1578_v36  ;;  %v4364_v24 = vadd.f32 %v2136_v45, %v2135_v13  ;;  %v1420_v31 = vpop.f32.mrf.mxu1  ;;  %v1372_v4 = vadd.f32 %v1371_v35, %v4217_v21 }
 0x1e7   :  { %v2141_v45 = vmul.f32 %v4324_v58, %v4943_v16 }
 0x1e8   :  { %v1517_v47 = vadd.f32 %v1516_v56, %v1468_v27  ;;  %v1421_v17 = vadd.f32 %v1420_v31, %v1372_v4 }
 0x1ea   :  { %v1554_v9 = vmax.f32 %v1517_v47, 0.0 }
 0x1ec   :  { %v2138_v59 = vmul.f32 %v4327_v20, %v1554_v9 }
 0x1ed   :  { %v1469_v51 = vpop.f32.mrf.mxu2  ;;  %v1374_v5 = vpop.f32.mrf.mxu0 }
 0x1ee   :  { %v1470_v1 = vadd.f32 %v1469_v51, %v1421_v17  ;;  %v1518_v26 = vpop.f32.mrf.mxu3  ;;  %v4371_v22 = vadd.f32 %v2138_v59, %v2137_v28  ;;  %v1423_v3 = vpop.f32.mrf.mxu1  ;;  %v1375_v38 = vadd.f32 %v1374_v5, %v4227_v52 }
 0x1f0   :  { %v1519_v37 = vadd.f32 %v1518_v26, %v1470_v1  ;;  %1815 = vmatmul.bf16.gmra.mxu0 %v4239_v49  ;;  %v1424_v6 = vadd.f32 %v1423_v3, %v1375_v38  ;;  %v4944_v1 = vmax.f32 %v4229_v54, 0.0 }
 0x1f2   :  { %v1556_v21 = vmax.f32 %v1519_v37, 0.0  ;;  %1913 = vmatmul.bf16.gmra.mxu2 %v4239_v49  ;;  %v2143_v26 = vmul.f32 %v4324_v58, %v4944_v1 }
 0x1f4   :  { %v1580_v42 = vpack.c.bf16 %v1556_v21, %v1554_v9  ;;  %v2140_v50 = vmul.f32 %v4327_v20, %v1556_v21 }
 0x1f5   :  { %v1472_v2 = vpop.f32.mrf.mxu2  ;;  %v1376_v53 = vpop.f32.mrf.mxu0 }
 0x1f6   :  { %v1473_v52 = vadd.f32 %v1472_v2, %v1424_v6  ;;  %1859 = vmatmul.bf16.gmra.mxu1 %v1580_v42  ;;  %1957 = vmatmul.bf16.gmra.mxu3 %v1580_v42  ;;  %v1521_v19 = vpop.f32.mrf.mxu3  ;;  %v4383_v34 = vadd.f32 %v2140_v50, %v2139_v12  ;;  %v1425_v36 = vpop.f32.mrf.mxu1  ;;  %v1377_v49 = vadd.f32 %v1376_v53, %v1328_v60  ;;  %v4945_v42 = vmax.f32 %v4244_v63, 0.0 }
 0x1f7   :  { %v1289_v63 = vadd.f32 %v4283_v43, %v4126_v39 }
 0x1f8   :  { %v1522_v33 = vadd.f32 %v1521_v19, %v1473_v52  ;;  %v1426_v27 = vadd.f32 %v1425_v36, %v1377_v49  ;;  %v2145_v54 = vmul.f32 %v4324_v58, %v4945_v42 }
 0x1fa   :  { %v1558_v13 = vmax.f32 %v1522_v33, 0.0 }
 0x1fc   :  { %v2142_v0 = vmul.f32 %v4327_v20, %v1558_v13 }
 0x1fd   :  { %v1474_v56 = vpop.f32.mrf.mxu2  ;;  %v1379_v35 = vpop.f32.mrf.mxu0 }
 0x1fe   :  { %v1475_v40 = vadd.f32 %v1474_v56, %v1426_v27  ;;  %v1523_v31 = vpop.f32.mrf.mxu3  ;;  %v4389_v47 = vadd.f32 %v2142_v0, %v2141_v45  ;;  %v1428_v4 = vpop.f32.mrf.mxu1  ;;  %v1380_v9 = vadd.f32 %v1379_v35, %v4252_v61  ;;  %v1333_v61 = vadd.f32 %v4266_v29, %v1284_v14 }
 0x1ff   :  { %v4946_v45 = vmax.f32 %v4254_v32, 0.0 }
 0x200   :  { %v1524_v44 = vadd.f32 %v1523_v31, %v1475_v40  ;;  %1820 = vmatmul.bf16.gmra.mxu0 %v4264_v15  ;;  %v1429_v51 = vadd.f32 %v1428_v4, %v1380_v9 }
 0x201   :  { %v2147_v0 = vmul.f32 %v4324_v58, %v4946_v45  ;;  %v4950_v45 = vmax.f32 %v4304_v62, 0.0 }
 0x202   :  { %v1560_v28 = vmax.f32 %v1524_v44, 0.0  ;;  %1918 = vmatmul.bf16.gmra.mxu2 %v4264_v15  ;;  %v4947_v44 = vmax.f32 %v4269_v25, 0.0  ;;  %v1294_v25 = vadd.f32 %v4308_v46, %v4126_v39 }
 0x204   :  { %v1582_v59 = vpack.c.bf16 %v1560_v28, %v1558_v13  ;;  %v2144_v17 = vmul.f32 %v4327_v20, %v1560_v28  ;;  %v2149_v32 = vmul.f32 %v4324_v58, %v4947_v44 }
 0x205   :  { %v1477_v5 = vpop.f32.mrf.mxu2  ;;  %v1381_v37 = vpop.f32.mrf.mxu0 }
 0x206   :  { %v1478_v3 = vadd.f32 %v1477_v5, %v1429_v51  ;;  %1864 = vmatmul.bf16.gmra.mxu1 %v1582_v59  ;;  %1962 = vmatmul.bf16.gmra.mxu3 %v1582_v59  ;;  %v1526_v38 = vpop.f32.mrf.mxu3  ;;  %v4401_v57 = vadd.f32 %v2144_v17, %v2143_v26  ;;  %v1430_v48 = vpop.f32.mrf.mxu1  ;;  %v1382_v15 = vadd.f32 %v1381_v37, %v1333_v61 }
 0x208   :  { %v1527_v21 = vadd.f32 %v1526_v38, %v1478_v3  ;;  %v1431_v12 = vadd.f32 %v1430_v48, %v1382_v15  ;;  %v4948_v15 = vmax.f32 %v4279_v18, 0.0 }
 0x20a   :  { %v1562_v6 = vmax.f32 %v1527_v21, 0.0  ;;  %v2151_v21 = vmul.f32 %v4324_v58, %v4948_v15 }
 0x20c   :  { %v2146_v55 = vmul.f32 %v4327_v20, %v1562_v6 }
 0x20d   :  { %v1479_v50 = vpop.f32.mrf.mxu2  ;;  %v1384_v2 = vpop.f32.mrf.mxu0 }
 0x20e   :  { %v1480_v29 = vadd.f32 %v1479_v50, %v1431_v12  ;;  %v1528_v60 = vpop.f32.mrf.mxu3  ;;  %v4407_v52 = vadd.f32 %v2146_v55, %v2145_v54  ;;  %v1433_v53 = vpop.f32.mrf.mxu1  ;;  %v1385_v19 = vadd.f32 %v1384_v2, %v4277_v10  ;;  %v1338_v10 = vadd.f32 %v4291_v7, %v1289_v63 }
 0x210   :  { %v1529_v36 = vadd.f32 %v1528_v60, %v1480_v29  ;;  %1825 = vmatmul.bf16.gmra.mxu0 %v4289_v23  ;;  %v1434_v16 = vadd.f32 %v1433_v53, %v1385_v19  ;;  %v4949_v29 = vmax.f32 %v4294_v8, 0.0  ;;  %v2155_v8 = vmul.f32 %v4324_v58, %v4950_v45 }
 0x212   :  { %v1564_v49 = vmax.f32 %v1529_v36, 0.0  ;;  %1923 = vmatmul.bf16.gmra.mxu2 %v4289_v23  ;;  %v2153_v18 = vmul.f32 %v4324_v58, %v4949_v29 }
 0x214   :  { %v1584_v33 = vpack.c.bf16 %v1564_v49, %v1562_v6  ;;  %v2148_v13 = vmul.f32 %v4327_v20, %v1564_v49 }
 0x215   :  { %v1482_v27 = vpop.f32.mrf.mxu2  ;;  %v1386_v40 = vpop.f32.mrf.mxu0 }
 0x216   :  { %v1483_v56 = vadd.f32 %v1482_v27, %v1434_v16  ;;  %1869 = vmatmul.bf16.gmra.mxu1 %v1584_v33  ;;  %1967 = vmatmul.bf16.gmra.mxu3 %v1584_v33  ;;  %v1531_v35 = vpop.f32.mrf.mxu3  ;;  %v4419_v43 = vadd.f32 %v2148_v13, %v2147_v0  ;;  %v1435_v31 = vpop.f32.mrf.mxu1  ;;  %v1387_v23 = vadd.f32 %v1386_v40, %v1338_v10 }
 0x218   :  { %v1532_v4 = vadd.f32 %v1531_v35, %v1483_v56  ;;  %v1436_v28 = vadd.f32 %v1435_v31, %v1387_v23  ;;  %v1621_v56 = vld [vmem:[%s4902_s4] sm:$0x3] }
 0x219   :  { %v4454_v31 = vperm.slane %v1621_v56, 0  ;;  %v4457_v62 = vperm.slane %v1621_v56, 1 }
 0x21a   :  { %v1566_v9 = vmax.f32 %v1532_v4, 0.0 }
 0x21c   :  { %v2150_v14 = vmul.f32 %v4327_v20, %v1566_v9 }
 0x21d   :  { %v1484_v59 = vpop.f32.mrf.mxu2  ;;  %v1389_v17 = vpop.f32.mrf.mxu0 }
 0x21e   :  { %v1485_v7 = vadd.f32 %v1484_v59, %v1436_v28  ;;  %v1533_v51 = vpop.f32.mrf.mxu3  ;;  %v4425_v1 = vadd.f32 %v2150_v14, %v2149_v32  ;;  %v1438_v26 = vpop.f32.mrf.mxu1  ;;  %v1390_v5 = vadd.f32 %v1389_v17, %v4302_v41  ;;  %v1343_v41 = vadd.f32 %v4316_v30, %v1294_v25 }
 0x220   :  { %v1534_v61 = vadd.f32 %v1533_v51, %v1485_v7  ;;  %1830 = vmatmul.bf16.gmra.mxu0 %v4314_v11  ;;  %v1439_v48 = vadd.f32 %v1438_v26, %v1390_v5  ;;  %v2015_v7 = vld [vmem:[%s4903_s5] sm:$0x3] }
 0x221   :  { %v4464_v5 = vperm.slane %v2015_v7, 0 }
 0x222   :  { %v1568_v3 = vmax.f32 %v1534_v61, 0.0  ;;  %1928 = vmatmul.bf16.gmra.mxu2 %v4314_v11  ;;  %v4466_v61 = vperm.slane %v2015_v7, 1 }
 0x224   :  { %v1586_v37 = vpack.c.bf16 %v1568_v3, %v1566_v9  ;;  %v2152_v38 = vmul.f32 %v4327_v20, %v1568_v3 }
 0x225   :  { %v1487_v6 = vpop.f32.mrf.mxu2  ;;  %v1391_v54 = vpop.f32.mrf.mxu0 }
 0x226   :  { %v1488_v42 = vadd.f32 %v1487_v6, %v1439_v48  ;;  %1874 = vmatmul.bf16.gmra.mxu1 %v1586_v37  ;;  %1972 = vmatmul.bf16.gmra.mxu3 %v1586_v37  ;;  %v1536_v55 = vpop.f32.mrf.mxu3  ;;  %v4437_v39 = vadd.f32 %v2152_v38, %v2151_v21  ;;  %v1392_v46 = vadd.f32 %v1391_v54, %v1343_v41  ;;  %v1440_v12 = vpop.f32.mrf.mxu1 }
 0x228   :  { %v1537_v11 = vadd.f32 %v1536_v55, %v1488_v42  ;;  %v1441_v60 = vadd.f32 %v1440_v12, %v1392_v46 }
 0x22a   :  { %v1570_v50 = vmax.f32 %v1537_v11, 0.0 }
 0x22c   :  { %v2154_v2 = vmul.f32 %v4327_v20, %v1570_v50 }
 0x22d   :  { %v1489_v53 = vpop.f32.mrf.mxu2  ;;  %v1796_v36 = vpop.f32.mrf.mxu0 }
 0x22e   :  { %v1490_v30 = vadd.f32 %v1489_v53, %v1441_v60  ;;  %v1538_v19 = vpop.f32.mrf.mxu3  ;;  %v4443_v63 = vadd.f32 %v2154_v2, %v2153_v18 }
 0x230   :  { %v1539_v49 = vadd.f32 %v1538_v19, %v1490_v30 }
 0x232   :  { %v1572_v33 = vmax.f32 %v1539_v49, 0.0 }
 0x234   :  { %v1588_v13 = vpack.c.bf16 %v1572_v33, %v1570_v50  ;;  %v2156_v16 = vmul.f32 %v4327_v20, %v1572_v33  ;;  %v1797_v20 = vadd.f32 %v1796_v36, %v4454_v31 }
 0x235   :  { %v1894_v0 = vpop.f32.mrf.mxu2  ;;  %v1798_v27 = vpop.f32.mrf.mxu0 }
 0x236   :  { %1879 = vmatmul.bf16.gmra.mxu1 %v1588_v13  ;;  %1977 = vmatmul.bf16.gmra.mxu3 %v1588_v13  ;;  %v4449_v10 = vadd.f32 %v2156_v16, %v2155_v8  ;;  %v1895_v44 = vadd.f32 %v1894_v0, %v4457_v62  ;;  %v1799_v59 = vadd.f32 %v1798_v27, %v4454_v31 }
 0x23d   :  { %v1896_v40 = vpop.f32.mrf.mxu2  ;;  %v1801_v35 = vpop.f32.mrf.mxu0 }
 0x23e   :  { %v1897_v3 = vadd.f32 %v1896_v40, %v4457_v62  ;;  %v1802_v41 = vadd.f32 %v1801_v35, %v4454_v31 }
 0x243   :  { %v1845_v23 = vpop.f32.mrf.mxu1 }
 0x244   :  { %v1846_v4 = vadd.f32 %v1845_v23, %v1797_v20 }
 0x245   :  { %v1899_v58 = vpop.f32.mrf.mxu2  ;;  %v1803_v9 = vpop.f32.mrf.mxu0 }
 0x246   :  { %3655 = vtanh.f32 %v1846_v4  ;;  %v1900_v12 = vadd.f32 %v1899_v58, %v4457_v62  ;;  %v1804_v30 = vadd.f32 %v1803_v9, %v4454_v31 }
 0x249   :  { %v1943_v32 = vpop.f32.mrf.mxu3 }
 0x24a   :  { %v1944_v14 = vadd.f32 %v1943_v32, %v1895_v44 }
 0x24b   :  { %v1847_v28 = vpop.f32.mrf.mxu1 }
 0x24c   :  { %3657 = vtanh.f32 %v1944_v14  ;;  %v1848_v51 = vadd.f32 %v1847_v28, %v1799_v59  ;;  %v3656_v25 = vpop.eup %3655 }
 0x24d   :  { %v1901_v17 = vpop.f32.mrf.mxu2  ;;  %v1806_v26 = vpop.f32.mrf.mxu0  ;;  %v2021_v21 = vmul.f32 %v3656_v25, %v4464_v5 }
 0x24e   :  { %3659 = vtanh.f32 %v1848_v51  ;;  %v1902_v16 = vadd.f32 %v1901_v17, %v4457_v62  ;;  %v1807_v35 = vadd.f32 %v1806_v26, %v4454_v31 }
 0x251   :  { %v1945_v37 = vpop.f32.mrf.mxu3 }
 0x252   :  { %v3658_v38 = vpop.eup %3657  ;;  %v1946_v48 = vadd.f32 %v1945_v37, %v1897_v3 }
 0x253   :  { %v1850_v15 = vpop.f32.mrf.mxu1  ;;  %v2022_v6 = vmul.f32 %v3658_v38, %v4466_v61 }
 0x254   :  { %3661 = vtanh.f32 %v1946_v48  ;;  %v1851_v55 = vadd.f32 %v1850_v15, %v1802_v41  ;;  %v3660_v11 = vpop.eup %3659 }
 0x255   :  { %v1904_v42 = vpop.f32.mrf.mxu2  ;;  %v2053_v54 = vadd.f32 %v2022_v6, %v2021_v21  ;;  %v1808_v46 = vpop.f32.mrf.mxu0  ;;  %v2023_v60 = vmul.f32 %v3660_v11, %v4464_v5 }
 0x256   :  { %3663 = vtanh.f32 %v1851_v55  ;;  %v1905_v9 = vadd.f32 %v1904_v42, %v4457_v62  ;;  %v1809_v51 = vadd.f32 %v1808_v46, %v4454_v31 }
 0x257   :  { %2054 = vadd.xlane.f32.xlu0 %v2053_v54 }
 0x259   :  { %v1948_v50 = vpop.f32.mrf.mxu3 }
 0x25a   :  { %v3662_v29 = vpop.eup %3661  ;;  %v1949_v18 = vadd.f32 %v1948_v50, %v1900_v12 }
 0x25b   :  { %v1852_v2 = vpop.f32.mrf.mxu1  ;;  %v2024_v53 = vmul.f32 %v3662_v29, %v4466_v61 }
 0x25c   :  { %3665 = vtanh.f32 %v1949_v18  ;;  %v1853_v49 = vadd.f32 %v1852_v2, %v1804_v30  ;;  %v3664_v13 = vpop.eup %3663 }
 0x25d   :  { %v1906_v19 = vpop.f32.mrf.mxu2  ;;  %v2056_v36 = vadd.f32 %v2024_v53, %v2023_v60  ;;  %v1811_v33 = vpop.f32.mrf.mxu0  ;;  %v2025_v56 = vmul.f32 %v3664_v13, %v4464_v5 }
 0x25e   :  { %3667 = vtanh.f32 %v1853_v49  ;;  %v1907_v38 = vadd.f32 %v1906_v19, %v4457_v62  ;;  %v1812_v55 = vadd.f32 %v1811_v33, %v4454_v31 }
 0x25f   :  { %2057 = vadd.xlane.f32.xlu0 %v2056_v36 }
 0x261   :  { %v1950_v45 = vpop.f32.mrf.mxu3 }
 0x262   :  { %v3666_v8 = vpop.eup %3665  ;;  %v1951_v0 = vadd.f32 %v1950_v45, %v1902_v16 }
 0x263   :  { %v1855_v27 = vpop.f32.mrf.mxu1  ;;  %v2026_v40 = vmul.f32 %v3666_v8, %v4466_v61 }
 0x264   :  { %3669 = vtanh.f32 %v1951_v0  ;;  %v1856_v58 = vadd.f32 %v1855_v27, %v1807_v35  ;;  %v3668_v4 = vpop.eup %3667 }
 0x265   :  { %v1909_v23 = vpop.f32.mrf.mxu2  ;;  %v2059_v20 = vadd.f32 %v2026_v40, %v2025_v56  ;;  %v1813_v44 = vpop.f32.mrf.mxu0  ;;  %v2027_v7 = vmul.f32 %v3668_v4, %v4464_v5 }
 0x266   :  { %3671 = vtanh.f32 %v1856_v58  ;;  %v1910_v29 = vadd.f32 %v1909_v23, %v4457_v62  ;;  %v1814_v36 = vadd.f32 %v1813_v44, %v4454_v31 }
 0x267   :  { %2060 = vadd.xlane.f32.xlu1 %v2059_v20 }
 0x269   :  { %v1953_v32 = vpop.f32.mrf.mxu3 }
 0x26a   :  { %v3670_v14 = vpop.eup %3669  ;;  %v1954_v28 = vadd.f32 %v1953_v32, %v1905_v9 }
 0x26b   :  { %v1857_v59 = vpop.f32.mrf.mxu1  ;;  %v2028_v17 = vmul.f32 %v3670_v14, %v4466_v61 }
 0x26c   :  { %3673 = vtanh.f32 %v1954_v28  ;;  %v1858_v3 = vadd.f32 %v1857_v59, %v1809_v51  ;;  %v3672_v37 = vpop.eup %3671 }
 0x26d   :  { %v1911_v26 = vpop.f32.mrf.mxu2  ;;  %v2062_v25 = vadd.f32 %v2028_v17, %v2027_v7  ;;  %v1816_v6 = vpop.f32.mrf.mxu0  ;;  %v2029_v42 = vmul.f32 %v3672_v37, %v4464_v5 }
 0x26e   :  { %3675 = vtanh.f32 %v1858_v3  ;;  %v1912_v45 = vadd.f32 %v1911_v26, %v4457_v62  ;;  %v1817_v20 = vadd.f32 %v1816_v6, %v4454_v31 }
 0x26f   :  { %2063 = vadd.xlane.f32.xlu1 %v2062_v25 }
 0x271   :  { %v1955_v48 = vpop.f32.mrf.mxu3 }
 0x272   :  { %v3674_v15 = vpop.eup %3673  ;;  %v1956_v21 = vadd.f32 %v1955_v48, %v1907_v38 }
 0x273   :  { %v1860_v41 = vpop.f32.mrf.mxu1  ;;  %v2030_v54 = vmul.f32 %v3674_v15, %v4466_v61 }
 0x274   :  { %3677 = vtanh.f32 %v1956_v21  ;;  %v1861_v11 = vadd.f32 %v1860_v41, %v1812_v55  ;;  %v3676_v50 = vpop.eup %3675 }
 0x275   :  { %v2065_v46 = vadd.f32 %v2030_v54, %v2029_v42  ;;  %v1914_v12 = vpop.f32.mrf.mxu2  ;;  %v2031_v30 = vmul.f32 %v3676_v50, %v4464_v5  ;;  %v1818_v49 = vpop.f32.mrf.mxu0 }
 0x276   :  { %3679 = vtanh.f32 %v1861_v11  ;;  %v1915_v32 = vadd.f32 %v1914_v12, %v4457_v62  ;;  %v1819_v25 = vadd.f32 %v1818_v49, %v4454_v31 }
 0x277   :  { %2066 = vadd.xlane.f32.xlu2 %v2065_v46 }
 0x279   :  { %v1958_v18 = vpop.f32.mrf.mxu3 }
 0x27a   :  { %v3678_v2 = vpop.eup %3677  ;;  %v1959_v60 = vadd.f32 %v1958_v18, %v1910_v29 }
 0x27b   :  { %v1862_v53 = vpop.f32.mrf.mxu1  ;;  %v2032_v19 = vmul.f32 %v3678_v2, %v4466_v61 }
 0x27c   :  { %3681 = vtanh.f32 %v1959_v60  ;;  %v1863_v13 = vadd.f32 %v1862_v53, %v1814_v36  ;;  %v3680_v16 = vpop.eup %3679 }
 0x27d   :  { %v2068_v33 = vadd.f32 %v2032_v19, %v2031_v30  ;;  %v1916_v8 = vpop.f32.mrf.mxu2  ;;  %v2033_v35 = vmul.f32 %v3680_v16, %v4464_v5  ;;  %v1821_v9 = vpop.f32.mrf.mxu0 }
 0x27e   :  { %3683 = vtanh.f32 %v1863_v13  ;;  %v1917_v48 = vadd.f32 %v1916_v8, %v4457_v62  ;;  %v1822_v46 = vadd.f32 %v1821_v9, %v4454_v31 }
 0x27f   :  { %2069 = vadd.xlane.f32.xlu2 %v2068_v33 }
 0x281   :  { %v1960_v0 = vpop.f32.mrf.mxu3 }
 0x282   :  { %v3682_v27 = vpop.eup %3681  ;;  %v1961_v56 = vadd.f32 %v1960_v0, %v1912_v45 }
 0x283   :  { %v1865_v40 = vpop.f32.mrf.mxu1  ;;  %v2034_v23 = vmul.f32 %v3682_v27, %v4466_v61 }
 0x284   :  { %3685 = vtanh.f32 %v1961_v56  ;;  %v1866_v4 = vadd.f32 %v1865_v40, %v1817_v20  ;;  %v3684_v44 = vpop.eup %3683 }
 0x285   :  { %v2071_v58 = vadd.f32 %v2034_v23, %v2033_v35  ;;  %v1919_v7 = vpop.f32.mrf.mxu2  ;;  %v2035_v51 = vmul.f32 %v3684_v44, %v4464_v5  ;;  %v1823_v15 = vpop.f32.mrf.mxu0 }
 0x286   :  { %3687 = vtanh.f32 %v1866_v4  ;;  %v1920_v18 = vadd.f32 %v1919_v7, %v4457_v62  ;;  %v1824_v33 = vadd.f32 %v1823_v15, %v4454_v31 }
 0x287   :  { %2072 = vadd.xlane.f32.xlu0 %v2071_v58 }
 0x289   :  { %v1963_v14 = vpop.f32.mrf.mxu3 }
 0x28a   :  { %v3686_v28 = vpop.eup %3685  ;;  %v1964_v59 = vadd.f32 %v1963_v14, %v1915_v32 }
 0x28b   :  { %v1867_v17 = vpop.f32.mrf.mxu1  ;;  %v2036_v26 = vmul.f32 %v3686_v28, %v4466_v61 }
 0x28c   :  { %3689 = vtanh.f32 %v1964_v59  ;;  %v1868_v37 = vadd.f32 %v1867_v17, %v1819_v25  ;;  %v3688_v38 = vpop.eup %3687 }
 0x28d   :  { %v2074_v3 = vadd.f32 %v2036_v26, %v2035_v51  ;;  %v2037_v54 = vmul.f32 %v3688_v38, %v4464_v5  ;;  %v1921_v11 = vpop.f32.mrf.mxu2  ;;  %v1826_v30 = vpop.f32.mrf.mxu0 }
 0x28e   :  { %3691 = vtanh.f32 %v1868_v37  ;;  %v1922_v0 = vadd.f32 %v1921_v11, %v4457_v62  ;;  %v1827_v58 = vadd.f32 %v1826_v30, %v4454_v31 }
 0x28f   :  { %2075 = vadd.xlane.f32.xlu1 %v2074_v3 }
 0x291   :  { %v1965_v21 = vpop.f32.mrf.mxu3 }
 0x292   :  { %v3690_v6 = vpop.eup %3689  ;;  %v1966_v41 = vadd.f32 %v1965_v21, %v1917_v48 }
 0x293   :  { %v1870_v42 = vpop.f32.mrf.mxu1  ;;  %v2038_v55 = vmul.f32 %v3690_v6, %v4466_v61 }
 0x294   :  { %3693 = vtanh.f32 %v1966_v41  ;;  %v1871_v50 = vadd.f32 %v1870_v42, %v1822_v46  ;;  %v3692_v29 = vpop.eup %3691 }
 0x295   :  { %v2077_v12 = vadd.f32 %v2038_v55, %v2037_v54  ;;  %v2039_v36 = vmul.f32 %v3692_v29, %v4464_v5  ;;  %v1924_v45 = vpop.f32.mrf.mxu2  ;;  %v1828_v4 = vpop.f32.mrf.mxu0 }
 0x296   :  { %3695 = vtanh.f32 %v1871_v50  ;;  %v1925_v14 = vadd.f32 %v1924_v45, %v4457_v62  ;;  %v1829_v3 = vadd.f32 %v1828_v4, %v4454_v31 }
 0x297   :  { %2078 = vadd.xlane.f32.xlu2 %v2077_v12 }
 0x299   :  { %v1968_v2 = vpop.f32.mrf.mxu3 }
 0x29a   :  { %v3694_v60 = vpop.eup %3693  ;;  %v1969_v53 = vadd.f32 %v1968_v2, %v1920_v18 }
 0x29b   :  { %v1872_v19 = vpop.f32.mrf.mxu1  ;;  %v2040_v49 = vmul.f32 %v3694_v60, %v4466_v61 }
 0x29c   :  { %3697 = vtanh.f32 %v1969_v53  ;;  %v1873_v16 = vadd.f32 %v1872_v19, %v1824_v33  ;;  %v3696_v8 = vpop.eup %3695 }
 0x29d   :  { %v2080_v13 = vadd.f32 %v2040_v49, %v2039_v36  ;;  %v2041_v23 = vmul.f32 %v3696_v8, %v4464_v5  ;;  %v1926_v28 = vpop.f32.mrf.mxu2  ;;  %v1831_v48 = vpop.f32.mrf.mxu0 }
 0x29e   :  { %3699 = vtanh.f32 %v1873_v16  ;;  %v1927_v21 = vadd.f32 %v1926_v28, %v4457_v62  ;;  %v1832_v12 = vadd.f32 %v1831_v48, %v4454_v31 }
 0x29f   :  { %2081 = vadd.xlane.f32.xlu0 %v2080_v13 }
 0x2a1   :  { %v1970_v27 = vpop.f32.mrf.mxu3 }
 0x2a2   :  { %v3698_v56 = vpop.eup %3697  ;;  %v1971_v40 = vadd.f32 %v1970_v27, %v1922_v0 }
 0x2a3   :  { %v1875_v35 = vpop.f32.mrf.mxu1  ;;  %v2042_v20 = vmul.f32 %v3698_v56, %v4466_v61 }
 0x2a4   :  { %3701 = vtanh.f32 %v1971_v40  ;;  %v1876_v44 = vadd.f32 %v1875_v35, %v1827_v58  ;;  %v3700_v32 = vpop.eup %3699 }
 0x2a5   :  { %v2083_v9 = vadd.f32 %v2042_v20, %v2041_v23  ;;  %v2043_v26 = vmul.f32 %v3700_v32, %v4464_v5  ;;  %v1929_v54 = vpop.f32.mrf.mxu2  ;;  %v1833_v60 = vpop.f32.mrf.mxu0 }
 0x2a6   :  { %3703 = vtanh.f32 %v1876_v44  ;;  %v1930_v2 = vadd.f32 %v1929_v54, %v4457_v62  ;;  %v1834_v13 = vadd.f32 %v1833_v60, %v4454_v31  ;;  %v4535_v32 = vpop.xlane.xlu1 %2158 }
 0x2a7   :  { %2084 = vadd.xlane.f32.xlu1 %v2083_v9 }
 0x2a9   :  { %v1973_v59 = vpop.f32.mrf.mxu3 }
 0x2aa   :  { %v3702_v7 = vpop.eup %3701  ;;  %v1974_v17 = vadd.f32 %v1973_v59, %v1925_v14 }
 0x2ab   :  { %v1877_v51 = vpop.f32.mrf.mxu1  ;;  %v2044_v25 = vmul.f32 %v3702_v7, %v4466_v61 }
 0x2ac   :  { %3705 = vtanh.f32 %v1974_v17  ;;  %v1878_v38 = vadd.f32 %v1877_v51, %v1829_v3  ;;  %v3704_v15 = vpop.eup %3703 }
 0x2ad   :  { %v2086_v37 = vadd.f32 %v2044_v25, %v2043_v26  ;;  %v2045_v46 = vmul.f32 %v3704_v15, %v4464_v5  ;;  %v1931_v16 = vpop.f32.mrf.mxu2 }
 0x2ae   :  { %3707 = vtanh.f32 %v1878_v38  ;;  %v1932_v27 = vadd.f32 %v1931_v16, %v4457_v62 }
 0x2af   :  { %2087 = vadd.xlane.f32.xlu2 %v2086_v37 }
 0x2b1   :  { %v1975_v6 = vpop.f32.mrf.mxu3 }
 0x2b2   :  { %v3706_v41 = vpop.eup %3705  ;;  %v1976_v42 = vadd.f32 %v1975_v6, %v1927_v21 }
 0x2b3   :  { %v1880_v55 = vpop.f32.mrf.mxu1  ;;  %v2046_v11 = vmul.f32 %v3706_v41, %v4466_v61 }
 0x2b4   :  { %3709 = vtanh.f32 %v1976_v42  ;;  %v1881_v29 = vadd.f32 %v1880_v55, %v1832_v12  ;;  %v3708_v18 = vpop.eup %3707 }
 0x2b5   :  { %v2089_v50 = vadd.f32 %v2046_v11, %v2045_v46  ;;  %v2047_v49 = vmul.f32 %v3708_v18, %v4464_v5 }
 0x2b6   :  { %3711 = vtanh.f32 %v1881_v29 }
 0x2b7   :  { %2090 = vadd.xlane.f32.xlu0 %v2089_v50 }
 0x2b9   :  { %v1978_v53 = vpop.f32.mrf.mxu3 }
 0x2ba   :  { %v3710_v30 = vpop.eup %3709  ;;  %v1979_v19 = vadd.f32 %v1978_v53, %v1930_v2 }
 0x2bb   :  { %v1882_v36 = vpop.f32.mrf.mxu1  ;;  %v2048_v33 = vmul.f32 %v3710_v30, %v4466_v61 }
 0x2bc   :  { %3713 = vtanh.f32 %v1979_v19  ;;  %v1883_v8 = vadd.f32 %v1882_v36, %v1834_v13  ;;  %v3712_v0 = vpop.eup %3711 }
 0x2bd   :  { %v2092_v45 = vadd.f32 %v2048_v33, %v2047_v49  ;;  %v2049_v23 = vmul.f32 %v3712_v0, %v4464_v5 }
 0x2be   :  { %3715 = vtanh.f32 %v1883_v8 }
 0x2bf   :  { %2093 = vadd.xlane.f32.xlu1 %v2092_v45 }
 0x2c1   :  { %v1980_v56 = vpop.f32.mrf.mxu3 }
 0x2c2   :  { %v3714_v40 = vpop.eup %3713  ;;  %v1981_v35 = vadd.f32 %v1980_v56, %v1932_v27 }
 0x2c3   :  { %v2050_v20 = vmul.f32 %v3714_v40, %v4466_v61 }
 0x2c4   :  { %3717 = vtanh.f32 %v1981_v35  ;;  %v3716_v31 = vpop.eup %3715 }
 0x2c5   :  { %v2095_v58 = vadd.f32 %v2050_v20, %v2049_v23  ;;  %v2051_v9 = vmul.f32 %v3716_v31, %v4464_v5 }
 0x2c7   :  { %2096 = vadd.xlane.f32.xlu2 %v2095_v58  ;;  %2176 = vadd.xlane.f32.xlu1 %v4371_v22  ;;  %v4539_v22 = vpop.xlane.xlu2 %2161 }
 0x2ca   :  { %v3718_v4 = vpop.eup %3717 }
 0x2cb   :  { %v2052_v44 = vmul.f32 %v3718_v4, %v4466_v61  ;;  %v2221_v61 = vlaneseq }
 0x2cd   :  { %v2098_v62 = vadd.f32 %v2052_v44, %v2051_v9  ;;  %v4561_v59 = vand.u32 127, %v2221_v61 }
 0x2cf   :  { %2179 = vadd.xlane.f32.xlu2 %v4383_v34  ;;  %2185 = vadd.xlane.f32.xlu1 %v4401_v57  ;;  %v4542_v34 = vpop.xlane.xlu0 %2164  ;;  %v4544_v57 = vpop.xlane.xlu1 %2167 }
 0x2d0   :  { %2099 = vadd.xlane.f32.xlu0 %v2098_v62  ;;  %v4546_v5 = vpop.xlane.xlu2 %2170 }
 0x2d7   :  { %2188 = vadd.xlane.f32.xlu2 %v4407_v52  ;;  %2194 = vadd.xlane.f32.xlu1 %v4425_v1  ;;  %v2055_v52 = vpop.xlane.xlu0 %2054 }
 0x2d8   :  { %2173 = vadd.xlane.f32.xlu0 %v4364_v24 }
 0x2da   :  { %v2061_v24 = vpop.xlane.xlu1 %2060 }
 0x2df   :  { %2197 = vadd.xlane.f32.xlu2 %v4437_v39  ;;  %2203 = vadd.xlane.f32.xlu1 %v4449_v10  ;;  %v2058_v39 = vpop.xlane.xlu0 %2057  ;;  %v4553_v10 = vstv %s4904_s6 }
 0x2e0   :  { %2182 = vadd.xlane.f32.xlu0 %v4389_v47  ;;  %v4556_v14 = vadd.f32 %v4553_v10, %v2058_v39  ;;  %v4559_v28 = vadd.f32 %v4553_v10, %v2061_v24  ;;  %v4564_v7 = vadd.f32 %v4553_v10, %v2055_v52 }
 0x2e2   :  { %v2064_v47 = vpop.xlane.xlu1 %2063  ;;  %v2224_v26 = vperm.slane %v4556_v14, %v4561_v59  ;;  %v2225_v3 = vperm.slane %v4559_v28, %v4561_v59  ;;  %v2223_v38 = vperm.slane %v4564_v7, %v4561_v59 }
 0x2e4   :  { %v2240_v21 = vsel %vm2239_vm0, %v2224_v26, %v2223_v38  ;;  %v3838_v26 = vmov 0  }
 0x2e5   :  { %v2242_v41 = vsel %vm2241_vm1, %v2225_v3, %v2240_v21  ;;  %3654 = vset.pattern.permute.xlu0 %v3838_v26  ;;  %3653 = vset.pattern.permute.xlu2 %v3838_v26 }
 0x2e6   :  { %3652 = vset.pattern.permute.xlu1 %v3838_v26 }
 0x2e8   :  { %2191 = vadd.xlane.f32.xlu0 %v4419_v43 }
 0x2ea   :  { %v2067_v1 = vpop.xlane.xlu2 %2066 }
 0x2eb   :  { %v4570_v51 = vadd.f32 %v4553_v10, %v2067_v1 }
 0x2ed   :  { %v2227_v15 = vperm.slane %v4570_v51, %v4561_v59 }
 0x2f0   :  { %2200 = vadd.xlane.f32.xlu0 %v4443_v63  ;;  %v4567_v63 = vadd.f32 %v4553_v10, %v2064_v47 }
 0x2f2   :  { %v2070_v43 = vpop.xlane.xlu2 %2069  ;;  %v2226_v48 = vperm.slane %v4567_v63, %v4561_v59 }
 0x2f3   :  { %v4575_v25 = vadd.f32 %v4553_v10, %v2070_v43 }
 0x2f4   :  { %v2244_v55 = vsel %vm2243_vm2, %v2226_v48, %v2242_v41 }
 0x2f5   :  { %v2228_v6 = vperm.slane %v4575_v25, %v4561_v59  ;;  %v2246_v11 = vsel %vm2245_vm3, %v2227_v15, %v2244_v55 }
 0x2f7   :  { %v2248_v50 = vsel %vm2247_vm4, %v2228_v6, %v2246_v11 }
 0x2fa   :  { %v2073_v17 = vpop.xlane.xlu0 %2072 }
 0x2fb   :  { %v4580_v37 = vadd.f32 %v4553_v10, %v2073_v17 }
 0x2fd   :  { %v2229_v42 = vperm.slane %v4580_v37, %v4561_v59 }
 0x2ff   :  { %v2250_v29 = vsel %vm2249_vm5, %v2229_v42, %v2248_v50 }
 0x302   :  { %v2076_v54 = vpop.xlane.xlu1 %2075 }
 0x303   :  { %v4596_v46 = vadd.f32 %v4553_v10, %v2076_v54 }
 0x305   :  { %v2230_v12 = vperm.slane %v4596_v46, %v4561_v59 }
 0x307   :  { %v2252_v18 = vsel %vm2251_vm6, %v2230_v12, %v2250_v29 }
 0x308   :  { %v2263_v2 = vsel %vm2262_vm7, %v2252_v18, -inf }
 0x309   :  { %2264 = vmax.xlane.f32.xlu2 %v2263_v2 }
 0x30a   :  { %v2079_v60 = vpop.xlane.xlu2 %2078 }
 0x30b   :  { %v4612_v16 = vadd.f32 %v4553_v10, %v2079_v60 }
 0x30d   :  { %v2231_v23 = vperm.slane %v4612_v16, %v4561_v59 }
 0x312   :  { %v2082_v53 = vpop.xlane.xlu0 %2081 }
 0x313   :  { %v4606_v36 = vadd.f32 %v4553_v10, %v2082_v53 }
 0x315   :  { %v2232_v27 = vperm.slane %v4606_v36, %v4561_v59 }
 0x317   :  { %v2253_v31 = vsel %vm2239_vm0, %v2232_v27, %v2231_v23 }
 0x31a   :  { %v2085_v30 = vpop.xlane.xlu1 %2084 }
 0x31b   :  { %v4609_v33 = vadd.f32 %v4553_v10, %v2085_v30 }
 0x31d   :  { %v2233_v40 = vperm.slane %v4609_v33, %v4561_v59 }
 0x31f   :  { %v2254_v9 = vsel %vm2241_vm1, %v2233_v40, %v2253_v31 }
 0x322   :  { %v2088_v19 = vpop.xlane.xlu2 %2087 }
 0x323   :  { %v4615_v45 = vadd.f32 %v4553_v10, %v2088_v19 }
 0x325   :  { %v2234_v20 = vperm.slane %v4615_v45, %v4561_v59 }
 0x327   :  { %v2255_v52 = vsel %vm2243_vm2, %v2234_v20, %v2254_v9 }
 0x32a   :  { %v2091_v49 = vpop.xlane.xlu0 %2090 }
 0x32b   :  { %v4618_v0 = vadd.f32 %v4553_v10, %v2091_v49 }
 0x32d   :  { %v2235_v58 = vperm.slane %v4618_v0, %v4561_v59 }
 0x32f   :  { %v2256_v1 = vsel %vm2245_vm3, %v2235_v58, %v2255_v52 }
 0x332   :  { %v2094_v13 = vpop.xlane.xlu1 %2093 }
 0x333   :  { %v4623_v56 = vadd.f32 %v4553_v10, %v2094_v13 }
 0x335   :  { %v2236_v4 = vperm.slane %v4623_v56, %v4561_v59 }
 0x337   :  { %v2257_v61 = vsel %vm2247_vm4, %v2236_v4, %v2256_v1 }
 0x33a   :  { %v2097_v8 = vpop.xlane.xlu2 %2096 }
 0x33b   :  { %v4628_v35 = vadd.f32 %v4553_v10, %v2097_v8 }
 0x33d   :  { %v2237_v44 = vperm.slane %v4628_v35, %v4561_v59 }
 0x33f   :  { %v2258_v47 = vsel %vm2249_vm5, %v2237_v44, %v2257_v61 }
 0x343   :  { %v2100_v62 = vpop.xlane.xlu0 %2099 }
 0x344   :  { %v4644_v24 = vadd.f32 %v4553_v10, %v2100_v62  ;;  %v4653_v10 = vpop.xlane.xlu2 %2179 }
 0x346   :  { %v2238_v39 = vperm.slane %v4644_v24, %v4561_v59 }
 0x348   :  { %v2259_v43 = vsel %vm2251_vm6, %v2238_v39, %v2258_v47 }
 0x349   :  { %v2266_v17 = vsel %vm2262_vm7, %v2259_v43, -inf }
 0x34a   :  { %2267 = vmax.xlane.f32.xlu0 %v2266_v17 }
 0x34c   :  { %v4655_v3 = vpop.xlane.xlu2 %2188 }
 0x354   :  { %v4657_v38 = vpop.xlane.xlu2 %2197 }
 0x37c   :  { %v2265_v48 = vpop.xlane.xlu2 %2264 }
 0x37d   :  { %v2272_v15 = vperm.slane %v2265_v48, 1  ;;  %v2271_v21 = vperm.slane %v2265_v48, 0  ;;  %v2273_v6 = vperm.slane %v2265_v48, 2  ;;  %v2274_v55 = vperm.slane %v2265_v48, 3 }
 0x37e   :  { %v2275_v11 = vperm.slane %v2265_v48, 4  ;;  %v2276_v53 = vperm.slane %v2265_v48, 5  ;;  %v2278_v13 = vperm.slane %v2265_v48, 7 }
 0x37f   :  { %v2304_v41 = vsub.f32 %v4556_v14, %v2272_v15  ;;  %v2303_v42 = vsub.f32 %v4564_v7, %v2271_v21  ;;  %v2305_v54 = vsub.f32 %v4559_v28, %v2273_v6  ;;  %v2306_v18 = vsub.f32 %v4567_v63, %v2274_v55 }
 0x380   :  { %v2307_v2 = vsub.f32 %v4570_v51, %v2275_v11  ;;  %v2277_v14 = vperm.slane %v2265_v48, 6  ;;  %v2308_v63 = vsub.f32 %v4575_v25, %v2276_v53  ;;  %v2310_v23 = vsub.f32 %v4596_v46, %v2278_v13  ;;  %v4682_v25 = vpop.xlane.xlu0 %2173 }
 0x381   :  { %v2321_v12 = vmul.f32 1.442695, %v2304_v41  ;;  %v2319_v50 = vmul.f32 1.442695, %v2303_v42  ;;  %v2323_v29 = vmul.f32 1.442695, %v2305_v54 }
 0x382   :  { %v2325_v60 = vmul.f32 1.442695, %v2306_v18  ;;  %v2327_v30 = vmul.f32 1.442695, %v2307_v2  ;;  %v2309_v51 = vsub.f32 %v4580_v37, %v2277_v14  ;;  %v2329_v49 = vmul.f32 1.442695, %v2308_v63 }
 0x383   :  { %3719 = vpow2.f32 %v2321_v12  ;;  %v2333_v20 = vmul.f32 1.442695, %v2310_v23 }
 0x384   :  { %3721 = vpow2.f32 %v2319_v50  ;;  %v2331_v8 = vmul.f32 1.442695, %v2309_v51 }
 0x385   :  { %3723 = vpow2.f32 %v2323_v29 }
 0x386   :  { %3725 = vpow2.f32 %v2325_v60 }
 0x387   :  { %3727 = vpow2.f32 %v2327_v30 }
 0x388   :  { %3729 = vpow2.f32 %v2329_v49  ;;  %v4692_v4 = vpop.xlane.xlu0 %2182 }
 0x389   :  { %v4664_v19 = vpop.eup %3719  ;;  %3731 = vpow2.f32 %v2331_v8 }
 0x38a   :  { %v4666_v7 = vpop.eup %3721  ;;  %2371 = vperm.xlu2 %3653, %v4664_v19   ;;  %3733 = vpow2.f32 %v2333_v20 }
 0x38b   :  { %v4669_v28 = vpop.eup %3723  ;;  %2368 = vperm.xlu1 %3652, %v4666_v7  }
 0x38c   :  { %2374 = vperm.xlu0 %3654, %v4669_v28   ;;  %v4675_v27 = vpop.eup %3725 }
 0x38d   :  { %v4677_v40 = vpop.eup %3727 }
 0x38e   :  { %v4684_v58 = vpop.eup %3729 }
 0x38f   :  { %v4686_v37 = vpop.eup %3731 }
 0x390   :  { %v4690_v31 = vpop.eup %3733  ;;  %v4695_v46 = vpop.xlane.xlu0 %2191 }
 0x392   :  { %2377 = vperm.xlu2 %3653, %v4675_v27  }
 0x393   :  { %2380 = vperm.xlu1 %3652, %v4677_v40  }
 0x398   :  { %v4697_v9 = vpop.xlane.xlu0 %2200 }
 0x39a   :  { %2383 = vperm.xlu2 %3653, %v4684_v58  }
 0x39b   :  { %2386 = vperm.xlu1 %3652, %v4686_v37  }
 0x3a2   :  { %2389 = vperm.xlu2 %3653, %v4690_v31  }
 0x3bd   :  { %v2268_v44 = vpop.xlane.xlu0 %2267 }
 0x3be   :  { %v2281_v62 = vperm.slane %v2268_v44, 2  ;;  %v2280_v52 = vperm.slane %v2268_v44, 1  ;;  %v2279_v1 = vperm.slane %v2268_v44, 0  ;;  %v2284_v43 = vperm.slane %v2268_v44, 5 }
 0x3bf   :  { %v2283_v17 = vperm.slane %v2268_v44, 4  ;;  %v2282_v26 = vperm.slane %v2268_v44, 3  ;;  %v2285_v11 = vperm.slane %v2268_v44, 6 }
 0x3c0   :  { %v2313_v39 = vsub.f32 %v4609_v33, %v2281_v62  ;;  %v2312_v61 = vsub.f32 %v4606_v36, %v2280_v52  ;;  %v2311_v47 = vsub.f32 %v4612_v16, %v2279_v1  ;;  %v2316_v6 = vsub.f32 %v4623_v56, %v2284_v43 }
 0x3c1   :  { %v2315_v41 = vsub.f32 %v4618_v0, %v2283_v17  ;;  %v2314_v42 = vsub.f32 %v4615_v45, %v2282_v26  ;;  %v2286_v36 = vperm.slane %v2268_v44, 7  ;;  %v2317_v0 = vsub.f32 %v4628_v35, %v2285_v11 }
 0x3c2   :  { %v2339_v48 = vmul.f32 1.442695, %v2313_v39  ;;  %v2337_v15 = vmul.f32 1.442695, %v2312_v61  ;;  %v2335_v21 = vmul.f32 1.442695, %v2311_v47 }
 0x3c3   :  { %v2345_v33 = vmul.f32 1.442695, %v2316_v6  ;;  %v2343_v54 = vmul.f32 1.442695, %v2315_v41  ;;  %v2341_v16 = vmul.f32 1.442695, %v2314_v42  ;;  %v2318_v45 = vsub.f32 %v4644_v24, %v2286_v36  ;;  %v4725_v24 = vpop.xlane.xlu1 %2176 }
 0x3c4   :  { %3735 = vpow2.f32 %v2339_v48  ;;  %v2347_v18 = vmul.f32 1.442695, %v2317_v0 }
 0x3c5   :  { %3737 = vpow2.f32 %v2337_v15  ;;  %v2349_v56 = vmul.f32 1.442695, %v2318_v45 }
 0x3c6   :  { %3739 = vpow2.f32 %v2335_v21 }
 0x3c7   :  { %3741 = vpow2.f32 %v2345_v33 }
 0x3c8   :  { %3743 = vpow2.f32 %v2343_v54 }
 0x3c9   :  { %3745 = vpow2.f32 %v2341_v16 }
 0x3ca   :  { %v4705_v55 = vpop.eup %3735  ;;  %3747 = vpow2.f32 %v2349_v56 }
 0x3cb   :  { %v4707_v12 = vpop.eup %3737  ;;  %2398 = vperm.xlu2 %3653, %v4705_v55   ;;  %3749 = vpow2.f32 %v2347_v18  ;;  %v4733_v30 = vpop.xlane.xlu1 %2185 }
 0x3cc   :  { %v4710_v50 = vpop.eup %3739  ;;  %2395 = vperm.xlu0 %3654, %v4707_v12  }
 0x3cd   :  { %2392 = vperm.xlu1 %3652, %v4710_v50   ;;  %v4716_v29 = vpop.eup %3741 }
 0x3ce   :  { %v4718_v2 = vpop.eup %3743 }
 0x3cf   :  { %v4721_v60 = vpop.eup %3745 }
 0x3d0   :  { %v4727_v53 = vpop.eup %3747 }
 0x3d1   :  { %v4729_v35 = vpop.eup %3749 }
 0x3d3   :  { %2407 = vperm.xlu2 %3653, %v4716_v29   ;;  %v4735_v14 = vpop.xlane.xlu1 %2194 }
 0x3d4   :  { %2404 = vperm.xlu0 %3654, %v4718_v2  }
 0x3d5   :  { %2401 = vperm.xlu1 %3652, %v4721_v60  }
 0x3db   :  { %v4737_v51 = vpop.xlane.xlu1 %2203 }
 0x3dc   :  { %2413 = vperm.xlu0 %3654, %v4727_v53  }
 0x3dd   :  { %2410 = vperm.xlu1 %3652, %v4729_v35  }
 0x3e4   :  { %v2372_v63 = vpop.permute.xlu2 %2371 }
 0x3e5   :  { %v2416_v44 = vperm.slane %v2372_v63, %v4561_v59 }
 0x3ec   :  { %v2378_v49 = vpop.permute.xlu2 %2377 }
 0x3ed   :  { %v2418_v47 = vperm.slane %v2378_v49, %v4561_v59 }
 0x3f4   :  { %v2384_v20 = vpop.permute.xlu2 %2383 }
 0x3f5   :  { %v2420_v48 = vperm.slane %v2384_v20, %v4561_v59 }
 0x3fc   :  { %v2390_v17 = vpop.permute.xlu2 %2389 }
 0x3fd   :  { %v2369_v13 = vpop.permute.xlu1 %2368  ;;  %v2422_v6 = vperm.slane %v2390_v17, %v4561_v59 }
 0x3fe   :  { %v2415_v8 = vperm.slane %v2369_v13, %v4561_v59  ;;  %v2375_v23 = vpop.permute.xlu0 %2374 }
 0x3ff   :  { %v2417_v62 = vperm.slane %v2375_v23, %v4561_v59 }
 0x400   :  { %v2431_v52 = vsel %vm2239_vm0, %v2416_v44, %v2415_v8 }
 0x401   :  { %v2432_v39 = vsel %vm2241_vm1, %v2417_v62, %v2431_v52 }
 0x402   :  { %v2433_v43 = vsel %vm2243_vm2, %v2418_v47, %v2432_v39 }
 0x405   :  { %v2381_v1 = vpop.permute.xlu1 %2380 }
 0x406   :  { %v2419_v61 = vperm.slane %v2381_v1, %v4561_v59 }
 0x408   :  { %v2434_v26 = vsel %vm2245_vm3, %v2419_v61, %v2433_v43 }
 0x409   :  { %v2435_v41 = vsel %vm2247_vm4, %v2420_v48, %v2434_v26 }
 0x40d   :  { %v2387_v15 = vpop.permute.xlu1 %2386 }
 0x40e   :  { %v2421_v21 = vperm.slane %v2387_v15, %v4561_v59 }
 0x410   :  { %v2436_v42 = vsel %vm2249_vm5, %v2421_v21, %v2435_v41 }
 0x411   :  { %v2437_v33 = vsel %vm2251_vm6, %v2422_v6, %v2436_v42 }
 0x412   :  { %v2447_v54 = vsel %vm2262_vm7, %v2437_v33, 0.0 }
 0x413   :  { %2448 = vadd.xlane.f32.xlu2 %v2447_v54 }
 0x425   :  { %v2399_v11 = vpop.permute.xlu2 %2398 }
 0x426   :  { %v2425_v49 = vperm.slane %v2399_v11, %v4561_v59 }
 0x42d   :  { %v2408_v44 = vpop.permute.xlu2 %2407 }
 0x42e   :  { %v2428_v1 = vperm.slane %v2408_v44, %v4561_v59 }
 0x43e   :  { %v2396_v36 = vpop.permute.xlu0 %2395 }
 0x43f   :  { %v2393_v16 = vpop.permute.xlu1 %2392  ;;  %v2424_v0 = vperm.slane %v2396_v36, %v4561_v59 }
 0x440   :  { %v2423_v45 = vperm.slane %v2393_v16, %v4561_v59 }
 0x442   :  { %v2438_v18 = vsel %vm2239_vm0, %v2424_v0, %v2423_v45 }
 0x443   :  { %v2439_v8 = vsel %vm2241_vm1, %v2425_v49, %v2438_v18 }
 0x446   :  { %v2405_v56 = vpop.permute.xlu0 %2404 }
 0x447   :  { %v2402_v63 = vpop.permute.xlu1 %2401  ;;  %v2427_v23 = vperm.slane %v2405_v56, %v4561_v59 }
 0x448   :  { %v2426_v13 = vperm.slane %v2402_v63, %v4561_v59 }
 0x44a   :  { %v2440_v20 = vsel %vm2243_vm2, %v2426_v13, %v2439_v8 }
 0x44b   :  { %v2441_v62 = vsel %vm2245_vm3, %v2427_v23, %v2440_v20 }
 0x44c   :  { %v2442_v43 = vsel %vm2247_vm4, %v2428_v1, %v2441_v62 }
 0x44e   :  { %v2414_v52 = vpop.permute.xlu0 %2413 }
 0x44f   :  { %v2411_v39 = vpop.permute.xlu1 %2410  ;;  %v2430_v61 = vperm.slane %v2414_v52, %v4561_v59 }
 0x450   :  { %v2429_v47 = vperm.slane %v2411_v39, %v4561_v59 }
 0x452   :  { %v2443_v17 = vsel %vm2249_vm5, %v2429_v47, %v2442_v43 }
 0x453   :  { %v2444_v26 = vsel %vm2251_vm6, %v2430_v61, %v2443_v17 }
 0x454   :  { %v2450_v48 = vsel %vm2262_vm7, %v2444_v26, 0.0 }
 0x455   :  { %2451 = vadd.xlane.f32.xlu1 %v2450_v48 }
 0x486   :  { %v2449_v15 = vpop.xlane.xlu2 %2448 }
 0x487   :  { %3751 = vrcp.f32 %v2449_v15  ;;  %v2464_v42 = vand.u32 2147483648, %v2449_v15  ;;  %v2462_v54 = vand.u32 2147483647, %v2449_v15  ;;  %vm2458_vm9 = vweird.f32 %v2449_v15 }
 0x489   :  { %v2465_v16 = vor.u32 1.1754944e-38, %v2464_v42  ;;  %vm2463_vm11 = vcmp.eq.f32.partialorder %v2462_v54, 8.507059e+37 }
 0x48d   :  { %v3752_v21 = vpop.eup %3751 }
 0x48e   :  { %v2454_v6 = vmul.f32 %v3752_v21, %v2449_v15  ;;  %vm2459_vm8 = vweird.f32 %v3752_v21 }
 0x48f   :  { %vm2460_vm10 = vmor %vm2458_vm9, %vm2459_vm8  ;;  %vm2653_vm8 = vcmask 7168  }
 0x490   :  { %v2455_v41 = vsub.f32 1.0, %v2454_v6 }
 0x492   :  { %v2456_v33 = vmul.f32 %v3752_v21, %v2455_v41 }
 0x494   :  { %v2457_v36 = vadd.f32 %v3752_v21, %v2456_v33 }
 0x496   :  { %v2461_v11 = vsel %vm2460_vm10, %v3752_v21, %v2457_v36 }
 0x497   :  { %v2466_v45 = vsel %vm2463_vm11, %v2465_v16, %v2461_v11 }
 0x498   :  { %v2483_v0 = vperm.slane %v2466_v45, 0  ;;  %v2488_v56 = vperm.slane %v2466_v45, 5  ;;  %v2489_v18 = vperm.slane %v2466_v45, 6  ;;  %v2484_v20 = vperm.slane %v2466_v45, 1 }
 0x499   :  { %v2486_v62 = vperm.slane %v2466_v45, 3  ;;  %v2487_v47 = vperm.slane %v2466_v45, 4  ;;  %v2490_v15 = vperm.slane %v2466_v45, 7 }
 0x49a   :  { %v2515_v63 = vmul.f32 %v4666_v7, %v2483_v0  ;;  %v4773_v49 = vmul.f32 %v4684_v58, %v2488_v56  ;;  %v4776_v13 = vmul.f32 %v4686_v37, %v2489_v18  ;;  %v2516_v44 = vmul.f32 %v4664_v19, %v2484_v20 }
 0x49b   :  { %v2485_v7 = vperm.slane %v2466_v45, 2  ;;  %v2518_v37 = vmul.f32 %v4675_v27, %v2486_v62  ;;  %v2522_v33 = vmul.f32 %v4690_v31, %v2490_v15 }
 0x49c   :  { %2673 = vperm.xlu0 %3654, %v2515_v63   ;;  %v2536_v8 = vmul.f32 %v4773_v49, %v4682_v25  ;;  %v2537_v23 = vmul.f32 %v4776_v13, %v4725_v24  ;;  %v2531_v52 = vmul.f32 %v2515_v63, %v4535_v32  ;;  %v2532_v25 = vmul.f32 %v2516_v44, %v4539_v22 }
 0x49d   :  { %v2517_v58 = vmul.f32 %v4669_v28, %v2485_v7  ;;  %v2534_v28 = vmul.f32 %v2518_v37, %v4544_v57  ;;  %v2519_v22 = vmul.f32 %v4677_v40, %v2487_v47  ;;  %v2538_v11 = vmul.f32 %v2522_v33, %v4653_v10 }
 0x49e   :  { %2579 = vperm.xlu2 %3653, %v2536_v8   ;;  %2582 = vperm.xlu1 %3652, %v2537_v23  }
 0x49f   :  { %v2533_v1 = vmul.f32 %v2517_v58, %v4542_v34  ;;  %v2535_v21 = vmul.f32 %v2519_v22, %v4546_v5 }
 0x4a4   :  { %2676 = vperm.xlu0 %3654, %v2516_v44  }
 0x4ac   :  { %2679 = vperm.xlu0 %3654, %v2517_v58  }
 0x4b4   :  { %2682 = vperm.xlu0 %3654, %v2518_v37  }
 0x4bc   :  { %2564 = vperm.xlu0 %3654, %v2531_v52  }
 0x4c4   :  { %2567 = vperm.xlu0 %3654, %v2532_v25  }
 0x4c8   :  { %v2452_v24 = vpop.xlane.xlu1 %2451 }
 0x4c9   :  { %3753 = vrcp.f32 %v2452_v24  ;;  %v2478_v43 = vand.u32 2147483648, %v2452_v24  ;;  %v2476_v17 = vand.u32 2147483647, %v2452_v24  ;;  %vm2472_vm13 = vweird.f32 %v2452_v24 }
 0x4cb   :  { %v2479_v26 = vor.u32 1.1754944e-38, %v2478_v43  ;;  %vm2477_vm15 = vcmp.eq.f32.partialorder %v2476_v17, 8.507059e+37 }
 0x4cc   :  { %2570 = vperm.xlu0 %3654, %v2533_v1  }
 0x4cf   :  { %v3754_v19 = vpop.eup %3753 }
 0x4d0   :  { %v2468_v39 = vmul.f32 %v3754_v19, %v2452_v24  ;;  %vm2473_vm12 = vweird.f32 %v3754_v19 }
 0x4d1   :  { %vm2474_vm14 = vmor %vm2472_vm13, %vm2473_vm12 }
 0x4d2   :  { %v2469_v61 = vsub.f32 1.0, %v2468_v39 }
 0x4d4   :  { %v2470_v27 = vmul.f32 %v3754_v19, %v2469_v61  ;;  %2573 = vperm.xlu0 %3654, %v2534_v28  }
 0x4d6   :  { %v2471_v32 = vadd.f32 %v3754_v19, %v2470_v27 }
 0x4d8   :  { %v2475_v48 = vsel %vm2474_vm14, %v3754_v19, %v2471_v32 }
 0x4d9   :  { %v2480_v34 = vsel %vm2477_vm15, %v2479_v26, %v2475_v48 }
 0x4da   :  { %v2494_v6 = vperm.slane %v2480_v34, 3  ;;  %v2493_v57 = vperm.slane %v2480_v34, 2  ;;  %v2497_v36 = vperm.slane %v2480_v34, 6  ;;  %v2496_v16 = vperm.slane %v2480_v34, 5 }
 0x4db   :  { %v2498_v0 = vperm.slane %v2480_v34, 7 }
 0x4dc   :  { %2576 = vperm.xlu0 %3654, %v2535_v21   ;;  %v2526_v41 = vmul.f32 %v4721_v60, %v2494_v6  ;;  %v2525_v42 = vmul.f32 %v4705_v55, %v2493_v57  ;;  %v4798_v5 = vmul.f32 %v4729_v35, %v2497_v36  ;;  %v4801_v45 = vmul.f32 %v4716_v29, %v2496_v16 }
 0x4dd   :  { %v2491_v60 = vperm.slane %v2480_v34, 0  ;;  %v2492_v55 = vperm.slane %v2480_v34, 1 }
 0x4de   :  { %v2542_v54 = vmul.f32 %v2526_v41, %v4695_v46  ;;  %v2541_v40 = vmul.f32 %v2525_v42, %v4655_v3  ;;  %v2545_v31 = vmul.f32 %v4798_v5, %v4697_v9  ;;  %v2544_v3 = vmul.f32 %v4801_v45, %v4657_v38 }
 0x4df   :  { %v2523_v46 = vmul.f32 %v4710_v50, %v2491_v60  ;;  %v2524_v35 = vmul.f32 %v4707_v12, %v2492_v55  ;;  %v2495_v9 = vperm.slane %v2480_v34, 4 }
 0x4e0   :  { %2597 = vperm.xlu1 %3652, %v2542_v54   ;;  %2594 = vperm.xlu2 %3653, %v2541_v40  }
 0x4e1   :  { %v2539_v10 = vmul.f32 %v2523_v46, %v4692_v4  ;;  %v2540_v29 = vmul.f32 %v2524_v35, %v4733_v30  ;;  %v2527_v38 = vmul.f32 %v4718_v2, %v2495_v9  ;;  %v2530_v4 = vmul.f32 %v4727_v53, %v2498_v0 }
 0x4e3   :  { %v2543_v50 = vmul.f32 %v2527_v38, %v4735_v14  ;;  %v2546_v12 = vmul.f32 %v2530_v4, %v4737_v51 }
 0x4e4   :  { %2585 = vperm.xlu0 %3654, %v2538_v11  }
 0x4e8   :  { %2606 = vperm.xlu1 %3652, %v2545_v31   ;;  %2603 = vperm.xlu2 %3653, %v2544_v3  }
 0x4ec   :  { %2588 = vperm.xlu0 %3654, %v2539_v10  }
 0x4f0   :  { %2691 = vperm.xlu1 %3652, %v4776_v13   ;;  %2688 = vperm.xlu2 %3653, %v4773_v49  }
 0x4f4   :  { %2591 = vperm.xlu0 %3654, %v2540_v29  }
 0x4f8   :  { %2706 = vperm.xlu1 %3652, %v2526_v41   ;;  %2703 = vperm.xlu2 %3653, %v2525_v42   ;;  %v2580_v19 = vpop.permute.xlu2 %2579 }
 0x4f9   :  { %v2616_v47 = vperm.slane %v2580_v19, %v4561_v59 }
 0x4fc   :  { %2600 = vperm.xlu0 %3654, %v2543_v50  }
 0x504   :  { %2609 = vperm.xlu0 %3654, %v2546_v12  }
 0x50c   :  { %2685 = vperm.xlu0 %3654, %v2519_v22  }
 0x50e   :  { %v2674_v56 = vpop.permute.xlu0 %2673 }
 0x50f   :  { %v2720_v30 = vperm.slane %v2674_v56, %v4561_v59 }
 0x510   :  { %v2583_v43 = vpop.permute.xlu1 %2582 }
 0x511   :  { %v2617_v17 = vperm.slane %v2583_v43, %v4561_v59 }
 0x514   :  { %2694 = vperm.xlu0 %3654, %v2522_v33  }
 0x516   :  { %v2677_v18 = vpop.permute.xlu0 %2676 }
 0x517   :  { %v2721_v63 = vperm.slane %v2677_v18, %v4561_v59 }
 0x519   :  { %v2736_v2 = vsel %vm2239_vm0, %v2721_v63, %v2720_v30 }
 0x51c   :  { %2697 = vperm.xlu0 %3654, %v2523_v46  }
 0x51e   :  { %v2680_v49 = vpop.permute.xlu0 %2679 }
 0x51f   :  { %v2722_v14 = vperm.slane %v2680_v49, %v4561_v59 }
 0x521   :  { %v2737_v13 = vsel %vm2241_vm1, %v2722_v14, %v2736_v2 }
 0x524   :  { %2700 = vperm.xlu0 %3654, %v2524_v35  }
 0x526   :  { %v2683_v53 = vpop.permute.xlu0 %2682 }
 0x527   :  { %v2723_v51 = vperm.slane %v2683_v53, %v4561_v59 }
 0x529   :  { %v2738_v8 = vsel %vm2243_vm2, %v2723_v51, %v2737_v13 }
 0x52c   :  { %2709 = vperm.xlu0 %3654, %v2527_v38  }
 0x52e   :  { %v2565_v23 = vpop.permute.xlu0 %2564 }
 0x52f   :  { %v2611_v37 = vperm.slane %v2565_v23, %v4561_v59 }
 0x534   :  { %2718 = vperm.xlu0 %3654, %v2530_v4  }
 0x536   :  { %v2568_v20 = vpop.permute.xlu0 %2567 }
 0x537   :  { %v2612_v58 = vperm.slane %v2568_v20, %v4561_v59 }
 0x539   :  { %v2627_v24 = vsel %vm2239_vm0, %v2612_v58, %v2611_v37 }
 0x53a   :  { %v2595_v21 = vpop.permute.xlu2 %2594 }
 0x53b   :  { %v2621_v54 = vperm.slane %v2595_v21, %v4561_v59 }
 0x53e   :  { %v2571_v44 = vpop.permute.xlu0 %2570 }
 0x53f   :  { %v2613_v62 = vperm.slane %v2571_v44, %v4561_v59 }
 0x541   :  { %v2628_v39 = vsel %vm2241_vm1, %v2613_v62, %v2627_v24 }
 0x542   :  { %v2604_v60 = vpop.permute.xlu2 %2603 }
 0x543   :  { %v2624_v46 = vperm.slane %v2604_v60, %v4561_v59 }
 0x546   :  { %v2574_v7 = vpop.permute.xlu0 %2573 }
 0x547   :  { %v2614_v52 = vperm.slane %v2574_v7, %v4561_v59 }
 0x549   :  { %v2629_v61 = vsel %vm2243_vm2, %v2614_v52, %v2628_v39 }
 0x54a   :  { %v2689_v56 = vpop.permute.xlu2 %2688 }
 0x54b   :  { %v2725_v18 = vperm.slane %v2689_v56, %v4561_v59 }
 0x54e   :  { %v2577_v25 = vpop.permute.xlu0 %2576 }
 0x54f   :  { %v2615_v1 = vperm.slane %v2577_v25, %v4561_v59 }
 0x551   :  { %v2630_v28 = vsel %vm2245_vm3, %v2615_v1, %v2629_v61 }
 0x552   :  { %v2631_v27 = vsel %vm2247_vm4, %v2616_v47, %v2630_v28  ;;  %v2598_v41 = vpop.permute.xlu1 %2597  ;;  %v2704_v51 = vpop.permute.xlu2 %2703 }
 0x553   :  { %v2632_v26 = vsel %vm2249_vm5, %v2617_v17, %v2631_v27  ;;  %v2622_v16 = vperm.slane %v2598_v41, %v4561_v59  ;;  %v2730_v1 = vperm.slane %v2704_v51, %v4561_v59 }
 0x556   :  { %v2586_v32 = vpop.permute.xlu0 %2585 }
 0x557   :  { %v2618_v22 = vperm.slane %v2586_v32, %v4561_v59 }
 0x559   :  { %v2633_v48 = vsel %vm2251_vm6, %v2618_v22, %v2632_v26 }
 0x55a   :  { %v2643_v34 = vsel %vm2262_vm7, %v2633_v48, 0.0  ;;  %v2607_v10 = vpop.permute.xlu1 %2606 }
 0x55b   :  { %2644 = vadd.xlane.f32.xlu2 %v2643_v34  ;;  %v2625_v35 = vperm.slane %v2607_v10, %v4561_v59 }
 0x55e   :  { %v2589_v15 = vpop.permute.xlu0 %2588 }
 0x55f   :  { %v2619_v42 = vperm.slane %v2589_v15, %v4561_v59 }
 0x562   :  { %v2692_v30 = vpop.permute.xlu1 %2691 }
 0x563   :  { %v2726_v2 = vperm.slane %v2692_v30, %v4561_v59 }
 0x566   :  { %v2592_v6 = vpop.permute.xlu0 %2591 }
 0x567   :  { %v2620_v57 = vperm.slane %v2592_v6, %v4561_v59 }
 0x569   :  { %v2634_v33 = vsel %vm2239_vm0, %v2620_v57, %v2619_v42 }
 0x56a   :  { %v2635_v40 = vsel %vm2241_vm1, %v2621_v54, %v2634_v33  ;;  %v2707_v44 = vpop.permute.xlu1 %2706 }
 0x56b   :  { %v2636_v31 = vsel %vm2243_vm2, %v2622_v16, %v2635_v40  ;;  %v2731_v28 = vperm.slane %v2707_v44, %v4561_v59 }
 0x56e   :  { %v2601_v36 = vpop.permute.xlu0 %2600 }
 0x56f   :  { %v2623_v11 = vperm.slane %v2601_v36, %v4561_v59 }
 0x571   :  { %v2637_v3 = vsel %vm2245_vm3, %v2623_v11, %v2636_v31 }
 0x572   :  { %v2638_v55 = vsel %vm2247_vm4, %v2624_v46, %v2637_v3 }
 0x573   :  { %2712 = vperm.xlu2 %3653, %v4801_v45   ;;  %v2639_v38 = vsel %vm2249_vm5, %v2625_v35, %v2638_v55 }
 0x576   :  { %v2610_v29 = vpop.permute.xlu0 %2609 }
 0x577   :  { %v2626_v9 = vperm.slane %v2610_v29, %v4561_v59 }
 0x579   :  { %v2640_v50 = vsel %vm2251_vm6, %v2626_v9, %v2639_v38 }
 0x57a   :  { %v2646_v0 = vsel %vm2262_vm7, %v2640_v50, 0.0 }
 0x57b   :  { %2647 = vadd.xlane.f32.xlu1 %v2646_v0 }
 0x57e   :  { %v2686_v4 = vpop.permute.xlu0 %2685 }
 0x57f   :  { %v2724_v12 = vperm.slane %v2686_v4, %v4561_v59 }
 0x581   :  { %v2739_v45 = vsel %vm2245_vm3, %v2724_v12, %v2738_v8  ;;  %v2650_v8 = vstv %s4906_s8 }
 0x582   :  { %v2740_v63 = vsel %vm2247_vm4, %v2725_v18, %v2739_v45 }
 0x583   :  { %v2741_v13 = vsel %vm2249_vm5, %v2726_v2, %v2740_v63 }
 0x586   :  { %v2695_v49 = vpop.permute.xlu0 %2694 }
 0x587   :  { %v2727_v14 = vperm.slane %v2695_v49, %v4561_v59 }
 0x589   :  { %v2742_v53 = vsel %vm2251_vm6, %v2727_v14, %v2741_v13 }
 0x58a   :  { %2752 = vst.msk [vmem:[%s4908_s10] sm:$0xff] %vm2262_vm7, %v2742_v53 }
 0x58e   :  { %v2698_v7 = vpop.permute.xlu0 %2697 }
 0x58f   :  { %v2728_v25 = vperm.slane %v2698_v7, %v4561_v59 }
 0x594   :  { %2715 = vperm.xlu1 %3652, %v4798_v5  }
 0x596   :  { %v2701_v37 = vpop.permute.xlu0 %2700 }
 0x597   :  { %v2729_v52 = vperm.slane %v2701_v37, %v4561_v59 }
 0x599   :  { %v2743_v24 = vsel %vm2239_vm0, %v2729_v52, %v2728_v25 }
 0x59a   :  { %v2744_v39 = vsel %vm2241_vm1, %v2730_v1, %v2743_v24 }
 0x59b   :  { %v2745_v27 = vsel %vm2243_vm2, %v2731_v28, %v2744_v39 }
 0x59e   :  { %v2710_v5 = vpop.permute.xlu0 %2709 }
 0x59f   :  { %v2732_v61 = vperm.slane %v2710_v5, %v4561_v59 }
 0x5a1   :  { %v2746_v32 = vsel %vm2245_vm3, %v2732_v61, %v2745_v27 }
 0x5a6   :  { %v2719_v43 = vpop.permute.xlu0 %2718 }
 0x5a7   :  { %v2735_v26 = vperm.slane %v2719_v43, %v4561_v59 }
 0x5ce   :  { %v2645_v23 = vpop.xlane.xlu2 %2644 }
 0x5cf   :  { %v2651_v20 = vadd.f32 %v2650_v8, %v2645_v23 }
 0x5d1   :  { %2654 = vst.msk [vmem:[%s4907_s9] sm:$0xff] %vm2653_vm8, %v2651_v20 }
 0x5d6   :  { %v2713_v19 = vpop.permute.xlu2 %2712 }
 0x5d7   :  { %v2733_v47 = vperm.slane %v2713_v19, %v4561_v59 }
 0x5d9   :  { %v2747_v48 = vsel %vm2247_vm4, %v2733_v47, %v2746_v32 }
 0x5ee   :  { %v2648_v58 = vpop.xlane.xlu1 %2647 }
 0x5ef   :  { %v2652_v62 = vadd.f32 %v2650_v8, %v2648_v58 }
 0x5f1   :  { %2655 = vst.msk [vmem:[%s4907_s9 + $0x8] sm:$0xff] %vm2653_vm8, %v2652_v62 }
 0x606   :  { %v2716_v17 = vpop.permute.xlu1 %2715 }
 0x607   :  { %v2734_v22 = vperm.slane %v2716_v17, %v4561_v59 }
 0x609   :  { %v2748_v34 = vsel %vm2249_vm5, %v2734_v22, %v2747_v48 }
 0x60a   :  { %v2749_v15 = vsel %vm2251_vm6, %v2735_v26, %v2748_v34 }
 0x60b   :  { %2753 = vst.msk [vmem:[%s4908_s10 + $0x8] sm:$0xff] %vm2262_vm7, %v2749_v15 }
 0x60c   :  { %2762 = vsyncpa [#allocation5], 1 }
 0x60d   :  { %2763 = vsyncpa [#allocation7], 1 }

</bundles_post_ra>
